<compile_context>
chip_gen: v7x
topology: tpu7x:2x2x1
jax: 0.10.0
libtpu: 0.0.40
codegen_flags: <defaults>
</compile_context>

<pallas_src>
import jax
import jax.numpy as jnp
import numpy as np
from jax.experimental import pallas as pl
from jax.experimental.pallas import tpu as pltpu


# ---------------------------------------------------------------------------
# Fused forward kernel: conv1+relu+pool -> conv2+relu+pool -> fc1 -> fc2 -> fc3
# One grid step per image (grid=(B,), "parallel").
# ---------------------------------------------------------------------------
def _horizon_kernel(x_ref, wb1_ref, cb1_ref, sh1_ref, sw1_ref,
                    wb2_ref, cb2_ref, sh2_ref, sw2_ref,
                    w1_ref, fb1_ref, w2_ref, fb2_ref, w3_ref, fb3_ref,
                    o_ref):
    f32 = jnp.float32
    bf16 = jnp.bfloat16

    # ---- conv1 (5x5, 3->6): 5 banded matmuls on the (64, 64*3) row slab ----
    xs = x_ref[...].astype(bf16)                                   # (64, 192)
    a1 = jnp.zeros((60, 360), f32)                                 # (Ho, Wo*Cout)
    for i in range(5):
        a1 += jnp.dot(xs[i:i + 60, :], wb1_ref[i],
                      preferred_element_type=f32)
    a1 = jnp.maximum(a1 + cb1_ref[...], 0.0)                       # bias + ReLU

    # ---- maxpool 2x2 on (60, 60*6): shifted maxes + 0/1 selection matmuls ----
    hm = jnp.maximum(a1[0:59, :], a1[1:60, :])                     # (59, 360)
    hp = jnp.dot(sh1_ref[...], hm, preferred_element_type=f32)     # (30, 360) even rows
    wm = jnp.maximum(hp[:, 0:354], hp[:, 6:360])                   # (30, 354)
    p1 = jnp.dot(wm, sw1_ref[...], preferred_element_type=f32)     # (30, 180) even cols

    # ---- conv2 (5x5, 6->16) on the (30, 30*6) slab ----
    p1b = p1.astype(bf16)
    a2 = jnp.zeros((26, 416), f32)                                 # (26, 26*16)
    for i in range(5):
        a2 += jnp.dot(p1b[i:i + 26, :], wb2_ref[i],
                      preferred_element_type=f32)
    a2 = jnp.maximum(a2 + cb2_ref[...], 0.0)

    # ---- maxpool 2x2 on (26, 26*16) ----
    hm2 = jnp.maximum(a2[0:25, :], a2[1:26, :])                    # (25, 416)
    hp2 = jnp.dot(sh2_ref[...], hm2, preferred_element_type=f32)   # (13, 416)
    wm2 = jnp.maximum(hp2[:, 0:400], hp2[:, 16:416])               # (13, 400)
    p2 = jnp.dot(wm2, sw2_ref[...], preferred_element_type=f32)    # (13, 208) = (h, w*16+c)

    # ---- fc1 -> relu -> fc2 -> relu -> fc3 (flatten-free fc1 accumulation) ----
    p2b = p2.astype(bf16)
    h1 = jnp.zeros((1, 120), f32)
    for h in range(13):
        h1 += jnp.dot(p2b[h:h + 1, :], w1_ref[h * 208:(h + 1) * 208, :],
                      preferred_element_type=f32)
    h1 = jnp.maximum(h1 + fb1_ref[...], 0.0).astype(bf16)
    h2 = jnp.dot(h1, w2_ref[...], preferred_element_type=f32) + fb2_ref[...]
    h2 = jnp.maximum(h2, 0.0).astype(bf16)
    y = jnp.dot(h2, w3_ref[...], preferred_element_type=f32) + fb3_ref[...]
    o_ref[...] = y                                                 # (1, 2)


# ---------------------------------------------------------------------------
# Forward wrapper: one tiny NCHW->(H, W*C) slab transpose, then one pallas_call
# ---------------------------------------------------------------------------
def horizon_forward(x, pp):
    """x: (B, 3, 64, 64) NCHW float32; pp: packed params from prepare_params."""
    B = x.shape[0]
    assert x.shape[1:] == (3, 64, 64), "flat_features=16*13*13 requires 3x64x64 input"
    xs = jnp.transpose(x, (0, 2, 3, 1)).reshape(B, 64, 192)  # (B, H, W*Cin) slab

    args = (pp["wb1"], pp["cb1"], pp["sh1"], pp["sw1"],
            pp["wb2"], pp["cb2"], pp["sh2"], pp["sw2"],
            pp["w1"], pp["fb1"], pp["w2"], pp["fb2"], pp["w3"], pp["fb3"])

    def full_spec(a):
        nd = a.ndim
        return pl.BlockSpec(a.shape, lambda b, _nd=nd: (0,) * _nd)

    out = pl.pallas_call(
        _horizon_kernel,
        out_shape=jax.ShapeDtypeStruct((B, 1, 2), jnp.float32),
        grid=(B,),
        in_specs=[pl.BlockSpec((None, 64, 192), lambda b: (b, 0, 0))]
                 + [full_spec(a) for a in args],
        out_specs=pl.BlockSpec((None, 1, 2), lambda b: (b, 0, 0)),
        compiler_params=pltpu.CompilerParams(
            dimension_semantics=("parallel",),
            vmem_limit_bytes=32 * 1024 * 1024),
    )(xs, *args)
    return out.reshape(B, 2)


# ---------------------------------------------------------------------------
# One-time parameter repack (hoisted out of the jitted forward)
# ---------------------------------------------------------------------------
def prepare_params(params):
    bf16 = jnp.bfloat16

    def banded(conv_w, w_in, w_out):
        """Pack conv (Cout,Cin,kh,kw) into kh banded matrices (w_in*Cin, w_out*Cout)."""
        cout, cin, kh, kw = conv_w.shape
        wt = np.asarray(conv_w, np.float32).transpose(2, 3, 1, 0)  # (kh, kw, cin, cout)
        wb = np.zeros((kh, w_in * cin, w_out * cout), np.float32)
        for i in range(kh):
            for j in range(kw):
                for w in range(w_out):
                    wb[i, (w + j) * cin:(w + j + 1) * cin,
                       w * cout:(w + 1) * cout] = wt[i, j]
        return wb

    def sel_rows(n_out, n_in):          # picks rows 0, 2, 4, ...
        s = np.zeros((n_out, n_in), np.float32)
        s[np.arange(n_out), 2 * np.arange(n_out)] = 1.0
        return s

    def sel_cols(n_in, w_out, c):       # picks lane groups at even w (c channels each)
        s = np.zeros((n_in, w_out * c), np.float32)
        for w in range(w_out):
            s[2 * w * c + np.arange(c), w * c + np.arange(c)] = 1.0
        return s

    # fc1 columns: (c, h, w) torch-flatten order -> (h, w, c) kernel feature order.
    fc1 = np.asarray(params["fc1_w"], np.float32)                   # (120, 2704)
    w1 = (fc1.reshape(120, 16, 13, 13).transpose(0, 2, 3, 1)
             .reshape(120, 13 * 13 * 16).T)                         # (2704, 120)

    return {
        "wb1": jnp.asarray(banded(params["conv1_w"], 64, 60), bf16),              # (5,192,360)
        "cb1": jnp.asarray(np.tile(np.asarray(params["conv1_b"], np.float32), 60)
                           .reshape(1, 360)),
        "sh1": jnp.asarray(sel_rows(30, 59)),
        "sw1": jnp.asarray(sel_cols(354, 30, 6)),
        "wb2": jnp.asarray(banded(params["conv2_w"], 30, 26), bf16),              # (5,180,416)
        "cb2": jnp.asarray(np.tile(np.asarray(params["conv2_b"], np.float32), 26)
                           .reshape(1, 416)),
        "sh2": jnp.asarray(sel_rows(13, 25)),
        "sw2": jnp.asarray(sel_cols(400, 13, 16)),
        "w1": jnp.asarray(w1, bf16),                                              # (2704,120)
        "fb1": jnp.asarray(params["fc1_b"], jnp.float32).reshape(1, 120),
        "w2": jnp.asarray(np.asarray(params["fc2_w"], np.float32).T, bf16),       # (120,84)
        "fb2": jnp.asarray(params["fc2_b"], jnp.float32).reshape(1, 84),
        "w3": jnp.asarray(np.asarray(params["fc3_w"], np.float32).T, bf16),       # (84,2)
        "fb3": jnp.asarray(params["fc3_b"], jnp.float32).reshape(1, 2),
    }


def init_params(key):
    """Deterministic init mirroring PyTorch default U(-1/sqrt(fan_in), +1/sqrt(fan_in))."""
    def uinit(k, shape, fan_in):
        bound = 1.0 / jnp.sqrt(fan_in)
        return jax.random.uniform(k, shape, jnp.float32, -bound, bound)

    ks = jax.random.split(key, 10)
    return {
        "conv1_w": uinit(ks[0], (6, 3, 5, 5), 3 * 5 * 5),
        "conv1_b": uinit(ks[1], (6,), 3 * 5 * 5),
        "conv2_w": uinit(ks[2], (16, 6, 5, 5), 6 * 5 * 5),
        "conv2_b": uinit(ks[3], (16,), 6 * 5 * 5),
        "fc1_w": uinit(ks[4], (120, 16 * 13 * 13), 16 * 13 * 13),
        "fc1_b": uinit(ks[5], (120,), 16 * 13 * 13),
        "fc2_w": uinit(ks[6], (84, 120), 120),
        "fc2_b": uinit(ks[7], (84,), 120),
        "fc3_w": uinit(ks[8], (2, 84), 84),
        "fc3_b": uinit(ks[9], (2,), 84),
    }


if __name__ == "__main__":
    key = jax.random.PRNGKey(0)
    k_in, k_p = jax.random.split(key)
    x = jax.random.normal(k_in, (2, 3, 64, 64), jnp.float32)
    params = init_params(k_p)
    packed = prepare_params(params)     # one-time weight repack, outside the jitted forward

    fwd = jax.jit(horizon_forward)
    logits = jax.block_until_ready(fwd(x, packed))
    assert logits.shape == (2, 2), logits.shape
    assert bool(jnp.all(jnp.isfinite(logits)))
    print("KERNEL_OK")
</pallas_src>

<mosaic_0001>
module attributes {stable_mosaic.version = 11 : i64} {
  func.func @_horizon_kernel(%arg0: i32, %arg1: memref<1x64x192xf32, #tpu.memory_space<vmem>>, %arg2: memref<5x192x360xbf16, #tpu.memory_space<vmem>>, %arg3: memref<1x360xf32, #tpu.memory_space<vmem>>, %arg4: memref<30x59xf32, #tpu.memory_space<vmem>>, %arg5: memref<354x180xf32, #tpu.memory_space<vmem>>, %arg6: memref<5x180x416xbf16, #tpu.memory_space<vmem>>, %arg7: memref<1x416xf32, #tpu.memory_space<vmem>>, %arg8: memref<13x25xf32, #tpu.memory_space<vmem>>, %arg9: memref<400x208xf32, #tpu.memory_space<vmem>>, %arg10: memref<2704x120xbf16, #tpu.memory_space<vmem>>, %arg11: memref<1x120xf32, #tpu.memory_space<vmem>>, %arg12: memref<120x84xbf16, #tpu.memory_space<vmem>>, %arg13: memref<1x84xf32, #tpu.memory_space<vmem>>, %arg14: memref<84x2xbf16, #tpu.memory_space<vmem>>, %arg15: memref<1x2xf32, #tpu.memory_space<vmem>>, %arg16: memref<1x1x2xf32, #tpu.memory_space<vmem>>) attributes {dimension_semantics = [#tpu.dimension_semantics<parallel>], iteration_bounds = array<i64: 2>, scalar_prefetch = 0 : i64, scratch_operands = 0 : i64, tpu.core_type = #tpu.core_type<tc>, window_params = [{transform_indices = @transform_0, window_bounds = array<i64: 1, 64, 192>}, {pipeline_mode = #tpu.pipeline_mode<synchronous>, transform_indices = @transform_1, window_bounds = array<i64: 5, 192, 360>}, {pipeline_mode = #tpu.pipeline_mode<synchronous>, transform_indices = @transform_2, window_bounds = array<i64: 1, 360>}, {pipeline_mode = #tpu.pipeline_mode<synchronous>, transform_indices = @transform_3, window_bounds = array<i64: 30, 59>}, {pipeline_mode = #tpu.pipeline_mode<synchronous>, transform_indices = @transform_4, window_bounds = array<i64: 354, 180>}, {pipeline_mode = #tpu.pipeline_mode<synchronous>, transform_indices = @transform_5, window_bounds = array<i64: 5, 180, 416>}, {pipeline_mode = #tpu.pipeline_mode<synchronous>, transform_indices = @transform_6, window_bounds = array<i64: 1, 416>}, {pipeline_mode = #tpu.pipeline_mode<synchronous>, transform_indices = @transform_7, window_bounds = array<i64: 13, 25>}, {pipeline_mode = #tpu.pipeline_mode<synchronous>, transform_indices = @transform_8, window_bounds = array<i64: 400, 208>}, {pipeline_mode = #tpu.pipeline_mode<synchronous>, transform_indices = @transform_9, window_bounds = array<i64: 2704, 120>}, {pipeline_mode = #tpu.pipeline_mode<synchronous>, transform_indices = @transform_10, window_bounds = array<i64: 1, 120>}, {pipeline_mode = #tpu.pipeline_mode<synchronous>, transform_indices = @transform_11, window_bounds = array<i64: 120, 84>}, {pipeline_mode = #tpu.pipeline_mode<synchronous>, transform_indices = @transform_12, window_bounds = array<i64: 1, 84>}, {pipeline_mode = #tpu.pipeline_mode<synchronous>, transform_indices = @transform_13, window_bounds = array<i64: 84, 2>}, {pipeline_mode = #tpu.pipeline_mode<synchronous>, transform_indices = @transform_14, window_bounds = array<i64: 1, 2>}, {transform_indices = @transform_15, window_bounds = array<i64: 1, 1, 2>}]} {
    %c0 = arith.constant 0 : index
    %c0_0 = arith.constant 0 : index
    %c0_1 = arith.constant 0 : index
    %0 = vector.load %arg1[%c0, %c0_0, %c0_1] : memref<1x64x192xf32, #tpu.memory_space<vmem>>, vector<1x64x192xf32>
    %1 = vector.shape_cast %0 : vector<1x64x192xf32> to vector<64x192xf32>
    %2 = arith.truncf %1 : vector<64x192xf32> to vector<64x192xbf16>
    %cst = arith.constant 0.000000e+00 : f32
    %3 = vector.broadcast %cst : f32 to vector<60x360xf32>
    %4 = vector.extract_strided_slice %2 {offsets = [0, 0], sizes = [60, 192], strides = [1, 1]} : vector<64x192xbf16> to vector<60x192xbf16>
    %c0_2 = arith.constant 0 : index
    %c0_3 = arith.constant 0 : index
    %c0_4 = arith.constant 0 : index
    %5 = vector.load %arg2[%c0_2, %c0_3, %c0_4] : memref<5x192x360xbf16, #tpu.memory_space<vmem>>, vector<1x192x360xbf16>
    %6 = vector.shape_cast %5 : vector<1x192x360xbf16> to vector<192x360xbf16>
    %cst_5 = arith.constant dense<0.000000e+00> : vector<60x360xf32>
    %7 = tpu.matmul %4, %6, %cst_5 {dimension_numbers = #tpu.dot_dimension_numbers<[1], [0], [0], [1], [0, 0, 1, 1], [], []>} : vector<60x192xbf16>, vector<192x360xbf16>, vector<60x360xf32> -> vector<60x360xf32>
    %8 = arith.addf %3, %7 : vector<60x360xf32>
    %9 = vector.extract_strided_slice %2 {offsets = [1, 0], sizes = [60, 192], strides = [1, 1]} : vector<64x192xbf16> to vector<60x192xbf16>
    %c1 = arith.constant 1 : index
    %c0_6 = arith.constant 0 : index
    %c0_7 = arith.constant 0 : index
    %10 = vector.load %arg2[%c1, %c0_6, %c0_7] : memref<5x192x360xbf16, #tpu.memory_space<vmem>>, vector<1x192x360xbf16>
    %11 = vector.shape_cast %10 : vector<1x192x360xbf16> to vector<192x360xbf16>
    %cst_8 = arith.constant dense<0.000000e+00> : vector<60x360xf32>
    %12 = tpu.matmul %9, %11, %cst_8 {dimension_numbers = #tpu.dot_dimension_numbers<[1], [0], [0], [1], [0, 0, 1, 1], [], []>} : vector<60x192xbf16>, vector<192x360xbf16>, vector<60x360xf32> -> vector<60x360xf32>
    %13 = arith.addf %8, %12 : vector<60x360xf32>
    %14 = vector.extract_strided_slice %2 {offsets = [2, 0], sizes = [60, 192], strides = [1, 1]} : vector<64x192xbf16> to vector<60x192xbf16>
    %c2 = arith.constant 2 : index
    %c0_9 = arith.constant 0 : index
    %c0_10 = arith.constant 0 : index
    %15 = vector.load %arg2[%c2, %c0_9, %c0_10] : memref<5x192x360xbf16, #tpu.memory_space<vmem>>, vector<1x192x360xbf16>
    %16 = vector.shape_cast %15 : vector<1x192x360xbf16> to vector<192x360xbf16>
    %cst_11 = arith.constant dense<0.000000e+00> : vector<60x360xf32>
    %17 = tpu.matmul %14, %16, %cst_11 {dimension_numbers = #tpu.dot_dimension_numbers<[1], [0], [0], [1], [0, 0, 1, 1], [], []>} : vector<60x192xbf16>, vector<192x360xbf16>, vector<60x360xf32> -> vector<60x360xf32>
    %18 = arith.addf %13, %17 : vector<60x360xf32>
    %19 = vector.extract_strided_slice %2 {offsets = [3, 0], sizes = [60, 192], strides = [1, 1]} : vector<64x192xbf16> to vector<60x192xbf16>
    %c3 = arith.constant 3 : index
    %c0_12 = arith.constant 0 : index
    %c0_13 = arith.constant 0 : index
    %20 = vector.load %arg2[%c3, %c0_12, %c0_13] : memref<5x192x360xbf16, #tpu.memory_space<vmem>>, vector<1x192x360xbf16>
    %21 = vector.shape_cast %20 : vector<1x192x360xbf16> to vector<192x360xbf16>
    %cst_14 = arith.constant dense<0.000000e+00> : vector<60x360xf32>
    %22 = tpu.matmul %19, %21, %cst_14 {dimension_numbers = #tpu.dot_dimension_numbers<[1], [0], [0], [1], [0, 0, 1, 1], [], []>} : vector<60x192xbf16>, vector<192x360xbf16>, vector<60x360xf32> -> vector<60x360xf32>
    %23 = arith.addf %18, %22 : vector<60x360xf32>
    %24 = vector.extract_strided_slice %2 {offsets = [4, 0], sizes = [60, 192], strides = [1, 1]} : vector<64x192xbf16> to vector<60x192xbf16>
    %c4 = arith.constant 4 : index
    %c0_15 = arith.constant 0 : index
    %c0_16 = arith.constant 0 : index
    %25 = vector.load %arg2[%c4, %c0_15, %c0_16] : memref<5x192x360xbf16, #tpu.memory_space<vmem>>, vector<1x192x360xbf16>
    %26 = vector.shape_cast %25 : vector<1x192x360xbf16> to vector<192x360xbf16>
    %cst_17 = arith.constant dense<0.000000e+00> : vector<60x360xf32>
    %27 = tpu.matmul %24, %26, %cst_17 {dimension_numbers = #tpu.dot_dimension_numbers<[1], [0], [0], [1], [0, 0, 1, 1], [], []>} : vector<60x192xbf16>, vector<192x360xbf16>, vector<60x360xf32> -> vector<60x360xf32>
    %28 = arith.addf %23, %27 : vector<60x360xf32>
    %c0_18 = arith.constant 0 : index
    %c0_19 = arith.constant 0 : index
    %29 = vector.load %arg3[%c0_18, %c0_19] : memref<1x360xf32, #tpu.memory_space<vmem>>, vector<1x360xf32>
    %30 = vector.broadcast %29 : vector<1x360xf32> to vector<60x360xf32>
    %31 = arith.addf %28, %30 : vector<60x360xf32>
    %cst_20 = arith.constant 0.000000e+00 : f32
    %32 = vector.broadcast %cst_20 : f32 to vector<60x360xf32>
    %33 = arith.maximumf %31, %32 : vector<60x360xf32>
    %34 = vector.extract_strided_slice %33 {offsets = [0, 0], sizes = [59, 360], strides = [1, 1]} : vector<60x360xf32> to vector<59x360xf32>
    %35 = vector.extract_strided_slice %33 {offsets = [1, 0], sizes = [59, 360], strides = [1, 1]} : vector<60x360xf32> to vector<59x360xf32>
    %36 = arith.maximumf %34, %35 : vector<59x360xf32>
    %c0_21 = arith.constant 0 : index
    %c0_22 = arith.constant 0 : index
    %37 = vector.load %arg4[%c0_21, %c0_22] : memref<30x59xf32, #tpu.memory_space<vmem>>, vector<30x59xf32>
    %cst_23 = arith.constant dense<0.000000e+00> : vector<30x360xf32>
    %38 = tpu.matmul %37, %36, %cst_23 {dimension_numbers = #tpu.dot_dimension_numbers<[1], [0], [0], [1], [0, 0, 1, 1], [], []>} : vector<30x59xf32>, vector<59x360xf32>, vector<30x360xf32> -> vector<30x360xf32>
    %39 = vector.extract_strided_slice %38 {offsets = [0, 0], sizes = [30, 354], strides = [1, 1]} : vector<30x360xf32> to vector<30x354xf32>
    %40 = vector.extract_strided_slice %38 {offsets = [0, 6], sizes = [30, 354], strides = [1, 1]} : vector<30x360xf32> to vector<30x354xf32>
    %41 = arith.maximumf %39, %40 : vector<30x354xf32>
    %c0_24 = arith.constant 0 : index
    %c0_25 = arith.constant 0 : index
    %42 = vector.load %arg5[%c0_24, %c0_25] : memref<354x180xf32, #tpu.memory_space<vmem>>, vector<354x180xf32>
    %cst_26 = arith.constant dense<0.000000e+00> : vector<30x180xf32>
    %43 = tpu.matmul %41, %42, %cst_26 {dimension_numbers = #tpu.dot_dimension_numbers<[1], [0], [0], [1], [0, 0, 1, 1], [], []>} : vector<30x354xf32>, vector<354x180xf32>, vector<30x180xf32> -> vector<30x180xf32>
    %44 = arith.truncf %43 : vector<30x180xf32> to vector<30x180xbf16>
    %cst_27 = arith.constant 0.000000e+00 : f32
    %45 = vector.broadcast %cst_27 : f32 to vector<26x416xf32>
    %46 = vector.extract_strided_slice %44 {offsets = [0, 0], sizes = [26, 180], strides = [1, 1]} : vector<30x180xbf16> to vector<26x180xbf16>
    %c0_28 = arith.constant 0 : index
    %c0_29 = arith.constant 0 : index
    %c0_30 = arith.constant 0 : index
    %47 = vector.load %arg6[%c0_28, %c0_29, %c0_30] : memref<5x180x416xbf16, #tpu.memory_space<vmem>>, vector<1x180x416xbf16>
    %48 = vector.shape_cast %47 : vector<1x180x416xbf16> to vector<180x416xbf16>
    %cst_31 = arith.constant dense<0.000000e+00> : vector<26x416xf32>
    %49 = tpu.matmul %46, %48, %cst_31 {dimension_numbers = #tpu.dot_dimension_numbers<[1], [0], [0], [1], [0, 0, 1, 1], [], []>} : vector<26x180xbf16>, vector<180x416xbf16>, vector<26x416xf32> -> vector<26x416xf32>
    %50 = arith.addf %45, %49 : vector<26x416xf32>
    %51 = vector.extract_strided_slice %44 {offsets = [1, 0], sizes = [26, 180], strides = [1, 1]} : vector<30x180xbf16> to vector<26x180xbf16>
    %c1_32 = arith.constant 1 : index
    %c0_33 = arith.constant 0 : index
    %c0_34 = arith.constant 0 : index
    %52 = vector.load %arg6[%c1_32, %c0_33, %c0_34] : memref<5x180x416xbf16, #tpu.memory_space<vmem>>, vector<1x180x416xbf16>
    %53 = vector.shape_cast %52 : vector<1x180x416xbf16> to vector<180x416xbf16>
    %cst_35 = arith.constant dense<0.000000e+00> : vector<26x416xf32>
    %54 = tpu.matmul %51, %53, %cst_35 {dimension_numbers = #tpu.dot_dimension_numbers<[1], [0], [0], [1], [0, 0, 1, 1], [], []>} : vector<26x180xbf16>, vector<180x416xbf16>, vector<26x416xf32> -> vector<26x416xf32>
    %55 = arith.addf %50, %54 : vector<26x416xf32>
    %56 = vector.extract_strided_slice %44 {offsets = [2, 0], sizes = [26, 180], strides = [1, 1]} : vector<30x180xbf16> to vector<26x180xbf16>
    %c2_36 = arith.constant 2 : index
    %c0_37 = arith.constant 0 : index
    %c0_38 = arith.constant 0 : index
    %57 = vector.load %arg6[%c2_36, %c0_37, %c0_38] : memref<5x180x416xbf16, #tpu.memory_space<vmem>>, vector<1x180x416xbf16>
    %58 = vector.shape_cast %57 : vector<1x180x416xbf16> to vector<180x416xbf16>
    %cst_39 = arith.constant dense<0.000000e+00> : vector<26x416xf32>
    %59 = tpu.matmul %56, %58, %cst_39 {dimension_numbers = #tpu.dot_dimension_numbers<[1], [0], [0], [1], [0, 0, 1, 1], [], []>} : vector<26x180xbf16>, vector<180x416xbf16>, vector<26x416xf32> -> vector<26x416xf32>
    %60 = arith.addf %55, %59 : vector<26x416xf32>
    %61 = vector.extract_strided_slice %44 {offsets = [3, 0], sizes = [26, 180], strides = [1, 1]} : vector<30x180xbf16> to vector<26x180xbf16>
    %c3_40 = arith.constant 3 : index
    %c0_41 = arith.constant 0 : index
    %c0_42 = arith.constant 0 : index
    %62 = vector.load %arg6[%c3_40, %c0_41, %c0_42] : memref<5x180x416xbf16, #tpu.memory_space<vmem>>, vector<1x180x416xbf16>
    %63 = vector.shape_cast %62 : vector<1x180x416xbf16> to vector<180x416xbf16>
    %cst_43 = arith.constant dense<0.000000e+00> : vector<26x416xf32>
    %64 = tpu.matmul %61, %63, %cst_43 {dimension_numbers = #tpu.dot_dimension_numbers<[1], [0], [0], [1], [0, 0, 1, 1], [], []>} : vector<26x180xbf16>, vector<180x416xbf16>, vector<26x416xf32> -> vector<26x416xf32>
    %65 = arith.addf %60, %64 : vector<26x416xf32>
    %66 = vector.extract_strided_slice %44 {offsets = [4, 0], sizes = [26, 180], strides = [1, 1]} : vector<30x180xbf16> to vector<26x180xbf16>
    %c4_44 = arith.constant 4 : index
    %c0_45 = arith.constant 0 : index
    %c0_46 = arith.constant 0 : index
    %67 = vector.load %arg6[%c4_44, %c0_45, %c0_46] : memref<5x180x416xbf16, #tpu.memory_space<vmem>>, vector<1x180x416xbf16>
    %68 = vector.shape_cast %67 : vector<1x180x416xbf16> to vector<180x416xbf16>
    %cst_47 = arith.constant dense<0.000000e+00> : vector<26x416xf32>
    %69 = tpu.matmul %66, %68, %cst_47 {dimension_numbers = #tpu.dot_dimension_numbers<[1], [0], [0], [1], [0, 0, 1, 1], [], []>} : vector<26x180xbf16>, vector<180x416xbf16>, vector<26x416xf32> -> vector<26x416xf32>
    %70 = arith.addf %65, %69 : vector<26x416xf32>
    %c0_48 = arith.constant 0 : index
    %c0_49 = arith.constant 0 : index
    %71 = vector.load %arg7[%c0_48, %c0_49] : memref<1x416xf32, #tpu.memory_space<vmem>>, vector<1x416xf32>
    %72 = vector.broadcast %71 : vector<1x416xf32> to vector<26x416xf32>
    %73 = arith.addf %70, %72 : vector<26x416xf32>
    %cst_50 = arith.constant 0.000000e+00 : f32
    %74 = vector.broadcast %cst_50 : f32 to vector<26x416xf32>
    %75 = arith.maximumf %73, %74 : vector<26x416xf32>
    %76 = vector.extract_strided_slice %75 {offsets = [0, 0], sizes = [25, 416], strides = [1, 1]} : vector<26x416xf32> to vector<25x416xf32>
    %77 = vector.extract_strided_slice %75 {offsets = [1, 0], sizes = [25, 416], strides = [1, 1]} : vector<26x416xf32> to vector<25x416xf32>
    %78 = arith.maximumf %76, %77 : vector<25x416xf32>
    %c0_51 = arith.constant 0 : index
    %c0_52 = arith.constant 0 : index
    %79 = vector.load %arg8[%c0_51, %c0_52] : memref<13x25xf32, #tpu.memory_space<vmem>>, vector<13x25xf32>
    %cst_53 = arith.constant dense<0.000000e+00> : vector<13x416xf32>
    %80 = tpu.matmul %79, %78, %cst_53 {dimension_numbers = #tpu.dot_dimension_numbers<[1], [0], [0], [1], [0, 0, 1, 1], [], []>} : vector<13x25xf32>, vector<25x416xf32>, vector<13x416xf32> -> vector<13x416xf32>
    %81 = vector.extract_strided_slice %80 {offsets = [0, 0], sizes = [13, 400], strides = [1, 1]} : vector<13x416xf32> to vector<13x400xf32>
    %82 = vector.extract_strided_slice %80 {offsets = [0, 16], sizes = [13, 400], strides = [1, 1]} : vector<13x416xf32> to vector<13x400xf32>
    %83 = arith.maximumf %81, %82 : vector<13x400xf32>
    %c0_54 = arith.constant 0 : index
    %c0_55 = arith.constant 0 : index
    %84 = vector.load %arg9[%c0_54, %c0_55] : memref<400x208xf32, #tpu.memory_space<vmem>>, vector<400x208xf32>
    %cst_56 = arith.constant dense<0.000000e+00> : vector<13x208xf32>
    %85 = tpu.matmul %83, %84, %cst_56 {dimension_numbers = #tpu.dot_dimension_numbers<[1], [0], [0], [1], [0, 0, 1, 1], [], []>} : vector<13x400xf32>, vector<400x208xf32>, vector<13x208xf32> -> vector<13x208xf32>
    %86 = arith.truncf %85 : vector<13x208xf32> to vector<13x208xbf16>
    %cst_57 = arith.constant 0.000000e+00 : f32
    %87 = vector.broadcast %cst_57 : f32 to vector<1x120xf32>
    %88 = vector.extract_strided_slice %86 {offsets = [0, 0], sizes = [1, 208], strides = [1, 1]} : vector<13x208xbf16> to vector<1x208xbf16>
    %c0_58 = arith.constant 0 : index
    %c0_59 = arith.constant 0 : index
    %89 = vector.load %arg10[%c0_58, %c0_59] : memref<2704x120xbf16, #tpu.memory_space<vmem>>, vector<208x120xbf16>
    %cst_60 = arith.constant dense<0.000000e+00> : vector<1x120xf32>
    %90 = tpu.matmul %88, %89, %cst_60 {dimension_numbers = #tpu.dot_dimension_numbers<[1], [0], [0], [1], [0, 0, 1, 1], [], []>} : vector<1x208xbf16>, vector<208x120xbf16>, vector<1x120xf32> -> vector<1x120xf32>
    %91 = arith.addf %87, %90 : vector<1x120xf32>
    %92 = vector.extract_strided_slice %86 {offsets = [1, 0], sizes = [1, 208], strides = [1, 1]} : vector<13x208xbf16> to vector<1x208xbf16>
    %c208 = arith.constant 208 : index
    %c0_61 = arith.constant 0 : index
    %93 = vector.load %arg10[%c208, %c0_61] : memref<2704x120xbf16, #tpu.memory_space<vmem>>, vector<208x120xbf16>
    %cst_62 = arith.constant dense<0.000000e+00> : vector<1x120xf32>
    %94 = tpu.matmul %92, %93, %cst_62 {dimension_numbers = #tpu.dot_dimension_numbers<[1], [0], [0], [1], [0, 0, 1, 1], [], []>} : vector<1x208xbf16>, vector<208x120xbf16>, vector<1x120xf32> -> vector<1x120xf32>
    %95 = arith.addf %91, %94 : vector<1x120xf32>
    %96 = vector.extract_strided_slice %86 {offsets = [2, 0], sizes = [1, 208], strides = [1, 1]} : vector<13x208xbf16> to vector<1x208xbf16>
    %c416 = arith.constant 416 : index
    %c0_63 = arith.constant 0 : index
    %97 = vector.load %arg10[%c416, %c0_63] : memref<2704x120xbf16, #tpu.memory_space<vmem>>, vector<208x120xbf16>
    %cst_64 = arith.constant dense<0.000000e+00> : vector<1x120xf32>
    %98 = tpu.matmul %96, %97, %cst_64 {dimension_numbers = #tpu.dot_dimension_numbers<[1], [0], [0], [1], [0, 0, 1, 1], [], []>} : vector<1x208xbf16>, vector<208x120xbf16>, vector<1x120xf32> -> vector<1x120xf32>
    %99 = arith.addf %95, %98 : vector<1x120xf32>
    %100 = vector.extract_strided_slice %86 {offsets = [3, 0], sizes = [1, 208], strides = [1, 1]} : vector<13x208xbf16> to vector<1x208xbf16>
    %c624 = arith.constant 624 : index
    %c0_65 = arith.constant 0 : index
    %101 = vector.load %arg10[%c624, %c0_65] : memref<2704x120xbf16, #tpu.memory_space<vmem>>, vector<208x120xbf16>
    %cst_66 = arith.constant dense<0.000000e+00> : vector<1x120xf32>
    %102 = tpu.matmul %100, %101, %cst_66 {dimension_numbers = #tpu.dot_dimension_numbers<[1], [0], [0], [1], [0, 0, 1, 1], [], []>} : vector<1x208xbf16>, vector<208x120xbf16>, vector<1x120xf32> -> vector<1x120xf32>
    %103 = arith.addf %99, %102 : vector<1x120xf32>
    %104 = vector.extract_strided_slice %86 {offsets = [4, 0], sizes = [1, 208], strides = [1, 1]} : vector<13x208xbf16> to vector<1x208xbf16>
    %c832 = arith.constant 832 : index
    %c0_67 = arith.constant 0 : index
    %105 = vector.load %arg10[%c832, %c0_67] : memref<2704x120xbf16, #tpu.memory_space<vmem>>, vector<208x120xbf16>
    %cst_68 = arith.constant dense<0.000000e+00> : vector<1x120xf32>
    %106 = tpu.matmul %104, %105, %cst_68 {dimension_numbers = #tpu.dot_dimension_numbers<[1], [0], [0], [1], [0, 0, 1, 1], [], []>} : vector<1x208xbf16>, vector<208x120xbf16>, vector<1x120xf32> -> vector<1x120xf32>
    %107 = arith.addf %103, %106 : vector<1x120xf32>
    %108 = vector.extract_strided_slice %86 {offsets = [5, 0], sizes = [1, 208], strides = [1, 1]} : vector<13x208xbf16> to vector<1x208xbf16>
    %c1040 = arith.constant 1040 : index
    %c0_69 = arith.constant 0 : index
    %109 = vector.load %arg10[%c1040, %c0_69] : memref<2704x120xbf16, #tpu.memory_space<vmem>>, vector<208x120xbf16>
    %cst_70 = arith.constant dense<0.000000e+00> : vector<1x120xf32>
    %110 = tpu.matmul %108, %109, %cst_70 {dimension_numbers = #tpu.dot_dimension_numbers<[1], [0], [0], [1], [0, 0, 1, 1], [], []>} : vector<1x208xbf16>, vector<208x120xbf16>, vector<1x120xf32> -> vector<1x120xf32>
    %111 = arith.addf %107, %110 : vector<1x120xf32>
    %112 = vector.extract_strided_slice %86 {offsets = [6, 0], sizes = [1, 208], strides = [1, 1]} : vector<13x208xbf16> to vector<1x208xbf16>
    %c1248 = arith.constant 1248 : index
    %c0_71 = arith.constant 0 : index
    %113 = vector.load %arg10[%c1248, %c0_71] : memref<2704x120xbf16, #tpu.memory_space<vmem>>, vector<208x120xbf16>
    %cst_72 = arith.constant dense<0.000000e+00> : vector<1x120xf32>
    %114 = tpu.matmul %112, %113, %cst_72 {dimension_numbers = #tpu.dot_dimension_numbers<[1], [0], [0], [1], [0, 0, 1, 1], [], []>} : vector<1x208xbf16>, vector<208x120xbf16>, vector<1x120xf32> -> vector<1x120xf32>
    %115 = arith.addf %111, %114 : vector<1x120xf32>
    %116 = vector.extract_strided_slice %86 {offsets = [7, 0], sizes = [1, 208], strides = [1, 1]} : vector<13x208xbf16> to vector<1x208xbf16>
    %c1456 = arith.constant 1456 : index
    %c0_73 = arith.constant 0 : index
    %117 = vector.load %arg10[%c1456, %c0_73] : memref<2704x120xbf16, #tpu.memory_space<vmem>>, vector<208x120xbf16>
    %cst_74 = arith.constant dense<0.000000e+00> : vector<1x120xf32>
    %118 = tpu.matmul %116, %117, %cst_74 {dimension_numbers = #tpu.dot_dimension_numbers<[1], [0], [0], [1], [0, 0, 1, 1], [], []>} : vector<1x208xbf16>, vector<208x120xbf16>, vector<1x120xf32> -> vector<1x120xf32>
    %119 = arith.addf %115, %118 : vector<1x120xf32>
    %120 = vector.extract_strided_slice %86 {offsets = [8, 0], sizes = [1, 208], strides = [1, 1]} : vector<13x208xbf16> to vector<1x208xbf16>
    %c1664 = arith.constant 1664 : index
    %c0_75 = arith.constant 0 : index
    %121 = vector.load %arg10[%c1664, %c0_75] : memref<2704x120xbf16, #tpu.memory_space<vmem>>, vector<208x120xbf16>
    %cst_76 = arith.constant dense<0.000000e+00> : vector<1x120xf32>
    %122 = tpu.matmul %120, %121, %cst_76 {dimension_numbers = #tpu.dot_dimension_numbers<[1], [0], [0], [1], [0, 0, 1, 1], [], []>} : vector<1x208xbf16>, vector<208x120xbf16>, vector<1x120xf32> -> vector<1x120xf32>
    %123 = arith.addf %119, %122 : vector<1x120xf32>
    %124 = vector.extract_strided_slice %86 {offsets = [9, 0], sizes = [1, 208], strides = [1, 1]} : vector<13x208xbf16> to vector<1x208xbf16>
    %c1872 = arith.constant 1872 : index
    %c0_77 = arith.constant 0 : index
    %125 = vector.load %arg10[%c1872, %c0_77] : memref<2704x120xbf16, #tpu.memory_space<vmem>>, vector<208x120xbf16>
    %cst_78 = arith.constant dense<0.000000e+00> : vector<1x120xf32>
    %126 = tpu.matmul %124, %125, %cst_78 {dimension_numbers = #tpu.dot_dimension_numbers<[1], [0], [0], [1], [0, 0, 1, 1], [], []>} : vector<1x208xbf16>, vector<208x120xbf16>, vector<1x120xf32> -> vector<1x120xf32>
    %127 = arith.addf %123, %126 : vector<1x120xf32>
    %128 = vector.extract_strided_slice %86 {offsets = [10, 0], sizes = [1, 208], strides = [1, 1]} : vector<13x208xbf16> to vector<1x208xbf16>
    %c2080 = arith.constant 2080 : index
    %c0_79 = arith.constant 0 : index
    %129 = vector.load %arg10[%c2080, %c0_79] : memref<2704x120xbf16, #tpu.memory_space<vmem>>, vector<208x120xbf16>
    %cst_80 = arith.constant dense<0.000000e+00> : vector<1x120xf32>
    %130 = tpu.matmul %128, %129, %cst_80 {dimension_numbers = #tpu.dot_dimension_numbers<[1], [0], [0], [1], [0, 0, 1, 1], [], []>} : vector<1x208xbf16>, vector<208x120xbf16>, vector<1x120xf32> -> vector<1x120xf32>
    %131 = arith.addf %127, %130 : vector<1x120xf32>
    %132 = vector.extract_strided_slice %86 {offsets = [11, 0], sizes = [1, 208], strides = [1, 1]} : vector<13x208xbf16> to vector<1x208xbf16>
    %c2288 = arith.constant 2288 : index
    %c0_81 = arith.constant 0 : index
    %133 = vector.load %arg10[%c2288, %c0_81] : memref<2704x120xbf16, #tpu.memory_space<vmem>>, vector<208x120xbf16>
    %cst_82 = arith.constant dense<0.000000e+00> : vector<1x120xf32>
    %134 = tpu.matmul %132, %133, %cst_82 {dimension_numbers = #tpu.dot_dimension_numbers<[1], [0], [0], [1], [0, 0, 1, 1], [], []>} : vector<1x208xbf16>, vector<208x120xbf16>, vector<1x120xf32> -> vector<1x120xf32>
    %135 = arith.addf %131, %134 : vector<1x120xf32>
    %136 = vector.extract_strided_slice %86 {offsets = [12, 0], sizes = [1, 208], strides = [1, 1]} : vector<13x208xbf16> to vector<1x208xbf16>
    %c2496 = arith.constant 2496 : index
    %c0_83 = arith.constant 0 : index
    %137 = vector.load %arg10[%c2496, %c0_83] : memref<2704x120xbf16, #tpu.memory_space<vmem>>, vector<208x120xbf16>
    %cst_84 = arith.constant dense<0.000000e+00> : vector<1x120xf32>
    %138 = tpu.matmul %136, %137, %cst_84 {dimension_numbers = #tpu.dot_dimension_numbers<[1], [0], [0], [1], [0, 0, 1, 1], [], []>} : vector<1x208xbf16>, vector<208x120xbf16>, vector<1x120xf32> -> vector<1x120xf32>
    %139 = arith.addf %135, %138 : vector<1x120xf32>
    %c0_85 = arith.constant 0 : index
    %c0_86 = arith.constant 0 : index
    %140 = vector.load %arg11[%c0_85, %c0_86] : memref<1x120xf32, #tpu.memory_space<vmem>>, vector<1x120xf32>
    %141 = arith.addf %139, %140 : vector<1x120xf32>
    %cst_87 = arith.constant 0.000000e+00 : f32
    %142 = vector.broadcast %cst_87 : f32 to vector<1x120xf32>
    %143 = arith.maximumf %141, %142 : vector<1x120xf32>
    %144 = arith.truncf %143 : vector<1x120xf32> to vector<1x120xbf16>
    %c0_88 = arith.constant 0 : index
    %c0_89 = arith.constant 0 : index
    %145 = vector.load %arg12[%c0_88, %c0_89] : memref<120x84xbf16, #tpu.memory_space<vmem>>, vector<120x84xbf16>
    %cst_90 = arith.constant dense<0.000000e+00> : vector<1x84xf32>
    %146 = tpu.matmul %144, %145, %cst_90 {dimension_numbers = #tpu.dot_dimension_numbers<[1], [0], [0], [1], [0, 0, 1, 1], [], []>} : vector<1x120xbf16>, vector<120x84xbf16>, vector<1x84xf32> -> vector<1x84xf32>
    %c0_91 = arith.constant 0 : index
    %c0_92 = arith.constant 0 : index
    %147 = vector.load %arg13[%c0_91, %c0_92] : memref<1x84xf32, #tpu.memory_space<vmem>>, vector<1x84xf32>
    %148 = arith.addf %146, %147 : vector<1x84xf32>
    %cst_93 = arith.constant 0.000000e+00 : f32
    %149 = vector.broadcast %cst_93 : f32 to vector<1x84xf32>
    %150 = arith.maximumf %148, %149 : vector<1x84xf32>
    %151 = arith.truncf %150 : vector<1x84xf32> to vector<1x84xbf16>
    %c0_94 = arith.constant 0 : index
    %c0_95 = arith.constant 0 : index
    %152 = vector.load %arg14[%c0_94, %c0_95] : memref<84x2xbf16, #tpu.memory_space<vmem>>, vector<84x2xbf16>
    %cst_96 = arith.constant dense<0.000000e+00> : vector<1x2xf32>
    %153 = tpu.matmul %151, %152, %cst_96 {dimension_numbers = #tpu.dot_dimension_numbers<[1], [0], [0], [1], [0, 0, 1, 1], [], []>} : vector<1x84xbf16>, vector<84x2xbf16>, vector<1x2xf32> -> vector<1x2xf32>
    %c0_97 = arith.constant 0 : index
    %c0_98 = arith.constant 0 : index
    %154 = vector.load %arg15[%c0_97, %c0_98] : memref<1x2xf32, #tpu.memory_space<vmem>>, vector<1x2xf32>
    %155 = arith.addf %153, %154 : vector<1x2xf32>
    %c0_99 = arith.constant 0 : index
    %c0_100 = arith.constant 0 : index
    %c0_101 = arith.constant 0 : index
    %156 = vector.load %arg16[%c0_99, %c0_100, %c0_101] : memref<1x1x2xf32, #tpu.memory_space<vmem>>, vector<1x1x2xf32>
    %157 = vector.shape_cast %156 : vector<1x1x2xf32> to vector<1x2xf32>
    %158 = vector.shape_cast %155 : vector<1x2xf32> to vector<1x1x2xf32>
    tpu.vector_store %arg16[%c0_99, %c0_100, %c0_101], %158 {strides = array<i32>} : memref<1x1x2xf32, #tpu.memory_space<vmem>>, vector<1x1x2xf32>,
    return
  }
  func.func @transform_0(%arg0: i32) -> (i32, i32, i32) {
    %c0_i32 = arith.constant 0 : i32
    %c0_i32_0 = arith.constant 0 : i32
    %c0_i32_1 = arith.constant 0 : i32
    return %arg0, %c0_i32, %c0_i32_0 : i32, i32, i32
  }
  func.func @transform_1(%arg0: i32) -> (i32, i32, i32) {
    %c0_i32 = arith.constant 0 : i32
    %c0_i32_0 = arith.constant 0 : i32
    %c0_i32_1 = arith.constant 0 : i32
    %c0_i32_2 = arith.constant 0 : i32
    return %c0_i32, %c0_i32_0, %c0_i32_1 : i32, i32, i32
  }
  func.func @transform_2(%arg0: i32) -> (i32, i32) {
    %c0_i32 = arith.constant 0 : i32
    %c0_i32_0 = arith.constant 0 : i32
    %c0_i32_1 = arith.constant 0 : i32
    return %c0_i32, %c0_i32_0 : i32, i32
  }
  func.func @transform_3(%arg0: i32) -> (i32, i32) {
    %c0_i32 = arith.constant 0 : i32
    %c0_i32_0 = arith.constant 0 : i32
    %c0_i32_1 = arith.constant 0 : i32
    return %c0_i32, %c0_i32_0 : i32, i32
  }
  func.func @transform_4(%arg0: i32) -> (i32, i32) {
    %c0_i32 = arith.constant 0 : i32
    %c0_i32_0 = arith.constant 0 : i32
    %c0_i32_1 = arith.constant 0 : i32
    return %c0_i32, %c0_i32_0 : i32, i32
  }
  func.func @transform_5(%arg0: i32) -> (i32, i32, i32) {
    %c0_i32 = arith.constant 0 : i32
    %c0_i32_0 = arith.constant 0 : i32
    %c0_i32_1 = arith.constant 0 : i32
    %c0_i32_2 = arith.constant 0 : i32
    return %c0_i32, %c0_i32_0, %c0_i32_1 : i32, i32, i32
  }
  func.func @transform_6(%arg0: i32) -> (i32, i32) {
    %c0_i32 = arith.constant 0 : i32
    %c0_i32_0 = arith.constant 0 : i32
    %c0_i32_1 = arith.constant 0 : i32
    return %c0_i32, %c0_i32_0 : i32, i32
  }
  func.func @transform_7(%arg0: i32) -> (i32, i32) {
    %c0_i32 = arith.constant 0 : i32
    %c0_i32_0 = arith.constant 0 : i32
    %c0_i32_1 = arith.constant 0 : i32
    return %c0_i32, %c0_i32_0 : i32, i32
  }
  func.func @transform_8(%arg0: i32) -> (i32, i32) {
    %c0_i32 = arith.constant 0 : i32
    %c0_i32_0 = arith.constant 0 : i32
    %c0_i32_1 = arith.constant 0 : i32
    return %c0_i32, %c0_i32_0 : i32, i32
  }
  func.func @transform_9(%arg0: i32) -> (i32, i32) {
    %c0_i32 = arith.constant 0 : i32
    %c0_i32_0 = arith.constant 0 : i32
    %c0_i32_1 = arith.constant 0 : i32
    return %c0_i32, %c0_i32_0 : i32, i32
  }
  func.func @transform_10(%arg0: i32) -> (i32, i32) {
    %c0_i32 = arith.constant 0 : i32
    %c0_i32_0 = arith.constant 0 : i32
    %c0_i32_1 = arith.constant 0 : i32
    return %c0_i32, %c0_i32_0 : i32, i32
  }
  func.func @transform_11(%arg0: i32) -> (i32, i32) {
    %c0_i32 = arith.constant 0 : i32
    %c0_i32_0 = arith.constant 0 : i32
    %c0_i32_1 = arith.constant 0 : i32
    return %c0_i32, %c0_i32_0 : i32, i32
  }
  func.func @transform_12(%arg0: i32) -> (i32, i32) {
    %c0_i32 = arith.constant 0 : i32
    %c0_i32_0 = arith.constant 0 : i32
    %c0_i32_1 = arith.constant 0 : i32
    return %c0_i32, %c0_i32_0 : i32, i32
  }
  func.func @transform_13(%arg0: i32) -> (i32, i32) {
    %c0_i32 = arith.constant 0 : i32
    %c0_i32_0 = arith.constant 0 : i32
    %c0_i32_1 = arith.constant 0 : i32
    return %c0_i32, %c0_i32_0 : i32, i32
  }
  func.func @transform_14(%arg0: i32) -> (i32, i32) {
    %c0_i32 = arith.constant 0 : i32
    %c0_i32_0 = arith.constant 0 : i32
    %c0_i32_1 = arith.constant 0 : i32
    return %c0_i32, %c0_i32_0 : i32, i32
  }
  func.func @transform_15(%arg0: i32) -> (i32, i32, i32) {
    %c0_i32 = arith.constant 0 : i32
    %c0_i32_0 = arith.constant 0 : i32
    %c0_i32_1 = arith.constant 0 : i32
    return %arg0, %c0_i32, %c0_i32_0 : i32, i32, i32
  }
}

</mosaic_0001>

<bundles_post_ra>
// kernel: horizon_forward.1
= control target key start
LH: loop header
LB: loop body
LE: loop exit
PB: predicated region body
PF: predicated region fallthrough
CT: control target
= control target key end

     0   :  { %20 = vsyncpa [#allocation3], 0  ;;  %s14492_s0 = inlined_call_operand.vmem [shape: f32[2,64,192], index: 0, kind: input, shape index: {}]   ;;  %s14493_s1 = inlined_call_operand.vmem [shape: bf16[5,192,360], index: 1, kind: input, shape index: {}]   ;;  %s14494_s2 = inlined_call_operand.vmem [shape: f32[1,360], index: 2, kind: input, shape index: {}]   ;;  %s14495_s3 = inlined_call_operand.vmem [shape: f32[30,59], index: 3, kind: input, shape index: {}]   ;;  %s14496_s4 = inlined_call_operand.vmem [shape: f32[354,180], index: 4, kind: input, shape index: {}]   ;;  %s14497_s5 = inlined_call_operand.vmem [shape: bf16[5,180,416], index: 5, kind: input, shape index: {}]   ;;  %s14498_s6 = inlined_call_operand.vmem [shape: f32[1,416], index: 6, kind: input, shape index: {}]   ;;  %s14499_s7 = inlined_call_operand.vmem [shape: f32[13,25], index: 7, kind: input, shape index: {}]   ;;  %s14500_s8 = inlined_call_operand.vmem [shape: f32[400,208], index: 8, kind: input, shape index: {}]   ;;  %s14501_s9 = inlined_call_operand.vmem [shape: bf16[2704,120], index: 9, kind: input, shape index: {}]   ;;  %s14502_s10 = inlined_call_operand.vmem [shape: f32[1,120], index: 10, kind: input, shape index: {}]   ;;  %s14503_s11 = inlined_call_operand.vmem [shape: bf16[120,84], index: 11, kind: input, shape index: {}]   ;;  %s14504_s12 = inlined_call_operand.vmem [shape: f32[1,84], index: 12, kind: input, shape index: {}]   ;;  %s14505_s13 = inlined_call_operand.vmem [shape: bf16[84,2], index: 13, kind: input, shape index: {}]   ;;  %s14506_s14 = inlined_call_operand.vmem [shape: f32[1,2], index: 14, kind: input, shape index: {}]   ;;  %s14507_s15 = inlined_call_operand.hbm [shape: f32[2,1,2], index: 15, kind: output, shape index: {}]  }
   0x1   :  { %22 = vsyncpa [#allocation3 + $0x1], 0  ;;  %s10979_s18 = smov 0   ;;  %s10981_s19 = smov 0  }
   0x2   :  { %s10983_s20 = smov 0   ;;  %s10985_s21 = smov 0  }
   0x3 LB: > { %14513 = sst [smem:[#allocation5_spill]] %s10878_s18  ;;  %s11000_s22 = sadd.s32 4294967295, %s10890_s21   ;;  %s10890_s21 = sphi %s10985_s21, %s14524_s21   ;;  %s10886_s20 = sphi %s10983_s20, %s14526_s20   ;;  %s10882_s19 = sphi %s10981_s19, %s14528_s19   ;;  %s10878_s18 = sphi %s10979_s18, %s14527_s18  }
   0x4   : > { %14514 = sst [smem:[#allocation6_spill]] %s10886_s20  ;;  %s8409_s23 = sadd.s32 4294967294, %s10890_s21  }
   0x5   : > { %s11004_s24 = sadd.s32 1, %s10890_s21   ;;  %s355_s25 = sadd.s32 1, %s10886_s20 }
   0x6   : > { %14515 = sst [smem:[#allocation7_spill]] %s11004_s24  ;;  %s352_s26 = ssub.s32 %s10890_s21, %s11004_s24 }
   0x7   : > { %p365_p0 = scmp.ne.s32.totalorder %s10886_s20, %s10882_s19  ;;  %p353_p1 = scmp.eq.s32.totalorder %s352_s26, 0 }
   0x8   : > { %p366_p2 = scmp.eq.s32.totalorder %s11000_s22, 1  ;;  %p371_p3 = scmp.ne.s32.totalorder %s10882_s19, %s10878_s18 }
   0x9   : > { %p372_p4 = scmp.eq.s32.totalorder %s8409_s23, 1  ;;  %p8412_p7 = scmp.ge.s32.totalorder %s10890_s21, 1 }
   0xa   : > { %s11015_s27 = scalar_select %p353_p1, %s10886_s20, %s355_s25  }
   0xb   : > { %p11017_p5 = por %p366_p2, %p365_p0  ;;  %p11021_p6 = por %p372_p4, %p371_p3 }
   0xc   : > { %14516 = sst [smem:[#allocation8_spill]] %s11015_s27  ;;  %p440_p8 = scmp.lt.s32.totalorder %s10890_s21, 3 }
   0xd   : > { %s14518_s29 = scalar_select %p11021_p6, 1, 0 }
   0xe   : > { %p441_p9 = pnand %p8412_p7, %p440_p8 }
   0xf   : > { %14519 = sst [smem:[#allocation9_spill]] %s14518_s29  ;;  %v10055_v0 = vld [vmem:[%s14493_s1 + $0x124] ss:$12 sps:$4 sm:$0xff] (!%p441_p9)   ;;  %v10892_v1 = vmov (!%p441_p9), 0   ;;  %v10057_v2 = vld [vmem:[%s14493_s1 + $0x128] ss:$12 sps:$4 sm:$0xff] (!%p441_p9)  }
  0x10   : > { %444 = sbr.rel (%p441_p9) target bundleno = 3462 (0xd86), region = 80  ;;  %959 = vmatprep.subr.bf16.mxu1 (!%p441_p9), %v10892_v1  ;;  %886 = vmatprep.subr.bf16.mxu0 (!%p441_p9), %v10055_v0  ;;  %v10058_v3 = vld [vmem:[%s14493_s1 + $0x120] ss:$12 sps:$4 sm:$0xff] (!%p441_p9)   ;;  %v10059_v4 = vld [vmem:[%s14493_s1 + $0x13c] ss:$12 sps:$4 sm:$0xff] (!%p441_p9)   ;;  %p487_p10 = scmp.lt.s32.totalorder (!%p441_p9), %s11000_s22, 1 }
  0x11   : > { %960 = vmatpush1.bf16.msra.mxu1 (!%p441_p9), %v10057_v2  ;;  %887 = vmatpush1.bf16.msra.mxu0 (!%p441_p9), %v10058_v3  ;;  %v10061_v5 = vld [vmem:[%s14493_s1 + $0x140] ss:$12 sps:$4 sm:$0xff] (!%p441_p9)   ;;  %v10062_v6 = vld [vmem:[%s14493_s1 + $0x138] ss:$12 sps:$4 sm:$0xff] (!%p441_p9)   ;;  %v10066_v9 = vld [vmem:[%s14493_s1 + $0x150] ss:$12 sps:$4 sm:$0xff] (!%p441_p9)  }
  0x12   : > { %961 = vmatprep.subr.bf16.mxu1 (!%p441_p9), %v10892_v1  ;;  %888 = vmatprep.subr.bf16.mxu0 (!%p441_p9), %v10059_v4  ;;  %v10063_v7 = vld [vmem:[%s14493_s1 + $0x154] ss:$12 sps:$4 sm:$0xff] (!%p441_p9)   ;;  %v10065_v8 = vld [vmem:[%s14493_s1 + $0x158] ss:$12 sps:$4 sm:$0xff] (!%p441_p9)   ;;  %v10069_v11 = vld [vmem:[%s14493_s1 + $0x170] ss:$12 sps:$4 sm:$0xff] (!%p441_p9)  }
  0x13   : > { %v10067_v10 = vld [vmem:[%s14493_s1 + $0x16c] ss:$12 sps:$4 sm:$0xff] (!%p441_p9)   ;;  %v10070_v12 = vld [vmem:[%s14493_s1 + $0x168] ss:$12 sps:$4 sm:$0xff] (!%p441_p9)   ;;  %v10071_v13 = vld [vmem:[%s14493_s1 + $0x184] ss:$12 sps:$4 sm:$0xff] (!%p441_p9)  }
  0x14   : > { %v10073_v14 = vld [vmem:[%s14493_s1 + $0x188] ss:$12 sps:$4 sm:$0xff] (!%p441_p9)   ;;  %v10074_v15 = vld [vmem:[%s14493_s1 + $0x180] ss:$12 sps:$4 sm:$0xff] (!%p441_p9)   ;;  %v10078_v18 = vld [vmem:[%s14493_s1 + $0x198] ss:$12 sps:$4 sm:$0xff] (!%p441_p9)  }
  0x15   : > { %962 = vmatpush1.bf16.msra.mxu1 (!%p441_p9), %v10061_v5  ;;  %889 = vmatpush1.bf16.msra.mxu0 (!%p441_p9), %v10062_v6  ;;  %v10075_v16 = vld [vmem:[%s14493_s1 + $0x19c] ss:$12 sps:$4 sm:$0xff] (!%p441_p9)   ;;  %v10077_v17 = vld [vmem:[%s14493_s1 + $0x1a0] ss:$12 sps:$4 sm:$0xff] (!%p441_p9)   ;;  %v10081_v20 = vld [vmem:[%s14493_s1 + $0x1b8] ss:$12 sps:$4 sm:$0xff] (!%p441_p9)  }
  0x16   : > { %963 = vmatprep.subr.bf16.mxu1 (!%p441_p9), %v10892_v1  ;;  %890 = vmatprep.subr.bf16.mxu0 (!%p441_p9), %v10063_v7  ;;  %v10079_v19 = vld [vmem:[%s14493_s1 + $0x1b4] ss:$12 sps:$4 sm:$0xff] (!%p441_p9)   ;;  %v10082_v21 = vld [vmem:[%s14493_s1 + $0x1b0] ss:$12 sps:$4 sm:$0xff] (!%p441_p9)   ;;  %v10083_v22 = vld [vmem:[%s14493_s1 + $0x1cc] ss:$12 sps:$4 sm:$0xff] (!%p441_p9)  }
  0x17   : > { %s488_s20 = scalar_select %p487_p10, %s11000_s22, 1  ;;  %v10085_v23 = vld [vmem:[%s14493_s1 + $0x1d0] ss:$12 sps:$4 sm:$0xff]   ;;  %v10086_v24 = vld [vmem:[%s14493_s1 + $0x1c8] ss:$12 sps:$4 sm:$0xff]   ;;  %vm873_vm1 = vcmask 523264  }
  0x18   : > { %v10087_v25 = vld [vmem:[%s14493_s1 + $0x1e4] ss:$12 sps:$4 sm:$0xff]   ;;  %v10089_v34 = vld [vmem:[%s14493_s1 + $0x1e8] ss:$12 sps:$4 sm:$0xff]   ;;  %v10090_v38 = vld [vmem:[%s14493_s1 + $0x1e0] ss:$12 sps:$4 sm:$0xff]  }
  0x19   : > { %964 = vmatpush1.bf16.msra.mxu1 %v10065_v8  ;;  %891 = vmatpush1.bf16.msra.mxu0 %v10066_v9  ;;  %s9509_s23 = sshll.u32 %s488_s20, 7  ;;  %v10091_v42 = vld [vmem:[%s14493_s1 + $0x1fc] ss:$12 sps:$4 sm:$0xff]   ;;  %vm614_vm0 = vsmask.f32 7424  ;;  %vm1419_vm3 = vcmask 1046528  }
  0x1a   : > { %965 = vmatprep.subr.bf16.mxu1 %v10892_v1  ;;  %892 = vmatprep.subr.bf16.mxu0 %v10067_v10  ;;  %s11105_s20 = scalar_lea.vmem %s14492_s0, %s9509_s23  ;;  %v10093_v45 = vld [vmem:[%s14493_s1 + $0x200] ss:$12 sps:$4 sm:$0xff]   ;;  %v10094_v49 = vld [vmem:[%s14493_s1 + $0x1f8] ss:$12 sps:$4 sm:$0xff]   ;;  %v10098_v56 = vld [vmem:[%s14493_s1 + $0x210] ss:$12 sps:$4 sm:$0xff]  }
  0x1b   : > { %v494_v26 = vld [vmem:[%s11105_s20 + $0x8] sm:$0xff]  ;;  %v496_v27 = vld [vmem:[%s11105_s20 + $0x18] sm:$0xff]  ;;  %v493_v31 = vld [vmem:[%s11105_s20] sm:$0xff]  ;;  %vm1853_vm2 = vsmask.f32 6400  ;;  %vm2303_vm4 = vcmask 1045504  }
  0x1c   : > { %v498_v28 = vld [vmem:[%s11105_s20 + $0x28] sm:$0xff]  ;;  %v500_v29 = vld [vmem:[%s11105_s20 + $0x38] sm:$0xff]  ;;  %v11121_v30 = vpack.c.bf16 %v496_v27, %v494_v26  ;;  %v495_v32 = vld [vmem:[%s11105_s20 + $0x10] sm:$0xff]  ;;  %vm2875_vm5 = vcmask 482304   ;;  %vm2888_vm6 = vcmask 1042432   ;;  %vm10894_vm7 = vmmov 1  }
  0x1d   : > { %966 = vmatpush1.bf16.msra.mxu1 %v10069_v11  ;;  %893 = vmatpush1.bf16.msra.mxu0 %v10070_v12  ;;  %v11125_v33 = vpack.c.bf16 %v500_v29, %v498_v28  ;;  %v11132_v37 = vpack.c.bf16 %v495_v32, %v493_v31  ;;  %v497_v40 = vld [vmem:[%s11105_s20 + $0x20] sm:$0xff]  ;;  %v499_v41 = vld [vmem:[%s11105_s20 + $0x30] sm:$0xff]  ;;  %v10099_v57 = vld [vmem:[%s14493_s1 + $0x22c] ss:$12 sps:$4 sm:$0xff]   ;;  %s10895_s17 = smov 122   ;;  %vm3108_vm9 = vcmask 998400  }
  0x1e   : > { %967 = vmatprep.subr.bf16.mxu1 %v10892_v1  ;;  %894 = vmatprep.subr.bf16.mxu0 %v10071_v13  ;;  %v628_v35 = vshrl.u32 %v11121_v30, 16  ;;  %v630_v36 = vshll.u32 %v11121_v30, 16  ;;  %v11153_v47 = vpack.c.bf16 %v499_v41, %v497_v40  ;;  %v10095_v50 = vld [vmem:[%s14493_s1 + $0x214] ss:$12 sps:$4 sm:$0xff]   ;;  %v10097_v52 = vld [vmem:[%s14493_s1 + $0x218] ss:$12 sps:$4 sm:$0xff]   ;;  %vm9609_vm8 = vmpackc.low %vm2888_vm6, %vm10894_vm7 }
  0x1f   : > { %v635_v39 = vshll.u32 %v11125_v33, 16  ;;  %v618_v48 = vshll.u32 %v11132_v37, 16  ;;  %v616_v53 = vshrl.u32 %v11132_v37, 16  ;;  %v10101_v58 = vld [vmem:[%s14493_s1 + $0x230] ss:$12 sps:$4 sm:$0xff]   ;;  %v647_v63 = vshrl.u32 %v11125_v33, 16 }
  0x20   : > { %v632_v43 = vrot.slane %v630_v36, 1  ;;  %v623_v55 = vshll.u32 %v11153_v47, 16  ;;  %v10102_v61 = vld [vmem:[%s14493_s1 + $0x228] ss:$12 sps:$4 sm:$0xff]   ;;  %v10105_v62 = vld [vmem:[%s14493_s1 + $0x4] ss:$12 sps:$4 sm:$0xff]  }
  0x21   : > { %968 = vmatpush1.bf16.msra.mxu1 %v10073_v14  ;;  %895 = vmatpush1.bf16.msra.mxu0 %v10074_v15  ;;  %v637_v44 = vrot.slane %v635_v39, 1  ;;  %v620_v54 = vrot.slane %v618_v48, 1  ;;  %v10106_v0 = vld [vmem:[%s14493_s1 + $0x8] ss:$12 sps:$4 sm:$0xff]   ;;  %v504_v4 = vld [vmem:[%s11105_s20 + $0x58] sm:$0xff]  ;;  %v501_v5 = vld [vmem:[%s11105_s20 + $0x40] sm:$0xff] }
  0x22   : > { %969 = vmatprep.subr.bf16.mxu1 %v10892_v1  ;;  %896 = vmatprep.subr.bf16.mxu0 %v10075_v16  ;;  %v633_v46 = vor.u32 %v632_v43, %v628_v35  ;;  %v625_v60 = vrot.slane %v623_v55, 1  ;;  %v502_v2 = vld [vmem:[%s11105_s20 + $0x48] sm:$0xff]  ;;  %v503_v6 = vld [vmem:[%s11105_s20 + $0x50] sm:$0xff]  ;;  %v639_v7 = vshrl.u32 %v11153_v47, 16  ;;  %v10107_v15 = vld [vmem:[%s14493_s1 + $0x18] ss:$12 sps:$4 sm:$0xff]  }
  0x23   : > { %v621_v59 = vor.u32 %v620_v54, %v616_v53  ;;  %v10103_v8 = vld [vmem:[%s14493_s1] ss:$12 sps:$4 sm:$0xff]   ;;  %v11208_v9 = vpack.c.bf16 %v504_v4, %v502_v2  ;;  %v11210_v10 = vpack.c.bf16 %v503_v6, %v501_v5  ;;  %v10109_v11 = vld [vmem:[%s14493_s1 + $0x1c] ss:$12 sps:$4 sm:$0xff]   ;;  %v649_v12 = vor.u32 %v647_v63, %v637_v44  ;;  %v507_v27 = vld [vmem:[%s11105_s20 + $0x70] sm:$0xff]  ;;  %s10896_s23 = smov 112  }
  0x24   : > { %v638_v51 = vsel %vm614_vm0, %v633_v46, %v637_v44  ;;  %v10110_v16 = vld [vmem:[%s14493_s1 + $0x20] ss:$12 sps:$4 sm:$0xff]   ;;  %v10114_v28 = vld [vmem:[%s14493_s1 + $0x38] ss:$12 sps:$4 sm:$0xff]   ;;  %v1858_v43 = vrot.slane %v623_v55, 2  ;;  %v1857_v46 = vrot.slane %v639_v7, 1 }
  0x25   : > { %970 = vmatpush1.bf16.msra.mxu1 %v10077_v17  ;;  %897 = vmatpush1.bf16.msra.mxu0 %v10078_v18  ;;  %v626_v3 = vsel %vm614_vm0, %v621_v59, %v625_v60  ;;  %v651_v13 = vshll.u32 %v11208_v9, 16  ;;  %v643_v14 = vshll.u32 %v11210_v10, 16  ;;  %v641_v17 = vor.u32 %v639_v7, %v625_v60  ;;  %v10113_v18 = vld [vmem:[%s14493_s1 + $0x34] ss:$12 sps:$4 sm:$0xff]   ;;  %v10117_v41 = vld [vmem:[%s14493_s1 + $0x4c] ss:$12 sps:$4 sm:$0xff]  }
  0x26   : > { %971 = vmatprep.subr.bf16.mxu1 %v10892_v1  ;;  %898 = vmatprep.subr.bf16.mxu0 %v10079_v19  ;;  %v655_v32 = vshrl.u32 %v11210_v10, 16  ;;  %v10121_v54 = vld [vmem:[%s14493_s1 + $0x64] ss:$12 sps:$4 sm:$0xff]   ;;  %v1859_v59 = vor.u32 %v1858_v43, %v1857_v46  ;;  %v10119_v60 = vld [vmem:[%s14493_s1 + $0x60] ss:$12 sps:$4 sm:$0xff]   ;;  %v1854_v4 = vrot.slane %v616_v53, 1 }
  0x27   : > { %8503 = vmatprep.mubr.msk.bf16.mxu1 %vm873_vm1, %v638_v51  ;;  %8499 = vmatprep.mubr.msk.bf16.mxu0 %vm873_vm1, %v638_v51  ;;  %v653_v19 = vrot.slane %v651_v13, 1  ;;  %v10115_v51 = vld [vmem:[%s14493_s1 + $0x48] ss:$12 sps:$4 sm:$0xff]   ;;  %v1864_v5 = vrot.slane %v647_v63, 1  ;;  %v1855_v6 = vrot.slane %v618_v48, 2  ;;  %vm3244_vm10 = vcmask 1041408  }
  0x28   : > { %v10129_v53 = vld [vmem:[%s14493_s1 + $0x94] ss:$12 sps:$4 sm:$0xff]   ;;  %v10130_v63 = vld [vmem:[%s14493_s1 + $0x98] ss:$12 sps:$4 sm:$0xff]   ;;  %v10127_v48 = vld [vmem:[%s14493_s1 + $0x90] ss:$12 sps:$4 sm:$0xff]  }
  0x29   : > { %972 = vmatpush1.bf16.msra.mxu1 %v10081_v20  ;;  %899 = vmatpush1.bf16.msra.mxu0 %v10082_v21  ;;  %v645_v20 = vrot.slane %v643_v14, 1  ;;  %v506_v21 = vld [vmem:[%s11105_s20 + $0x68] sm:$0xff]  ;;  %v10139_v46 = vld [vmem:[%s14493_s1 + $0xd8] ss:$12 sps:$4 sm:$0xff]   ;;  %vm3231_vm11 = vcmask 801792   ;;  %vm3788_vm12 = vcmask 424960  }
  0x2a   : > { %973 = vmatprep.subr.bf16.mxu1 %v10892_v1  ;;  %900 = vmatprep.subr.bf16.mxu0 %v10083_v22  ;;  %v508_v22 = vld [vmem:[%s11105_s20 + $0x78] sm:$0xff]  ;;  %vm5691_vm13 = vcmask 1040384   ;;  %vm5684_vm15 = vcmask 203776   ;;  %vm8292_vm6 = vcmask 687104   ;;  %s485_s24 = sand.u32 1, %s10882_s19   ;;  %s9506_s29 = sshll.u32 %s11000_s22, 4 }
  0x2b   : > { %v11238_v26 = vpack.c.bf16 %v508_v22, %v506_v21  ;;  %v646_v29 = vsel %vm614_vm0, %v641_v17, %v645_v20  ;;  %v10133_v17 = vld [vmem:[%s14493_s1 + $0xac] ss:$12 sps:$4 sm:$0xff]   ;;  %v10134_v21 = vld [vmem:[%s14493_s1 + $0xb0] ss:$12 sps:$4 sm:$0xff]   ;;  %vm13241_vm14 = vmpackc.low %vm5691_vm13, %vm10894_vm7  ;;  %s486_s25 = scalar_lea.vmem [#allocation2], %s485_s24  ;;  %vm8339_vm7 = vcmask 8192  }
  0x2c   : > { %s8354_s27 = sshll.u32 %s486_s25, 4  ;;  %s8342_s22 = scalar_lea.sflag [#allocation3], %s485_s24  ;;  %s14452_s27 = int_to_ptr.vmem [resolvable:$true] %s8354_s27 }
  0x2d   : > { %974 = vmatpush1.bf16.msra.mxu1 %v10085_v23  ;;  %901 = vmatpush1.bf16.msra.mxu0 %v10086_v24  ;;  %v663_v23 = vshrl.u32 %v11208_v9, 16  ;;  %v505_v24 = vld [vmem:[%s11105_s20 + $0x60] sm:$0xff]  ;;  %v667_v40 = vshll.u32 %v11238_v26, 16  ;;  %v674_v55 = vshrl.u32 %v11238_v26, 16  ;;  %s10828_s20 = scalar_lea.vmem %s14452_s27, 16  ;;  %s10898_s18 = smov [#allocation2]  }
  0x2e   : > { %975 = vmatprep.subr.bf16.mxu1 %v10892_v1  ;;  %902 = vmatprep.subr.bf16.mxu0 %v10087_v25  ;;  %v654_v25 = vsel %vm614_vm0, %v649_v12, %v653_v19  ;;  %v11246_v31 = vpack.c.bf16 %v507_v27, %v505_v24  ;;  %v10131_v24 = vld [vmem:[%s14493_s1 + $0xa8] ss:$12 sps:$4 sm:$0xff]   ;;  %v10137_v27 = vld [vmem:[%s14493_s1 + $0xc4] ss:$12 sps:$4 sm:$0xff]   ;;  %p10829_p11 = scmp.ne.s32.totalorder %s14452_s27, %s10828_s20  ;;  %s10832_s16 = sshll.u32 %s10898_s18, 4  ;;  %s10833_s16 = int_to_ptr.vmem [resolvable:$false] %s10832_s16 }
  0x2f   : > { %v669_v44 = vrot.slane %v667_v40, 1  ;;  %v1872_v12 = vrot.slane %v663_v23, 1  ;;  %p10835_p0 = scmp.lt.s32.totalorder %s14452_s27, %s10833_s16 }
  0x30   : > { %v671_v2 = vshrl.u32 %v11246_v31, 16  ;;  %p10830_p12 = pnand %p10829_p11, %p11017_p5 }
  0x31   : > { %976 = vmatpush1.bf16.msra.mxu1 %v10089_v34  ;;  %903 = vmatpush1.bf16.msra.mxu0 %v10090_v38  ;;  %v10111_v34 = vld [vmem:[%s14493_s1 + $0x30] ss:$12 sps:$4 sm:$0xff]   ;;  %v665_v38 = vor.u32 %v663_v23, %v653_v19 }
  0x32   : > { %977 = vmatprep.subr.bf16.mxu1 %v10892_v1  ;;  %904 = vmatprep.subr.bf16.mxu0 %v10091_v42  ;;  %v659_v42 = vshll.u32 %v11246_v31, 16  ;;  %p10831_p13 = pneg %p10830_p12 }
  0x35   : > { %978 = vmatpush1.bf16.msra.mxu1 %v10093_v45  ;;  %905 = vmatpush1.bf16.msra.mxu0 %v10094_v49  ;;  %v10118_v45 = vld [vmem:[%s14493_s1 + $0x50] ss:$12 sps:$4 sm:$0xff]   ;;  %v657_v49 = vor.u32 %v655_v32, %v645_v20  ;;  %v1869_v20 = vrot.slane %v643_v14, 2  ;;  %v1880_v14 = vrot.slane %v674_v55, 1 }
  0x36   : > { %979 = vmatprep.subr.bf16.mxu1 %v10892_v1  ;;  %906 = vmatprep.subr.bf16.mxu0 %v10095_v50  ;;  %v661_v50 = vrot.slane %v659_v42, 1 }
  0x38   : > { %v673_v7 = vor.u32 %v671_v2, %v661_v50 }
  0x39   : > { %980 = vmatpush1.bf16.msra.mxu1 %v10097_v52  ;;  %907 = vmatpush1.bf16.msra.mxu0 %v10098_v56  ;;  %v670_v52 = vsel %vm614_vm0, %v665_v38, %v669_v44  ;;  %v1861_v56 = vrot.slane %v628_v35, 1  ;;  %v1862_v35 = vrot.slane %v630_v36, 2  ;;  %v10126_v36 = vld [vmem:[%s14493_s1 + $0x80] ss:$12 sps:$4 sm:$0xff]  }
  0x3a   : > { %981 = vmatprep.subr.bf16.mxu1 %v10892_v1  ;;  %908 = vmatprep.subr.bf16.mxu0 %v10099_v57  ;;  %v10122_v57 = vld [vmem:[%s14493_s1 + $0x68] ss:$12 sps:$4 sm:$0xff]   ;;  %v10135_v38 = vld [vmem:[%s14493_s1 + $0xc0] ss:$12 sps:$4 sm:$0xff]  }
  0x3d   : > { %982 = vmatpush1.bf16.msra.mxu1 %v10101_v58  ;;  %909 = vmatpush1.bf16.msra.mxu0 %v10102_v61  ;;  %v662_v58 = vsel %vm614_vm0, %v657_v49, %v661_v50  ;;  %v10125_v61 = vld [vmem:[%s14493_s1 + $0x7c] ss:$12 sps:$4 sm:$0xff]   ;;  %v10145_v49 = vld [vmem:[%s14493_s1 + $0xf4] ss:$12 sps:$4 sm:$0xff]   ;;  %v10146_v50 = vld [vmem:[%s14493_s1 + $0xf8] ss:$12 sps:$4 sm:$0xff]  }
  0x3e   : > { %1297 = vmatprep.subr.bf16.mxu1 %v10892_v1  ;;  %1224 = vmatprep.subr.bf16.mxu0 %v10105_v62  ;;  %v676_v62 = vor.u32 %v674_v55, %v669_v44  ;;  %v10147_v55 = vld [vmem:[%s14493_s1 + $0x108] ss:$12 sps:$4 sm:$0xff]  }
  0x40   : > { %992 = vmatmul.mubr.bf16.vlgmr.msra.gmra.mrb[0].mxu1 %v626_v3  ;;  %919 = vmatmul.mubr.bf16.vlgmr.msra.gmra.mrb[0].mxu0 %v626_v3  ;;  %v1863_v3 = vor.u32 %v1862_v35, %v1861_v56  ;;  %v10153_v56 = vld [vmem:[%s14493_s1 + $0x244] ss:$12 sps:$4 sm:$0xff]  }
  0x41   : > { %1298 = vmatpush1.bf16.msra.mxu1 %v10106_v0  ;;  %1225 = vmatpush1.bf16.msra.mxu0 %v10103_v8  ;;  %v1865_v0 = vrot.slane %v635_v39, 2  ;;  %v10123_v39 = vld [vmem:[%s14493_s1 + $0x78] ss:$12 sps:$4 sm:$0xff]  }
  0x42   : > { %1299 = vmatprep.subr.bf16.mxu1 %v10892_v1  ;;  %1226 = vmatprep.subr.bf16.mxu0 %v10109_v11  ;;  %v1856_v11 = vor.u32 %v1855_v6, %v1854_v4  ;;  %v10155_v35 = vld [vmem:[%s14493_s1 + $0x258] ss:$12 sps:$4 sm:$0xff]   ;;  %v10163_v4 = vld [vmem:[%s14493_s1 + $0x288] ss:$12 sps:$4 sm:$0xff]   ;;  %v10174_v6 = vld [vmem:[%s14493_s1 + $0x2c0] ss:$12 sps:$4 sm:$0xff]  }
  0x43   : > { %8504 = vmatprep.mubr.msk.bf16.mxu1 %vm873_vm1, %v654_v25  ;;  %8500 = vmatprep.mubr.msk.bf16.mxu0 %vm873_vm1, %v654_v25  ;;  %v1866_v8 = vor.u32 %v1865_v0, %v1864_v5  ;;  %v1876_v25 = vrot.slane %v671_v2, 1  ;;  %v10159_v0 = vld [vmem:[%s14493_s1 + $0x270] ss:$12 sps:$4 sm:$0xff]   ;;  %v10165_v2 = vld [vmem:[%s14493_s1 + $0x28c] ss:$12 sps:$4 sm:$0xff]  }
  0x44   : > { %v10167_v5 = vld [vmem:[%s14493_s1 + $0x2a0] ss:$12 sps:$4 sm:$0xff]  }
  0x45   : > { %1300 = vmatpush1.bf16.msra.mxu1 %v10110_v16  ;;  %1227 = vmatpush1.bf16.msra.mxu0 %v10107_v15  ;;  %v1873_v15 = vrot.slane %v651_v13, 2  ;;  %v11331_v16 = vsel %vm1853_vm2, %v1863_v3, %v1866_v8  ;;  %v1868_v13 = vrot.slane %v655_v32, 1  ;;  %v1877_v32 = vrot.slane %v659_v42, 2  ;;  %v10166_v3 = vld [vmem:[%s14493_s1 + $0x290] ss:$12 sps:$4 sm:$0xff]  }
  0x46   : > { %1301 = vmatprep.subr.bf16.mxu1 %v10892_v1  ;;  %1228 = vmatprep.subr.bf16.mxu0 %v10113_v18  ;;  %v11337_v18 = vsel %vm1853_vm2, %v1856_v11, %v1859_v59  ;;  %v10177_v11 = vld [vmem:[%s14493_s1 + $0x2d4] ss:$12 sps:$4 sm:$0xff]  }
  0x47   : > { %v1874_v19 = vor.u32 %v1873_v15, %v1872_v12  ;;  %v1870_v23 = vor.u32 %v1869_v20, %v1868_v13  ;;  %v11376_v43 = vor.u32 %v1877_v32, %v1876_v25  ;;  %v10178_v12 = vld [vmem:[%s14493_s1 + $0x2d8] ss:$12 sps:$4 sm:$0xff]   ;;  %v10175_v15 = vld [vmem:[%s14493_s1 + $0x2d0] ss:$12 sps:$4 sm:$0xff]   ;;  %v10179_v13 = vld [vmem:[%s14493_s1 + $0x2e8] ss:$12 sps:$4 sm:$0xff]  }
  0x48   : > { %1000 = vmatmul.mubr.bf16.gmra.mrb[4].mxu1 %v646_v29  ;;  %929 = vmatmul.mubr.bf16.gmra.mrb[4].mxu0 %v646_v29  ;;  %v1881_v29 = vrot.slane %v667_v40, 2  ;;  %v10141_v40 = vld [vmem:[%s14493_s1 + $0xdc] ss:$12 sps:$4 sm:$0xff]   ;;  %v10185_v20 = vld [vmem:[%s14493_s1 + $0x304] ss:$12 sps:$4 sm:$0xff]  }
  0x49   : > { %1302 = vmatpush1.bf16.msra.mxu1 %v10114_v28  ;;  %1229 = vmatpush1.bf16.msra.mxu0 %v10111_v34  ;;  %v11347_v22 = vsel %vm1853_vm2, %v1866_v8, %v1874_v19  ;;  %v11359_v28 = vsel %vm1853_vm2, %v1859_v59, %v1870_v23  ;;  %v10138_v34 = vld [vmem:[%s14493_s1 + $0xc8] ss:$12 sps:$4 sm:$0xff]   ;;  %v11387_v44 = vsel %vm1853_vm2, %v1870_v23, %v11376_v43  ;;  %v1423_v8 = vrot.slane %v11121_v30, 1  ;;  %v10183_v23 = vld [vmem:[%s14493_s1 + $0x300] ss:$12 sps:$4 sm:$0xff]  }
  0x4a   : > { %1303 = vmatprep.subr.bf16.mxu1 %v10892_v1  ;;  %1230 = vmatprep.subr.bf16.mxu0 %v10117_v41  ;;  %v11374_v41 = vor.u32 %v1881_v29, %v1880_v14  ;;  %v10157_v59 = vld [vmem:[%s14493_s1 + $0x25c] ss:$12 sps:$4 sm:$0xff]   ;;  %v10190_v25 = vld [vmem:[%s14493_s1 + $0x320] ss:$12 sps:$4 sm:$0xff]   ;;  %v10187_v14 = vld [vmem:[%s14493_s1 + $0x318] ss:$12 sps:$4 sm:$0xff]  }
  0x4b   : > { %8505 = vmatprep.mubr.msk.bf16.mxu1 %vm873_vm1, %v670_v52  ;;  %8501 = vmatprep.mubr.msk.bf16.mxu0 %vm873_vm1, %v670_v52  ;;  %v10149_v52 = vld [vmem:[%s14493_s1 + $0x10c] ss:$12 sps:$4 sm:$0xff]   ;;  %v10191_v32 = vld [vmem:[%s14493_s1 + $0x330] ss:$12 sps:$4 sm:$0xff]  }
  0x4c   : > { %v11383_v42 = vsel %vm1853_vm2, %v1874_v19, %v11374_v41  ;;  %v10182_v19 = vld [vmem:[%s14493_s1 + $0x2f0] ss:$12 sps:$4 sm:$0xff]   ;;  %v10194_v29 = vld [vmem:[%s14493_s1 + $0x338] ss:$12 sps:$4 sm:$0xff]  }
  0x4d   : > { %1304 = vmatpush1.bf16.msra.mxu1 %v10118_v45  ;;  %1231 = vmatpush1.bf16.msra.mxu0 %v10115_v51  ;;  %v10142_v45 = vld [vmem:[%s14493_s1 + $0xe0] ss:$12 sps:$4 sm:$0xff]   ;;  %v10143_v51 = vld [vmem:[%s14493_s1 + $0xf0] ss:$12 sps:$4 sm:$0xff]  }
  0x4e   : > { %1305 = vmatprep.subr.bf16.mxu1 %v10892_v1  ;;  %1232 = vmatprep.subr.bf16.mxu0 %v10121_v54  ;;  %v10150_v54 = vld [vmem:[%s14493_s1 + $0x110] ss:$12 sps:$4 sm:$0xff]  }
  0x50   : > { %1008 = vmatmul.mubr.bf16.gmra.mrb[8].mxu1 %v662_v58  ;;  %939 = vmatmul.mubr.bf16.gmra.mrb[8].mxu0 %v662_v58  ;;  %v10151_v58 = vld [vmem:[%s14493_s1 + $0x240] ss:$12 sps:$4 sm:$0xff]  }
  0x51   : > { %1306 = vmatpush1.bf16.msra.mxu1 %v10122_v57  ;;  %1233 = vmatpush1.bf16.msra.mxu0 %v10119_v60  ;;  %v10154_v57 = vld [vmem:[%s14493_s1 + $0x248] ss:$12 sps:$4 sm:$0xff]   ;;  %v10158_v60 = vld [vmem:[%s14493_s1 + $0x260] ss:$12 sps:$4 sm:$0xff]  }
  0x52   : > { %1307 = vmatprep.subr.bf16.mxu1 %v10892_v1  ;;  %1234 = vmatprep.subr.bf16.mxu0 %v10125_v61  ;;  %v10161_v61 = vld [vmem:[%s14493_s1 + $0x274] ss:$12 sps:$4 sm:$0xff]  }
  0x53   : > { %8506 = vmatprep.mubr.msk.bf16.mxu1 %vm873_vm1, %v676_v62  ;;  %8502 = vmatprep.mubr.msk.bf16.mxu0 %vm873_vm1, %v676_v62  ;;  %v10162_v62 = vld [vmem:[%s14493_s1 + $0x278] ss:$12 sps:$4 sm:$0xff]  }
  0x55   : > { %1308 = vmatpush1.bf16.msra.mxu1 %v10126_v36  ;;  %1235 = vmatpush1.bf16.msra.mxu0 %v10123_v39  ;;  %v10169_v36 = vld [vmem:[%s14493_s1 + $0x2a4] ss:$12 sps:$4 sm:$0xff]   ;;  %v10170_v39 = vld [vmem:[%s14493_s1 + $0x2a8] ss:$12 sps:$4 sm:$0xff]  }
  0x56   : > { %1309 = vmatprep.subr.bf16.mxu1 %v10892_v1  ;;  %1236 = vmatprep.subr.bf16.mxu0 %v10129_v53  ;;  %v10173_v53 = vld [vmem:[%s14493_s1 + $0x2bc] ss:$12 sps:$4 sm:$0xff]  }
  0x58   : > { %1016 = vmatmul.mubr.bf16.gmra.mrb[12].mxu1 %v673_v7  ;;  %949 = vmatmul.mubr.bf16.gmra.mrb[12].mxu0 %v673_v7  ;;  %v10171_v7 = vld [vmem:[%s14493_s1 + $0x2b8] ss:$12 sps:$4 sm:$0xff]  }
  0x59   : > { %1310 = vmatpush1.bf16.msra.mxu1 %v10130_v63  ;;  %1237 = vmatpush1.bf16.msra.mxu0 %v10127_v48  ;;  %v1424_v63 = vrot.slane %v11125_v33, 1 }
  0x5a   : > { %1311 = vmatprep.subr.bf16.mxu1 %v10892_v1  ;;  %1238 = vmatprep.subr.bf16.mxu0 %v10133_v17  ;;  %v10181_v17 = vld [vmem:[%s14493_s1 + $0x2ec] ss:$12 sps:$4 sm:$0xff]  }
  0x5b   : > { %8547 = vmatprep.mubr.msk.bf16.mxu1 %vm873_vm1, %v11121_v30  ;;  %8543 = vmatprep.mubr.msk.bf16.mxu0 %vm873_vm1, %v11121_v30  ;;  %v1425_v48 = vsel %vm1419_vm3, %v1423_v8, %v1424_v63  ;;  %v10221_v8 = vld [vmem:[%s14493_s1 + $0x3dc] ss:$12 sps:$4 sm:$0xff]  }
  0x5d   : > { %1312 = vmatpush1.bf16.msra.mxu1 %v10134_v21  ;;  %1239 = vmatpush1.bf16.msra.mxu0 %v10131_v24  ;;  %v10186_v21 = vld [vmem:[%s14493_s1 + $0x308] ss:$12 sps:$4 sm:$0xff]  }
  0x5e   : > { %1313 = vmatprep.subr.bf16.mxu1 %v10892_v1  ;;  %1240 = vmatprep.subr.bf16.mxu0 %v10137_v27  ;;  %v10189_v24 = vld [vmem:[%s14493_s1 + $0x31c] ss:$12 sps:$4 sm:$0xff]   ;;  %v10193_v27 = vld [vmem:[%s14493_s1 + $0x334] ss:$12 sps:$4 sm:$0xff]  }
  0x61   : > { %1314 = vmatpush1.bf16.msra.mxu1 %v10138_v34  ;;  %1241 = vmatpush1.bf16.msra.mxu0 %v10135_v38  ;;  %v10197_v34 = vld [vmem:[%s14493_s1 + $0x34c] ss:$12 sps:$4 sm:$0xff]   ;;  %v10198_v38 = vld [vmem:[%s14493_s1 + $0x350] ss:$12 sps:$4 sm:$0xff]  }
  0x62   : > { %1315 = vmatprep.subr.bf16.mxu1 %v10892_v1  ;;  %1242 = vmatprep.subr.bf16.mxu0 %v10141_v40  ;;  %v1420_v40 = vrot.slane %v11132_v37, 1 }
  0x65   : > { %1316 = vmatpush1.bf16.msra.mxu1 %v10142_v45  ;;  %1243 = vmatpush1.bf16.msra.mxu0 %v10139_v46  ;;  %v1421_v45 = vrot.slane %v11153_v47, 1  ;;  %v10195_v46 = vld [vmem:[%s14493_s1 + $0x348] ss:$12 sps:$4 sm:$0xff]  }
  0x66   : > { %1317 = vmatprep.subr.bf16.mxu1 %v10892_v1  ;;  %1244 = vmatprep.subr.bf16.mxu0 %v10145_v49  ;;  %v10201_v49 = vld [vmem:[%s14493_s1 + $0x364] ss:$12 sps:$4 sm:$0xff]  }
  0x69   : > { %1318 = vmatpush1.bf16.msra.mxu1 %v10146_v50  ;;  %1245 = vmatpush1.bf16.msra.mxu0 %v10143_v51  ;;  %v1428_v50 = vrot.slane %v11208_v9, 1  ;;  %v1422_v51 = vsel %vm1419_vm3, %v1420_v40, %v1421_v45  ;;  %v10249_v40 = vld [vmem:[%s14493_s1 + $0x484] ss:$12 sps:$4 sm:$0xff]  }
  0x6a   : > { %1319 = vmatprep.subr.bf16.mxu1 %v10892_v1  ;;  %1246 = vmatprep.subr.bf16.mxu0 %v10149_v52  ;;  %v10202_v52 = vld [vmem:[%s14493_s1 + $0x368] ss:$12 sps:$4 sm:$0xff]  }
  0x6d   : > { %1320 = vmatpush1.bf16.msra.mxu1 %v10150_v54  ;;  %1247 = vmatpush1.bf16.msra.mxu0 %v10147_v55  ;;  %v10199_v54 = vld [vmem:[%s14493_s1 + $0x360] ss:$12 sps:$4 sm:$0xff]   ;;  %v10205_v55 = vld [vmem:[%s14493_s1 + $0x37c] ss:$12 sps:$4 sm:$0xff]  }
  0x6e   : > { %1715 = vmatprep.subr.bf16.mxu1 %v10892_v1  ;;  %1642 = vmatprep.subr.bf16.mxu0 %v10153_v56  ;;  %v10203_v56 = vld [vmem:[%s14493_s1 + $0x378] ss:$12 sps:$4 sm:$0xff]  }
  0x70   : > { %1330 = vmatmul.mubr.bf16.vlgmr.msra.gmra.mrb[16].mxu1 %v11132_v37  ;;  %1257 = vmatmul.mubr.bf16.vlgmr.msra.gmra.mrb[0].mxu0 %v11132_v37 }
  0x71   : > { %1716 = vmatpush1.bf16.msra.mxu1 %v10154_v57  ;;  %1643 = vmatpush1.bf16.msra.mxu0 %v10151_v58  ;;  %v10206_v57 = vld [vmem:[%s14493_s1 + $0x380] ss:$12 sps:$4 sm:$0xff]   ;;  %v1429_v58 = vsel %vm1419_vm3, %v1424_v63, %v1428_v50 }
  0x72   : > { %1717 = vmatprep.subr.bf16.mxu1 %v10892_v1  ;;  %1644 = vmatprep.subr.bf16.mxu0 %v10157_v59  ;;  %v1426_v59 = vrot.slane %v11210_v10, 1  ;;  %v10222_v63 = vld [vmem:[%s14493_s1 + $0x3e0] ss:$12 sps:$4 sm:$0xff]  }
  0x73   : > { %8548 = vmatprep.mubr.msk.bf16.mxu1 %vm873_vm1, %v11125_v33  ;;  %8544 = vmatprep.mubr.msk.bf16.mxu0 %vm873_vm1, %v11125_v33 }
  0x75   : > { %1718 = vmatpush1.bf16.msra.mxu1 %v10158_v60  ;;  %1645 = vmatpush1.bf16.msra.mxu0 %v10155_v35  ;;  %v10209_v60 = vld [vmem:[%s14493_s1 + $0x394] ss:$12 sps:$4 sm:$0xff]   ;;  %v1432_v35 = vrot.slane %v11238_v26, 1 }
  0x76   : > { %1719 = vmatprep.subr.bf16.mxu1 %v10892_v1  ;;  %1646 = vmatprep.subr.bf16.mxu0 %v10161_v61  ;;  %v10210_v61 = vld [vmem:[%s14493_s1 + $0x398] ss:$12 sps:$4 sm:$0xff]  }
  0x78   : > { %1338 = vmatmul.mubr.bf16.gmra.mrb[20].mxu1 %v11153_v47  ;;  %1267 = vmatmul.mubr.bf16.gmra.mrb[4].mxu0 %v11153_v47 }
  0x79   : > { %1720 = vmatpush1.bf16.msra.mxu1 %v10162_v62  ;;  %8549 = vmatprep.mubr.msk.bf16.mxu1 %vm873_vm1, %v11208_v9  ;;  %v10207_v62 = vld [vmem:[%s14493_s1 + $0x390] ss:$12 sps:$4 sm:$0xff]  }
  0x7a   : > { %1647 = vmatpush1.bf16.msra.mxu0 %v10159_v0  ;;  %1721 = vmatprep.subr.bf16.mxu1 %v10892_v1  ;;  %v1427_v0 = vsel %vm1419_vm3, %v1421_v45, %v1426_v59  ;;  %v10250_v45 = vld [vmem:[%s14493_s1 + $0x488] ss:$12 sps:$4 sm:$0xff]  }
  0x7b   : > { %1648 = vmatprep.subr.bf16.mxu0 %v10165_v2  ;;  %8545 = vmatprep.mubr.msk.bf16.mxu0 %vm873_vm1, %v11208_v9  ;;  %v10213_v2 = vld [vmem:[%s14493_s1 + $0x3ac] ss:$12 sps:$4 sm:$0xff]  }
  0x7d   : > { %1722 = vmatpush1.bf16.msra.mxu1 %v10166_v3  ;;  %v1433_v3 = vsel %vm1419_vm3, %v1428_v50, %v1432_v35  ;;  %v10254_v50 = vld [vmem:[%s14493_s1 + $0x4a0] ss:$12 sps:$4 sm:$0xff]  }
  0x7e   : > { %1649 = vmatpush1.bf16.msra.mxu0 %v10163_v4  ;;  %1723 = vmatprep.subr.bf16.mxu1 %v10892_v1  ;;  %v10214_v4 = vld [vmem:[%s14493_s1 + $0x3b0] ss:$12 sps:$4 sm:$0xff]  }
  0x7f   : > { %1650 = vmatprep.subr.bf16.mxu0 %v10169_v36  ;;  %v10211_v36 = vld [vmem:[%s14493_s1 + $0x3a8] ss:$12 sps:$4 sm:$0xff]  }
  0x80   : > { %1346 = vmatmul.mubr.bf16.gmra.mrb[24].mxu1 %v11210_v10  ;;  %1277 = vmatmul.mubr.bf16.gmra.mrb[8].mxu0 %v11210_v10 }
  0x81   : > { %1724 = vmatpush1.bf16.msra.mxu1 %v10170_v39  ;;  %8550 = vmatprep.mubr.msk.bf16.mxu1 %vm873_vm1, %v11238_v26  ;;  %v1430_v39 = vrot.slane %v11246_v31, 1 }
  0x82   : > { %1651 = vmatpush1.bf16.msra.mxu0 %v10167_v5  ;;  %1725 = vmatprep.subr.bf16.mxu1 %v10892_v1  ;;  %v10217_v5 = vld [vmem:[%s14493_s1 + $0x3c4] ss:$12 sps:$4 sm:$0xff]  }
  0x83   : > { %1652 = vmatprep.subr.bf16.mxu0 %v10173_v53  ;;  %8546 = vmatprep.mubr.msk.bf16.mxu0 %vm873_vm1, %v11238_v26  ;;  %v10218_v53 = vld [vmem:[%s14493_s1 + $0x3c8] ss:$12 sps:$4 sm:$0xff]  }
  0x85   : > { %1726 = vmatpush1.bf16.msra.mxu1 %v10174_v6  ;;  %v10215_v6 = vld [vmem:[%s14493_s1 + $0x3c0] ss:$12 sps:$4 sm:$0xff]  }
  0x86   : > { %1653 = vmatpush1.bf16.msra.mxu0 %v10171_v7  ;;  %1727 = vmatprep.subr.bf16.mxu1 %v10892_v1  ;;  %v1431_v7 = vsel %vm1419_vm3, %v1426_v59, %v1430_v39  ;;  %v10263_v59 = vld [vmem:[%s14493_s1 + $0x4e0] ss:$12 sps:$4 sm:$0xff]  }
  0x87   : > { %1654 = vmatprep.subr.bf16.mxu0 %v10177_v11  ;;  %v10219_v11 = vld [vmem:[%s14493_s1 + $0x3d8] ss:$12 sps:$4 sm:$0xff]  }
  0x88   : > { %1354 = vmatmul.mubr.bf16.gmra.mrb[28].mxu1 %v11246_v31  ;;  %1287 = vmatmul.mubr.bf16.gmra.mrb[12].mxu0 %v11246_v31 }
  0x89   : > { %1728 = vmatpush1.bf16.msra.mxu1 %v10178_v12  ;;  %8639 = vmatprep.mubr.msk.bf16.mxu1 %vm873_vm1, %v1425_v48  ;;  %v10225_v12 = vld [vmem:[%s14493_s1 + $0x3f4] ss:$12 sps:$4 sm:$0xff]  }
  0x8a   : > { %1655 = vmatpush1.bf16.msra.mxu0 %v10175_v15  ;;  %1729 = vmatprep.subr.bf16.mxu1 %v10892_v1  ;;  %v10226_v15 = vld [vmem:[%s14493_s1 + $0x3f8] ss:$12 sps:$4 sm:$0xff]  }
  0x8b   : > { %1656 = vmatprep.subr.bf16.mxu0 %v10181_v17  ;;  %8635 = vmatprep.mubr.msk.bf16.mxu0 %vm873_vm1, %v1425_v48  ;;  %v10223_v48 = vld [vmem:[%s14493_s1 + $0x3f0] ss:$12 sps:$4 sm:$0xff]   ;;  %v10229_v17 = vld [vmem:[%s14493_s1 + $0x40c] ss:$12 sps:$4 sm:$0xff]  }
  0x8d   : > { %1730 = vmatpush1.bf16.msra.mxu1 %v10182_v19  ;;  %v10230_v19 = vld [vmem:[%s14493_s1 + $0x410] ss:$12 sps:$4 sm:$0xff]  }
  0x8e   : > { %1657 = vmatpush1.bf16.msra.mxu0 %v10179_v13  ;;  %1731 = vmatprep.subr.bf16.mxu1 %v10892_v1  ;;  %v10227_v13 = vld [vmem:[%s14493_s1 + $0x408] ss:$12 sps:$4 sm:$0xff]  }
  0x8f   : > { %1658 = vmatprep.subr.bf16.mxu0 %v10185_v20  ;;  %v10233_v20 = vld [vmem:[%s14493_s1 + $0x424] ss:$12 sps:$4 sm:$0xff]  }
  0x91   : > { %1732 = vmatpush1.bf16.msra.mxu1 %v10186_v21  ;;  %v10234_v21 = vld [vmem:[%s14493_s1 + $0x428] ss:$12 sps:$4 sm:$0xff]  }
  0x92   : > { %1659 = vmatpush1.bf16.msra.mxu0 %v10183_v23  ;;  %1733 = vmatprep.subr.bf16.mxu1 %v10892_v1  ;;  %v10231_v23 = vld [vmem:[%s14493_s1 + $0x420] ss:$12 sps:$4 sm:$0xff]  }
  0x93   : > { %1660 = vmatprep.subr.bf16.mxu0 %v10189_v24  ;;  %v10237_v24 = vld [vmem:[%s14493_s1 + $0x43c] ss:$12 sps:$4 sm:$0xff]  }
  0x95   : > { %1734 = vmatpush1.bf16.msra.mxu1 %v10190_v25  ;;  %v10238_v25 = vld [vmem:[%s14493_s1 + $0x440] ss:$12 sps:$4 sm:$0xff]  }
  0x96   : > { %1661 = vmatpush1.bf16.msra.mxu0 %v10187_v14  ;;  %1735 = vmatprep.subr.bf16.mxu1 %v10892_v1  ;;  %v10235_v14 = vld [vmem:[%s14493_s1 + $0x438] ss:$12 sps:$4 sm:$0xff]  }
  0x97   : > { %1662 = vmatprep.subr.bf16.mxu0 %v10193_v27  ;;  %v10242_v27 = vld [vmem:[%s14493_s1 + $0x458] ss:$12 sps:$4 sm:$0xff]  }
  0x99   : > { %1736 = vmatpush1.bf16.msra.mxu1 %v10194_v29  ;;  %v10239_v29 = vld [vmem:[%s14493_s1 + $0x450] ss:$12 sps:$4 sm:$0xff]  }
  0x9a   : > { %1663 = vmatpush1.bf16.msra.mxu0 %v10191_v32  ;;  %1737 = vmatprep.subr.bf16.mxu1 %v10892_v1  ;;  %v10245_v32 = vld [vmem:[%s14493_s1 + $0x46c] ss:$12 sps:$4 sm:$0xff]  }
  0x9b   : > { %1664 = vmatprep.subr.bf16.mxu0 %v10197_v34  ;;  %v10246_v34 = vld [vmem:[%s14493_s1 + $0x470] ss:$12 sps:$4 sm:$0xff]  }
  0x9d   : > { %1738 = vmatpush1.bf16.msra.mxu1 %v10198_v38  ;;  %v10243_v38 = vld [vmem:[%s14493_s1 + $0x468] ss:$12 sps:$4 sm:$0xff]  }
  0x9e   : > { %1665 = vmatpush1.bf16.msra.mxu0 %v10195_v46  ;;  %2165 = vmatprep.subr.bf16.mxu1 %v10892_v1  ;;  %v10247_v46 = vld [vmem:[%s14493_s1 + $0x480] ss:$12 sps:$4 sm:$0xff]  }
  0x9f   : > { %2092 = vmatprep.subr.bf16.mxu0 %v10201_v49  ;;  %v10253_v49 = vld [vmem:[%s14493_s1 + $0x49c] ss:$12 sps:$4 sm:$0xff]  }
  0xa0   : > { %1748 = vmatmul.mubr.bf16.vlgmr.msra.gmra.mrb[32].mxu1 %v1422_v51 }
  0xa1   : > { %2166 = vmatpush1.bf16.msra.mxu1 %v10202_v52  ;;  %1675 = vmatmul.mubr.bf16.vlgmr.msra.gmra.mrb[0].mxu0 %v1422_v51  ;;  %v10251_v51 = vld [vmem:[%s14493_s1 + $0x498] ss:$12 sps:$4 sm:$0xff]   ;;  %v10257_v52 = vld [vmem:[%s14493_s1 + $0x4b4] ss:$12 sps:$4 sm:$0xff]  }
  0xa2   : > { %2093 = vmatpush1.bf16.msra.mxu0 %v10199_v54  ;;  %2167 = vmatprep.subr.bf16.mxu1 %v10892_v1  ;;  %v10258_v54 = vld [vmem:[%s14493_s1 + $0x4b8] ss:$12 sps:$4 sm:$0xff]  }
  0xa3   : > { %2094 = vmatprep.subr.bf16.mxu0 %v10205_v55  ;;  %8640 = vmatprep.mubr.msk.bf16.mxu1 %vm873_vm1, %v1429_v58  ;;  %v10255_v55 = vld [vmem:[%s14493_s1 + $0x4b0] ss:$12 sps:$4 sm:$0xff]  }
  0xa4   : > { %8636 = vmatprep.mubr.msk.bf16.mxu0 %vm873_vm1, %v1429_v58  ;;  %v10266_v58 = vld [vmem:[%s14493_s1 + $0x4e8] ss:$12 sps:$4 sm:$0xff]  }
  0xa5   : > { %2168 = vmatpush1.bf16.msra.mxu1 %v10206_v57  ;;  %v10259_v57 = vld [vmem:[%s14493_s1 + $0x4c8] ss:$12 sps:$4 sm:$0xff]  }
  0xa6   : > { %2095 = vmatpush1.bf16.msra.mxu0 %v10203_v56  ;;  %2169 = vmatprep.subr.bf16.mxu1 %v10892_v1  ;;  %v10262_v56 = vld [vmem:[%s14493_s1 + $0x4d0] ss:$12 sps:$4 sm:$0xff]  }
  0xa7   : > { %2096 = vmatprep.subr.bf16.mxu0 %v10209_v60  ;;  %v10269_v60 = vld [vmem:[%s14493_s1 + $0x4fc] ss:$12 sps:$4 sm:$0xff]  }
  0xa8   : > { %1756 = vmatmul.mubr.bf16.gmra.mrb[36].mxu1 %v1427_v0 }
  0xa9   : > { %2170 = vmatpush1.bf16.msra.mxu1 %v10210_v61  ;;  %8641 = vmatprep.mubr.msk.bf16.mxu1 %vm873_vm1, %v1433_v3  ;;  %v2307_v61 = vrot.slane %v11121_v30, 2  ;;  %v10277_v30 = vld [vmem:[%s14493_s1 + $0x52c] ss:$12 sps:$4 sm:$0xff]  }
  0xaa   : > { %2097 = vmatpush1.bf16.msra.mxu0 %v10207_v62  ;;  %2171 = vmatprep.subr.bf16.mxu1 %v10892_v1  ;;  %v2308_v62 = vrot.slane %v11125_v33, 2 }
  0xab   : > { %2098 = vmatprep.subr.bf16.mxu0 %v10213_v2  ;;  %1685 = vmatmul.mubr.bf16.gmra.mrb[4].mxu0 %v1427_v0  ;;  %v10274_v0 = vld [vmem:[%s14493_s1 + $0x518] ss:$12 sps:$4 sm:$0xff]   ;;  %v10271_v2 = vld [vmem:[%s14493_s1 + $0x510] ss:$12 sps:$4 sm:$0xff]  }
  0xac   : > { %8637 = vmatprep.mubr.msk.bf16.mxu0 %vm873_vm1, %v1433_v3  ;;  %v2309_v33 = vsel %vm2303_vm4, %v2307_v61, %v2308_v62  ;;  %v10281_v3 = vld [vmem:[%s14493_s1 + $0x544] ss:$12 sps:$4 sm:$0xff]  }
  0xad   : > { %2172 = vmatpush1.bf16.msra.mxu1 %v10214_v4  ;;  %v2304_v4 = vrot.slane %v11132_v37, 2  ;;  %v2314_v37 = vrot.slane %v11246_v31, 2  ;;  %v10289_v31 = vld [vmem:[%s14493_s1 + $0x574] ss:$12 sps:$4 sm:$0xff]  }
  0xae   : > { %2099 = vmatpush1.bf16.msra.mxu0 %v10211_v36  ;;  %2173 = vmatprep.subr.bf16.mxu1 %v10892_v1  ;;  %v2305_v36 = vrot.slane %v11153_v47, 2  ;;  %v10279_v47 = vld [vmem:[%s14493_s1 + $0x540] ss:$12 sps:$4 sm:$0xff]  }
  0xaf   : > { %2100 = vmatprep.subr.bf16.mxu0 %v10217_v5  ;;  %v2310_v5 = vrot.slane %v11210_v10, 2  ;;  %v10286_v10 = vld [vmem:[%s14493_s1 + $0x560] ss:$12 sps:$4 sm:$0xff]  }
  0xb0   : > { %1764 = vmatmul.mubr.bf16.gmra.mrb[40].mxu1 %v1431_v7 }
  0xb1   : > { %2174 = vmatpush1.bf16.msra.mxu1 %v10218_v53  ;;  %8642 = vmatprep.mubr.msk.bf16.mxu1 %vm873_vm1, %v1432_v35  ;;  %v2316_v53 = vrot.slane %v11238_v26, 2  ;;  %v10283_v26 = vld [vmem:[%s14493_s1 + $0x558] ss:$12 sps:$4 sm:$0xff]  }
  0xb2   : > { %2101 = vmatpush1.bf16.msra.mxu0 %v10215_v6  ;;  %2175 = vmatprep.subr.bf16.mxu1 %v10892_v1  ;;  %v10282_v6 = vld [vmem:[%s14493_s1 + $0x548] ss:$12 sps:$4 sm:$0xff]  }
  0xb3   : > { %2102 = vmatprep.subr.bf16.mxu0 %v10221_v8  ;;  %1695 = vmatmul.mubr.bf16.gmra.mrb[8].mxu0 %v1431_v7  ;;  %v10287_v7 = vld [vmem:[%s14493_s1 + $0x570] ss:$12 sps:$4 sm:$0xff]   ;;  %v10293_v8 = vld [vmem:[%s14493_s1 + $0x58c] ss:$12 sps:$4 sm:$0xff]  }
  0xb4   : > { %8638 = vmatprep.mubr.msk.bf16.mxu0 %vm873_vm1, %v1432_v35  ;;  %v10267_v35 = vld [vmem:[%s14493_s1 + $0x4f8] ss:$12 sps:$4 sm:$0xff]  }
  0xb5   : > { %2176 = vmatpush1.bf16.msra.mxu1 %v10222_v63  ;;  %v10294_v63 = vld [vmem:[%s14493_s1 + $0x590] ss:$12 sps:$4 sm:$0xff]  }
  0xb6   : > { %2103 = vmatpush1.bf16.msra.mxu0 %v10219_v11  ;;  %2177 = vmatprep.subr.bf16.mxu1 %v10892_v1  ;;  %v10291_v11 = vld [vmem:[%s14493_s1 + $0x588] ss:$12 sps:$4 sm:$0xff]  }
  0xb7   : > { %2104 = vmatprep.subr.bf16.mxu0 %v10225_v12  ;;  %v2306_v12 = vsel %vm2303_vm4, %v2304_v4, %v2305_v36 }
  0xb8   : > { %1772 = vmatmul.mubr.bf16.gmra.mrb[44].mxu1 %v1430_v39 }
  0xb9   : > { %2178 = vmatpush1.bf16.msra.mxu1 %v10226_v15  ;;  %8731 = vmatprep.mubr.msk.bf16.mxu1 %vm873_vm1, %v11331_v16 }
  0xba   : > { %2105 = vmatpush1.bf16.msra.mxu0 %v10223_v48  ;;  %2179 = vmatprep.subr.bf16.mxu1 %v10892_v1  ;;  %v2311_v48 = vsel %vm2303_vm4, %v2305_v36, %v2310_v5 }
  0xbb   : > { %2106 = vmatprep.subr.bf16.mxu0 %v10229_v17  ;;  %1705 = vmatmul.mubr.bf16.gmra.mrb[12].mxu0 %v1430_v39  ;;  %v2312_v39 = vrot.slane %v11208_v9, 2  ;;  %v10285_v9 = vld [vmem:[%s14493_s1 + $0x55c] ss:$12 sps:$4 sm:$0xff]  }
  0xbc   : > { %8727 = vmatprep.mubr.msk.bf16.mxu0 %vm873_vm1, %v11331_v16  ;;  %v10241_v16 = vld [vmem:[%s14493_s1 + $0x454] ss:$12 sps:$4 sm:$0xff]  }
  0xbd   : > { %2180 = vmatpush1.bf16.msra.mxu1 %v10230_v19  ;;  %v2313_v15 = vsel %vm2303_vm4, %v2308_v62, %v2312_v39  ;;  %v2317_v17 = vsel %vm2303_vm4, %v2312_v39, %v2316_v53  ;;  %v2315_v19 = vsel %vm2303_vm4, %v2310_v5, %v2314_v37 }
  0xbe   : > { %2107 = vmatpush1.bf16.msra.mxu0 %v10227_v13  ;;  %2181 = vmatprep.subr.bf16.mxu1 %v10892_v1 }
  0xbf   : > { %2108 = vmatprep.subr.bf16.mxu0 %v10233_v20 }
  0xc1   : > { %2182 = vmatpush1.bf16.msra.mxu1 %v10234_v21 }
  0xc2   : > { %2109 = vmatpush1.bf16.msra.mxu0 %v10231_v23  ;;  %2183 = vmatprep.subr.bf16.mxu1 %v10892_v1 }
  0xc3   : > { %2110 = vmatprep.subr.bf16.mxu0 %v10237_v24 }
  0xc5   : > { %2184 = vmatpush1.bf16.msra.mxu1 %v10238_v25 }
  0xc6   : > { %2111 = vmatpush1.bf16.msra.mxu0 %v10235_v14  ;;  %2185 = vmatprep.subr.bf16.mxu1 %v10892_v1 }
  0xc7   : > { %2112 = vmatprep.subr.bf16.mxu0 %v10241_v16 }
  0xc9   : > { %2186 = vmatpush1.bf16.msra.mxu1 %v10242_v27 }
  0xca   : > { %2113 = vmatpush1.bf16.msra.mxu0 %v10239_v29  ;;  %2187 = vmatprep.subr.bf16.mxu1 %v10892_v1 }
  0xcb   : > { %2114 = vmatprep.subr.bf16.mxu0 %v10245_v32 }
  0xcd   : > { %2188 = vmatpush1.bf16.msra.mxu1 %v10246_v34 }
  0xce   : > { %2115 = vmatpush1.bf16.msra.mxu0 %v10243_v38  ;;  %2599 = vmatprep.subr.bf16.mxu1 %v10892_v1 }
  0xcf   : > { %2526 = vmatprep.subr.bf16.mxu0 %v10249_v40 }
  0xd0   : > { %2198 = vmatmul.mubr.bf16.vlgmr.msra.gmra.mrb[48].mxu1 %v11337_v18 }
  0xd1   : > { %2600 = vmatpush1.bf16.msra.mxu1 %v10250_v45  ;;  %2125 = vmatmul.mubr.bf16.vlgmr.msra.gmra.mrb[0].mxu0 %v11337_v18  ;;  %v10261_v18 = vld [vmem:[%s14493_s1 + $0x4cc] ss:$12 sps:$4 sm:$0xff]  }
  0xd2   : > { %2527 = vmatpush1.bf16.msra.mxu0 %v10247_v46  ;;  %2601 = vmatprep.subr.bf16.mxu1 %v10892_v1 }
  0xd3   : > { %2528 = vmatprep.subr.bf16.mxu0 %v10253_v49  ;;  %8732 = vmatprep.mubr.msk.bf16.mxu1 %vm873_vm1, %v11347_v22 }
  0xd4   : > { %8728 = vmatprep.mubr.msk.bf16.mxu0 %vm873_vm1, %v11347_v22  ;;  %v10265_v22 = vld [vmem:[%s14493_s1 + $0x4e4] ss:$12 sps:$4 sm:$0xff]  }
  0xd5   : > { %2602 = vmatpush1.bf16.msra.mxu1 %v10254_v50 }
  0xd6   : > { %2529 = vmatpush1.bf16.msra.mxu0 %v10251_v51  ;;  %2603 = vmatprep.subr.bf16.mxu1 %v10892_v1 }
  0xd7   : > { %2530 = vmatprep.subr.bf16.mxu0 %v10257_v52 }
  0xd8   : > { %2206 = vmatmul.mubr.bf16.gmra.mrb[52].mxu1 %v11359_v28 }
  0xd9   : > { %2604 = vmatpush1.bf16.msra.mxu1 %v10258_v54  ;;  %8733 = vmatprep.mubr.msk.bf16.mxu1 %vm873_vm1, %v11383_v42 }
  0xda   : > { %2531 = vmatpush1.bf16.msra.mxu0 %v10255_v55  ;;  %2605 = vmatprep.subr.bf16.mxu1 %v10892_v1 }
  0xdb   : > { %2532 = vmatprep.subr.bf16.mxu0 %v10261_v18  ;;  %2135 = vmatmul.mubr.bf16.gmra.mrb[4].mxu0 %v11359_v28  ;;  %v10270_v28 = vld [vmem:[%s14493_s1 + $0x500] ss:$12 sps:$4 sm:$0xff]  }
  0xdc   : > { %8729 = vmatprep.mubr.msk.bf16.mxu0 %vm873_vm1, %v11383_v42  ;;  %v10273_v42 = vld [vmem:[%s14493_s1 + $0x514] ss:$12 sps:$4 sm:$0xff]  }
  0xdd   : > { %2606 = vmatpush1.bf16.msra.mxu1 %v10262_v56 }
  0xde   : > { %2533 = vmatpush1.bf16.msra.mxu0 %v10259_v57  ;;  %2607 = vmatprep.subr.bf16.mxu1 %v10892_v1 }
  0xdf   : > { %2534 = vmatprep.subr.bf16.mxu0 %v10265_v22 }
  0xe0   : > { %2214 = vmatmul.mubr.bf16.gmra.mrb[56].mxu1 %v11387_v44 }
  0xe1   : > { %2608 = vmatpush1.bf16.msra.mxu1 %v10266_v58  ;;  %8734 = vmatprep.mubr.msk.bf16.mxu1 %vm873_vm1, %v11374_v41 }
  0xe2   : > { %2535 = vmatpush1.bf16.msra.mxu0 %v10263_v59  ;;  %2609 = vmatprep.subr.bf16.mxu1 %v10892_v1 }
  0xe3   : > { %2536 = vmatprep.subr.bf16.mxu0 %v10269_v60  ;;  %2145 = vmatmul.mubr.bf16.gmra.mrb[8].mxu0 %v11387_v44  ;;  %v10278_v44 = vld [vmem:[%s14493_s1 + $0x530] ss:$12 sps:$4 sm:$0xff]  }
  0xe4   : > { %8730 = vmatprep.mubr.msk.bf16.mxu0 %vm873_vm1, %v11374_v41  ;;  %v10275_v41 = vld [vmem:[%s14493_s1 + $0x528] ss:$12 sps:$4 sm:$0xff]  }
  0xe5   : > { %2610 = vmatpush1.bf16.msra.mxu1 %v10270_v28 }
  0xe6   : > { %2537 = vmatpush1.bf16.msra.mxu0 %v10267_v35  ;;  %2611 = vmatprep.subr.bf16.mxu1 %v10892_v1 }
  0xe7   : > { %2538 = vmatprep.subr.bf16.mxu0 %v10273_v42 }
  0xe8   : > { %2222 = vmatmul.mubr.bf16.gmra.mrb[60].mxu1 %v11376_v43 }
  0xe9   : > { %2612 = vmatpush1.bf16.msra.mxu1 %v10274_v0  ;;  %8823 = vmatprep.mubr.msk.bf16.mxu1 %vm873_vm1, %v2309_v33 }
  0xea   : > { %2539 = vmatpush1.bf16.msra.mxu0 %v10271_v2  ;;  %2613 = vmatprep.subr.bf16.mxu1 %v10892_v1 }
  0xeb   : > { %2540 = vmatprep.subr.bf16.mxu0 %v10277_v30  ;;  %2155 = vmatmul.mubr.bf16.gmra.mrb[12].mxu0 %v11376_v43  ;;  %v10290_v43 = vld [vmem:[%s14493_s1 + $0x578] ss:$12 sps:$4 sm:$0xff]  }
  0xec   : > { %8819 = vmatprep.mubr.msk.bf16.mxu0 %vm873_vm1, %v2309_v33 }
  0xed   : > { %2614 = vmatpush1.bf16.msra.mxu1 %v10278_v44 }
  0xee   : > { %2541 = vmatpush1.bf16.msra.mxu0 %v10275_v41  ;;  %2615 = vmatprep.subr.bf16.mxu1 %v10892_v1 }
  0xef   : > { %2542 = vmatprep.subr.bf16.mxu0 %v10281_v3 }
  0xf1   : > { %2616 = vmatpush1.bf16.msra.mxu1 %v10282_v6 }
  0xf2   : > { %2543 = vmatpush1.bf16.msra.mxu0 %v10279_v47  ;;  %2617 = vmatprep.subr.bf16.mxu1 %v10892_v1 }
  0xf3   : > { %2544 = vmatprep.subr.bf16.mxu0 %v10285_v9 }
  0xf5   : > { %2618 = vmatpush1.bf16.msra.mxu1 %v10286_v10 }
  0xf6   : > { %2545 = vmatpush1.bf16.msra.mxu0 %v10283_v26  ;;  %2619 = vmatprep.subr.bf16.mxu1 %v10892_v1 }
  0xf7   : > { %2546 = vmatprep.subr.bf16.mxu0 %v10289_v31 }
  0xf9   : > { %2620 = vmatpush1.bf16.msra.mxu1 %v10290_v43  ;;  %v11871_v43 = vld [vmem:[%s14495_s3] sm:$0xff] }
  0xfa   : > { %2547 = vmatpush1.bf16.msra.mxu0 %v10287_v7  ;;  %2621 = vmatprep.subr.bf16.mxu1 %v10892_v1 }
  0xfb   : > { %2548 = vmatprep.subr.bf16.mxu0 %v10293_v8 }
  0xfd   : > { %2622 = vmatpush1.bf16.msra.mxu1 %v10294_v63  ;;  %v10893_v63 = vmov 0.0  }
  0xfe   : > { %2549 = vmatpush1.bf16.msra.mxu0 %v10291_v11 }
 0x100   : > { %2632 = vmatmul.mubr.bf16.vlgmr.msra.gmra.mrb[64].mxu1 %v2306_v12 }
 0x101   : > { %2559 = vmatmul.mubr.bf16.vlgmr.msra.gmra.mrb[0].mxu0 %v2306_v12  ;;  %8824 = vmatprep.mubr.msk.bf16.mxu1 %vm873_vm1, %v2313_v15 }
 0x102   : > { %8820 = vmatprep.mubr.msk.bf16.mxu0 %vm873_vm1, %v2313_v15 }
 0x108   : > { %2640 = vmatmul.mubr.bf16.gmra.mrb[68].mxu1 %v2311_v48 }
 0x109   : > { %2569 = vmatmul.mubr.bf16.gmra.mrb[4].mxu0 %v2311_v48  ;;  %8825 = vmatprep.mubr.msk.bf16.mxu1 %vm873_vm1, %v2317_v17 }
 0x10a   : > { %8821 = vmatprep.mubr.msk.bf16.mxu0 %vm873_vm1, %v2317_v17 }
 0x110   : > { %2648 = vmatmul.mubr.bf16.gmra.mrb[72].mxu1 %v2315_v19 }
 0x111   : > { %2579 = vmatmul.mubr.bf16.gmra.mrb[8].mxu0 %v2315_v19  ;;  %8826 = vmatprep.mubr.msk.bf16.mxu1 %vm873_vm1, %v2316_v53 }
 0x112   : > { %8822 = vmatprep.mubr.msk.bf16.mxu0 %vm873_vm1, %v2316_v53  ;;  %vm6005_vm1 = vcmask 130048  }
 0x113   : > { %v993_v13 = vpop.f32.mrb[0].mxu1 }
 0x114   : > { %v995_v20 = vpop.f32.mrb[1].mxu1 }
 0x115   : > { %v996_v21 = vpop.f32.mrb[2].mxu1 }
 0x116   : > { %v998_v23 = vpop.f32.mrb[3].mxu1 }
 0x118   : > { %2656 = vmatmul.mubr.bf16.gmra.mrb[76].mxu1 %v2314_v37 }
 0x119   : > { %2589 = vmatmul.mubr.bf16.gmra.mrb[12].mxu0 %v2314_v37  ;;  %9554 = vmatprep.mubr.msk.f32.mxu1 %vm2875_vm5, %v11871_v43 }
 0x11a   : > { %2962 = vmatprep.mubr.f32.mxu0 %v10893_v63 }
 0x11b   : > { %v1001_v24 = vpop.f32.mrb[4].mxu1 }
 0x11c   : > { %v1003_v25 = vpop.f32.mrb[5].mxu1 }
 0x11d   : > { %v1004_v14 = vpop.f32.mrb[6].mxu1 }
 0x11e   : > { %v1006_v16 = vpop.f32.mrb[7].mxu1 }
 0x123   : > { %v1009_v27 = vpop.f32.mrb[8].mxu1 }
 0x124   : > { %v1011_v29 = vpop.f32.mrb[9].mxu1 }
 0x125   : > { %v1012_v32 = vpop.f32.mrb[10].mxu1 }
 0x126   : > { %v1014_v34 = vpop.f32.mrb[11].mxu1 }
 0x12b   : > { %v1017_v38 = vpop.f32.mrb[12].mxu1 }
 0x12c   : > { %v1019_v40 = vpop.f32.mrb[13].mxu1 }
 0x12d   : > { %v1020_v45 = vpop.f32.mrb[14].mxu1 }
 0x12e   : > { %v1022_v46 = vpop.f32.mrb[15].mxu1 }
 0x143   : > { %v1331_v49 = vpop.f32.mrb[16].mxu1 }
 0x144   : > { %v1332_v50 = vadd.f32 %v1331_v49, %v993_v13  ;;  %v1333_v51 = vpop.f32.mrb[17].mxu1 }
 0x145   : > { %v1334_v52 = vpop.f32.mrb[18].mxu1 }
 0x146   : > { %v1335_v54 = vadd.f32 %v1334_v52, %v996_v21  ;;  %v1336_v55 = vpop.f32.mrb[19].mxu1 }
 0x14b   : > { %v1339_v18 = vpop.f32.mrb[20].mxu1 }
 0x14c   : > { %v1340_v56 = vadd.f32 %v1339_v18, %v1001_v24  ;;  %v1341_v57 = vpop.f32.mrb[21].mxu1 }
 0x14d   : > { %v1342_v22 = vpop.f32.mrb[22].mxu1 }
 0x14e   : > { %v1343_v58 = vadd.f32 %v1342_v22, %v1004_v14  ;;  %v1344_v59 = vpop.f32.mrb[23].mxu1 }
 0x14f   : > { %v2690_v59 = vlaneseq }
 0x153   : > { %v1347_v60 = vpop.f32.mrb[24].mxu1 }
 0x154   : > { %v1348_v28 = vadd.f32 %v1347_v60, %v1009_v27  ;;  %v1349_v35 = vpop.f32.mrb[25].mxu1  ;;  %v11884_v60 = vshrl.u32 %v2690_v59, 7 }
 0x155   : > { %v1350_v42 = vpop.f32.mrb[26].mxu1  ;;  %v2688_v35 = vld [vmem:[%s14494_s2] sm:$0x7] }
 0x156   : > { %v1351_v61 = vadd.f32 %v1350_v42, %v1012_v32  ;;  %v1352_v62 = vpop.f32.mrb[27].mxu1  ;;  %v2700_v42 = vsub.s32 2, %v11884_v60 }
 0x15b   : > { %v1355_v0 = vpop.f32.mrb[28].mxu1 }
 0x15c   : > { %v1356_v2 = vadd.f32 %v1355_v0, %v1017_v38  ;;  %v1357_v30 = vpop.f32.mrb[29].mxu1  ;;  %v11898_v0 = vrot.slane %v2688_v35, %v2700_v42 }
 0x15d   : > { %v1358_v33 = vpop.f32.mrb[30].mxu1 }
 0x15e   : > { %v1359_v44 = vadd.f32 %v1358_v33, %v1020_v45  ;;  %v1360_v41 = vpop.f32.mrb[31].mxu1 }
 0x173   : > { %v1749_v3 = vpop.f32.mrb[32].mxu1 }
 0x174   : > { %v1782_v4 = vadd.f32 %v1749_v3, %v1332_v50  ;;  %v1751_v36 = vpop.f32.mrb[33].mxu1 }
 0x175   : > { %v1752_v39 = vpop.f32.mrb[34].mxu1 }
 0x176   : > { %v1785_v5 = vadd.f32 %v1752_v39, %v1335_v54  ;;  %v1754_v53 = vpop.f32.mrb[35].mxu1 }
 0x17b   : > { %v1757_v6 = vpop.f32.mrb[36].mxu1 }
 0x17c   : > { %v1788_v37 = vadd.f32 %v1757_v6, %v1340_v56  ;;  %v1759_v47 = vpop.f32.mrb[37].mxu1 }
 0x17d   : > { %v1760_v9 = vpop.f32.mrb[38].mxu1 }
 0x17e   : > { %v1791_v10 = vadd.f32 %v1760_v9, %v1343_v58  ;;  %v1762_v26 = vpop.f32.mrb[39].mxu1 }
 0x183   : > { %v1765_v31 = vpop.f32.mrb[40].mxu1 }
 0x184   : > { %v1794_v7 = vadd.f32 %v1765_v31, %v1348_v28  ;;  %v1767_v8 = vpop.f32.mrb[41].mxu1  ;;  %v2692_v28 = vsub.s32 0, %v11884_v60 }
 0x185   : > { %v1768_v11 = vpop.f32.mrb[42].mxu1 }
 0x186   : > { %v1797_v12 = vadd.f32 %v1768_v11, %v1351_v61  ;;  %v1770_v15 = vpop.f32.mrb[43].mxu1  ;;  %v2696_v61 = vsub.s32 1, %v11884_v60  ;;  %v11894_v62 = vrot.slane %v2688_v35, %v2692_v28 }
 0x18b   : > { %v1773_v48 = vpop.f32.mrb[44].mxu1 }
 0x18c   : > { %v1800_v17 = vadd.f32 %v1773_v48, %v1356_v2  ;;  %v1775_v19 = vpop.f32.mrb[45].mxu1  ;;  %v11902_v2 = vrot.slane %v2688_v35, %v2696_v61 }
 0x18d   : > { %v1776_v13 = vpop.f32.mrb[46].mxu1 }
 0x18e   : > { %v1803_v20 = vadd.f32 %v1776_v13, %v1359_v44  ;;  %v1778_v21 = vpop.f32.mrb[47].mxu1 }
 0x1a3   : > { %v2199_v23 = vpop.f32.mrb[48].mxu1 }
 0x1a4   : > { %v2232_v24 = vadd.f32 %v2199_v23, %v1782_v4  ;;  %v2201_v25 = vpop.f32.mrb[49].mxu1 }
 0x1a5   : > { %v2202_v14 = vpop.f32.mrb[50].mxu1 }
 0x1a6   : > { %v2235_v16 = vadd.f32 %v2202_v14, %v1785_v5  ;;  %v2204_v27 = vpop.f32.mrb[51].mxu1 }
 0x1ab   : > { %v2207_v29 = vpop.f32.mrb[52].mxu1 }
 0x1ac   : > { %v2238_v32 = vadd.f32 %v2207_v29, %v1788_v37  ;;  %v2209_v34 = vpop.f32.mrb[53].mxu1 }
 0x1ad   : > { %v2210_v38 = vpop.f32.mrb[54].mxu1 }
 0x1ae   : > { %v2241_v40 = vadd.f32 %v2210_v38, %v1791_v10  ;;  %v2212_v45 = vpop.f32.mrb[55].mxu1 }
 0x1b3   : > { %v2215_v46 = vpop.f32.mrb[56].mxu1 }
 0x1b4   : > { %v11876_v49 = vadd.f32 %v2215_v46, %v1794_v7  ;;  %v2217_v50 = vpop.f32.mrb[57].mxu1 }
 0x1b5   : > { %v2218_v51 = vpop.f32.mrb[58].mxu1 }
 0x1b6   : > { %v11878_v52 = vadd.f32 %v2218_v51, %v1797_v12  ;;  %v2220_v54 = vpop.f32.mrb[59].mxu1 }
 0x1bb   : > { %v2223_v55 = vpop.f32.mrb[60].mxu1 }
 0x1bc   : > { %v11880_v18 = vadd.f32 %v2223_v55, %v1800_v17  ;;  %v2225_v56 = vpop.f32.mrb[61].mxu1 }
 0x1bd   : > { %v2226_v57 = vpop.f32.mrb[62].mxu1 }
 0x1be   : > { %v11882_v22 = vadd.f32 %v2226_v57, %v1803_v20  ;;  %v2228_v58 = vpop.f32.mrb[63].mxu1 }
 0x1d3   : > { %v2633_v30 = vpop.f32.mrb[64].mxu1 }
 0x1d4   : > { %v2666_v33 = vadd.f32 %v2633_v30, %v2232_v24  ;;  %v2560_v44 = vpop.f32.mrb[0].mxu0  ;;  %v2635_v41 = vpop.f32.mrb[65].mxu1 }
 0x1d5   : > { %v2705_v3 = vadd.f32 %v11894_v62, %v2560_v44  ;;  %v2562_v4 = vpop.f32.mrb[1].mxu0  ;;  %v2636_v36 = vpop.f32.mrb[66].mxu1 }
 0x1d6   : > { %v2707_v39 = vadd.f32 %v11898_v0, %v2666_v33  ;;  %v2706_v5 = vadd.f32 %v11902_v2, %v2562_v4  ;;  %v2669_v53 = vadd.f32 %v2636_v36, %v2235_v16  ;;  %v2564_v6 = vpop.f32.mrb[2].mxu0  ;;  %v2638_v37 = vpop.f32.mrb[67].mxu1 }
 0x1d7   : > { %v2729_v47 = vmax.f32 %v2705_v3, 0.0  ;;  %v2708_v9 = vadd.f32 %v11894_v62, %v2564_v6  ;;  %v2566_v10 = vpop.f32.mrb[3].mxu0 }
 0x1d8   : > { %v11909_v26 = vadd.f32 %v11898_v0, %v2669_v53  ;;  %v11912_v31 = vadd.f32 %v11902_v2, %v2566_v10  ;;  %v2731_v7 = vmax.f32 %v2707_v39, 0.0  ;;  %v2730_v8 = vmax.f32 %v2706_v5, 0.0 }
 0x1d9   : > { %v2732_v11 = vmax.f32 %v2708_v9, 0.0  ;;  %v2778_v48 = vrot.slane %v2729_v47, 1 }
 0x1da   : > { %v2734_v12 = vmax.f32 %v11909_v26, 0.0  ;;  %v2733_v15 = vmax.f32 %v11912_v31, 0.0  ;;  %v2784_v25 = vrot.slane %v2731_v7, 1  ;;  %v2781_v14 = vrot.slane %v2730_v8, 1 }
 0x1db   : > { %v2779_v17 = vrot.slane %v2732_v11, 1  ;;  %v2641_v19 = vpop.f32.mrb[68].mxu1 }
 0x1dc   : > { %v2785_v13 = vrot.slane %v2734_v12, 1  ;;  %v2782_v20 = vrot.slane %v2733_v15, 1  ;;  %v2672_v21 = vadd.f32 %v2641_v19, %v2238_v32  ;;  %v2570_v23 = vpop.f32.mrb[4].mxu0  ;;  %v2643_v24 = vpop.f32.mrb[69].mxu1 }
 0x1dd   : > { %v2780_v16 = vsel %vm1419_vm3, %v2778_v48, %v2779_v17  ;;  %v2711_v27 = vadd.f32 %v11894_v62, %v2570_v23  ;;  %v2572_v29 = vpop.f32.mrb[5].mxu0  ;;  %v2644_v34 = vpop.f32.mrb[70].mxu1 }
 0x1de   : > { %v11920_v38 = vmax.f32 %v2729_v47, %v2780_v16  ;;  %v11923_v45 = vadd.f32 %v11898_v0, %v2672_v21  ;;  %v11926_v46 = vadd.f32 %v11902_v2, %v2572_v29  ;;  %v2675_v50 = vadd.f32 %v2644_v34, %v2241_v40  ;;  %v2574_v32 = vpop.f32.mrb[6].mxu0  ;;  %v2646_v51 = vpop.f32.mrb[71].mxu1 }
 0x1df   : > { %v2735_v54 = vmax.f32 %v2711_v27, 0.0  ;;  %v2714_v55 = vadd.f32 %v11894_v62, %v2574_v32  ;;  %v2576_v56 = vpop.f32.mrb[7].mxu0  ;;  %v2783_v57 = vsel %vm1419_vm3, %v2781_v14, %v2782_v20  ;;  %v2786_v58 = vsel %vm1419_vm3, %v2784_v25, %v2785_v13 }
 0x1e0   : > { %v2737_v59 = vmax.f32 %v11923_v45, 0.0  ;;  %v2736_v35 = vmax.f32 %v11926_v46, 0.0  ;;  %v11934_v30 = vadd.f32 %v11898_v0, %v2675_v50  ;;  %v11937_v33 = vadd.f32 %v11902_v2, %v2576_v56 }
 0x1e1   : > { %v2787_v40 = vrot.slane %v2735_v54, 1  ;;  %v2738_v44 = vmax.f32 %v2714_v55, 0.0  ;;  %v2848_v41 = vmax.f32 %v2730_v8, %v2783_v57  ;;  %v2849_v3 = vmax.f32 %v2731_v7, %v2786_v58 }
 0x1e2   : > { %v11941_v4 = vrot.slane %v2737_v59, 1  ;;  %v2789_v36 = vrot.slane %v2736_v35, 1  ;;  %v2740_v39 = vmax.f32 %v11934_v30, 0.0  ;;  %v2739_v5 = vmax.f32 %v11937_v33, 0.0 }
 0x1e3   : > { %v2788_v53 = vsel %vm1419_vm3, %v2779_v17, %v2787_v40  ;;  %v2793_v6 = vrot.slane %v2738_v44, 1  ;;  %v2649_v37 = vpop.f32.mrb[72].mxu1 }
 0x1e4   : > { %v2850_v47 = vmax.f32 %v2732_v11, %v2788_v53  ;;  %v11950_v9 = vrot.slane %v2740_v39, 1  ;;  %v2795_v10 = vrot.slane %v2739_v5, 1  ;;  %v2678_v31 = vadd.f32 %v2649_v37, %v11876_v49  ;;  %v2580_v7 = vpop.f32.mrb[8].mxu0  ;;  %v2651_v8 = vpop.f32.mrb[73].mxu1 }
 0x1e5   : > { %v2794_v48 = vsel %vm1419_vm3, %v2787_v40, %v2793_v6  ;;  %v2717_v19 = vadd.f32 %v11894_v62, %v2580_v7  ;;  %v2582_v21 = vpop.f32.mrb[9].mxu0  ;;  %v2652_v17 = vpop.f32.mrb[74].mxu1  ;;  %v2790_v23 = vsel %vm1419_vm3, %v2782_v20, %v2789_v36  ;;  %v2792_v11 = vsel %vm1419_vm3, %v2785_v13, %v11941_v4 }
 0x1e6   : > { %v11960_v24 = vmax.f32 %v2735_v54, %v2794_v48  ;;  %v11963_v25 = vadd.f32 %v11898_v0, %v2678_v31  ;;  %v11966_v49 = vadd.f32 %v11902_v2, %v2582_v21  ;;  %v2681_v14 = vadd.f32 %v2652_v17, %v11878_v52  ;;  %v2584_v16 = vpop.f32.mrb[10].mxu0  ;;  %v2654_v27 = vpop.f32.mrb[75].mxu1 }
 0x1e7   : > { %v2741_v29 = vmax.f32 %v2717_v19, 0.0  ;;  %v11970_v34 = vadd.f32 %v11894_v62, %v2584_v16  ;;  %v2586_v20 = vpop.f32.mrb[11].mxu0  ;;  %v2851_v50 = vmax.f32 %v2733_v15, %v2790_v23  ;;  %v2852_v13 = vmax.f32 %v2734_v12, %v2792_v11 }
 0x1e8   : > { %v2743_v32 = vmax.f32 %v11963_v25, 0.0  ;;  %v2742_v51 = vmax.f32 %v11966_v49, 0.0  ;;  %v11977_v54 = vadd.f32 %v11898_v0, %v2681_v14  ;;  %v11980_v52 = vadd.f32 %v11902_v2, %v2586_v20  ;;  %v2872_v25 = vld [vmem:[%s14495_s3 + $0x8] sm:$0xff] }
 0x1e9   : > { %v2799_v55 = vrot.slane %v2741_v29, 1  ;;  %v2744_v56 = vmax.f32 %v11970_v34, 0.0  ;;  %v9596_v57 = vpack.c.bf16 %v2851_v50, %v2848_v41  ;;  %v9614_v58 = vpack.c.bf16 %v2852_v13, %v2849_v3 }
 0x1ea   : > { %v11985_v15 = vrot.slane %v2743_v32, 1  ;;  %v2801_v26 = vrot.slane %v2742_v51, 1  ;;  %v2746_v12 = vmax.f32 %v11977_v54, 0.0  ;;  %v2745_v40 = vmax.f32 %v11980_v52, 0.0  ;;  %v2874_v54 = vld [vmem:[%s14495_s3 + $0x18] sm:$0x3f] }
 0x1eb   : > { %v2800_v53 = vsel %vm1419_vm3, %v2793_v6, %v2799_v55  ;;  %v2805_v37 = vrot.slane %v2744_v56, 1  ;;  %9597 = vmatprep.subr.bf16.mxu0 %v9596_v57  ;;  %9615 = vmatprep.subr.bf16.mxu1 %v9614_v58  ;;  %v9598_v31 = vpack.c.bf16 %v2850_v47, %v11920_v38  ;;  %v2657_v41 = vpop.f32.mrb[76].mxu1  ;;  %v2796_v3 = vsel %vm1419_vm3, %v2789_v36, %v2795_v10 }
 0x1ec   : > { %v2856_v7 = vmax.f32 %v2738_v44, %v2800_v53  ;;  %v11996_v8 = vrot.slane %v2746_v12, 1  ;;  %v2807_v48 = vrot.slane %v2745_v40, 1  ;;  %9617 = vmatpush3.bf16.msra.mxu1 %v9614_v58  ;;  %v2684_v19 = vadd.f32 %v2657_v41, %v11880_v18  ;;  %v2590_v6 = vpop.f32.mrb[12].mxu0  ;;  %v2659_v21 = vpop.f32.mrb[77].mxu1 }
 0x1ed   : > { %v2806_v17 = vsel %vm1419_vm3, %v2799_v55, %v2805_v37  ;;  %9599 = vmatpush1.bf16.msra.mxu0 %v9598_v31  ;;  %v2723_v38 = vadd.f32 %v11894_v62, %v2590_v6  ;;  %v2592_v47 = vpop.f32.mrb[13].mxu0  ;;  %v2660_v36 = vpop.f32.mrb[78].mxu1  ;;  %v2802_v44 = vsel %vm1419_vm3, %v2795_v10, %v2801_v26  ;;  %v2854_v23 = vmax.f32 %v2736_v35, %v2796_v3 }
 0x1ee   : > { %v12006_v11 = vmax.f32 %v2741_v29, %v2806_v17  ;;  %v2725_v14 = vadd.f32 %v11898_v0, %v2684_v19  ;;  %v2724_v18 = vadd.f32 %v11902_v2, %v2592_v47  ;;  %v2687_v16 = vadd.f32 %v2660_v36, %v11882_v22  ;;  %v2594_v27 = vpop.f32.mrb[14].mxu0  ;;  %v2662_v34 = vpop.f32.mrb[79].mxu1 }
 0x1ef   : > { %v2747_v20 = vmax.f32 %v2723_v38, 0.0  ;;  %v2726_v50 = vadd.f32 %v11894_v62, %v2594_v27  ;;  %v2596_v13 = vpop.f32.mrb[15].mxu0  ;;  %v2857_v10 = vmax.f32 %v2739_v5, %v2802_v44  ;;  %v2798_v46 = vsel %vm1419_vm3, %v11941_v4, %v11950_v9 }
 0x1f0   : > { %v2749_v35 = vmax.f32 %v2725_v14, 0.0  ;;  %v2748_v29 = vmax.f32 %v2724_v18, 0.0  ;;  %v2728_v55 = vadd.f32 %v11898_v0, %v2687_v16  ;;  %v2727_v57 = vadd.f32 %v11902_v2, %v2596_v13 }
 0x1f1   : > { %v2811_v22 = vrot.slane %v2747_v20, 1  ;;  %v2750_v58 = vmax.f32 %v2726_v50, 0.0  ;;  %v9600_v53 = vpack.c.bf16 %v2857_v10, %v2854_v23  ;;  %v2804_v62 = vsel %vm1419_vm3, %v11950_v9, %v11985_v15  ;;  %v3145_v10 = vld [vmem:[%s14496_s4 + $0x20] sm:$0xff] }
 0x1f2   : > { %v2815_v33 = vrot.slane %v2749_v35, 1  ;;  %v2813_v5 = vrot.slane %v2748_v29, 1  ;;  %v2752_v31 = vmax.f32 %v2728_v55, 0.0  ;;  %v2751_v41 = vmax.f32 %v2727_v57, 0.0 }
 0x1f3   : > { %v2812_v4 = vsel %vm1419_vm3, %v2805_v37, %v2811_v22  ;;  %v2817_v3 = vrot.slane %v2750_v58, 1  ;;  %9601 = vmatprep.subr.bf16.mxu0 %v9600_v53  ;;  %v2855_v0 = vmax.f32 %v2737_v59, %v2798_v46  ;;  %v2858_v2 = vmax.f32 %v2740_v39, %v2804_v62  ;;  %v3147_v46 = vld [vmem:[%s14496_s4 + $0x30] sm:$0xff]  ;;  %v3154_v53 = vld [vmem:[%s14496_s4 + $0x68] sm:$0xff]  ;;  %v3156_v62 = vld [vmem:[%s14496_s4 + $0x78] sm:$0xff] }
 0x1f4   : > { %v2862_v19 = vmax.f32 %v2744_v56, %v2812_v4  ;;  %v2821_v6 = vrot.slane %v2752_v31, 1  ;;  %v2819_v21 = vrot.slane %v2751_v41, 1  ;;  %v9602_v17 = vpack.c.bf16 %v2856_v7, %v11960_v24  ;;  %v3158_v4 = vld [vmem:[%s14496_s4 + $0x88] sm:$0xff] }
 0x1f5   : > { %v2818_v9 = vsel %vm1419_vm3, %v2811_v22, %v2817_v3  ;;  %v2868_v38 = vmax.f32 %v2750_v58, %v2817_v3  ;;  %v9618_v47 = vpack.c.bf16 %v2858_v2, %v2855_v0  ;;  %v2808_v36 = vsel %vm1419_vm3, %v2801_v26, %v2807_v48  ;;  %v3149_v22 = vld [vmem:[%s14496_s4 + $0x40] sm:$0xff]  ;;  %v3151_v58 = vld [vmem:[%s14496_s4 + $0x50] sm:$0xff]  ;;  %v3160_v3 = vld [vmem:[%s14496_s4 + $0x98] sm:$0xff] }
 0x1f6   : > { %v2822_v37 = vsel %vm1419_vm3, %v2815_v33, %v2821_v6  ;;  %v2870_v44 = vmax.f32 %v2752_v31, %v2821_v6  ;;  %v2865_v23 = vmax.f32 %v2747_v20, %v2818_v9  ;;  %v2820_v45 = vsel %vm1419_vm3, %v2813_v5, %v2819_v21  ;;  %9603 = vmatpush1.bf16.msra.mxu0 %v9602_v17  ;;  %v3148_v20 = vld [vmem:[%s14496_s4 + $0x38] sm:$0xff]  ;;  %v3153_v31 = vld [vmem:[%s14496_s4 + $0x60] sm:$0xff]  ;;  %v3159_v6 = vld [vmem:[%s14496_s4 + $0x90] sm:$0xff] }
 0x1f7   : > { %v2867_v59 = vmax.f32 %v2749_v35, %v2822_v37  ;;  %v2866_v30 = vmax.f32 %v2748_v29, %v2820_v45  ;;  %v2869_v39 = vmax.f32 %v2751_v41, %v2819_v21  ;;  %9619 = vmatprep.subr.bf16.mxu1 %v9618_v47  ;;  %v2814_v56 = vsel %vm1419_vm3, %v2807_v48, %v2813_v5  ;;  %v3150_v35 = vld [vmem:[%s14496_s4 + $0x48] sm:$0xff]  ;;  %v3152_v29 = vld [vmem:[%s14496_s4 + $0x58] sm:$0xff]  ;;  %v3155_v41 = vld [vmem:[%s14496_s4 + $0x70] sm:$0xff] }
 0x1f8   : > { %v9611_v24 = vpack.c.bf16 %v2868_v38, %v2865_v23  ;;  %9621 = vmatpush3.bf16.msra.mxu1 %v9618_v47  ;;  %v2860_v7 = vmax.f32 %v2742_v51, %v2808_v36  ;;  %v2863_v26 = vmax.f32 %v2745_v40, %v2814_v56  ;;  %v2810_v14 = vsel %vm1419_vm3, %v11985_v15, %v11996_v8  ;;  %v3144_v15 = vld [vmem:[%s14496_s4 + $0x18] sm:$0xff]  ;;  %v3162_v21 = vld [vmem:[%s14496_s4 + $0xa8] sm:$0xff]  ;;  %v3161_v47 = vld [vmem:[%s14496_s4 + $0xa0] sm:$0xff] }
 0x1f9   : > { %v9626_v18 = vpack.c.bf16 %v2870_v44, %v2867_v59  ;;  %v9608_v16 = vpack.c.bf16 %v2869_v39, %v2866_v30  ;;  %v2816_v27 = vsel %vm1419_vm3, %v11996_v8, %v2815_v33  ;;  %v2861_v48 = vmax.f32 %v2743_v32, %v2810_v14  ;;  %v2873_v32 = vld [vmem:[%s14495_s3 + $0x10] sm:$0xff]  ;;  %v3164_v17 = vld [vmem:[%s14496_s4 + $0xb8] sm:$0xff]  ;;  %v3166_v37 = vld [vmem:[%s14496_s4 + $0xc8] sm:$0xff] }
 0x1fa   : > { %v9604_v34 = vpack.c.bf16 %v2863_v26, %v2860_v7  ;;  %v2864_v49 = vmax.f32 %v2746_v12, %v2816_v27  ;;  %v9606_v51 = vpack.c.bf16 %v2862_v19, %v12006_v11  ;;  %v3141_v12 = vld [vmem:[%s14496_s4] sm:$0xff]  ;;  %v3143_v8 = vld [vmem:[%s14496_s4 + $0x10] sm:$0xff]  ;;  %v3146_v11 = vld [vmem:[%s14496_s4 + $0x28] sm:$0xff]  ;;  %v9638_v55 = vpack.c.bf16 %v3147_v46, %v3145_v10 }
 0x1fb   : > { %v9634_v50 = vpack.c.bf16 %v3143_v8, %v3141_v12  ;;  %v9636_v13 = vpack.c.bf16 %v3148_v20, %v3146_v11  ;;  %v9640_v57 = vpack.c.bf16 %v3152_v29, %v3150_v35  ;;  %v9642_v33 = vpack.c.bf16 %v3151_v58, %v3149_v22  ;;  %v3157_v19 = vld [vmem:[%s14496_s4 + $0x80] sm:$0xff]  ;;  %v3163_v36 = vld [vmem:[%s14496_s4 + $0xb0] sm:$0xff]  ;;  %v3168_v44 = vld [vmem:[%s14496_s4 + $0xd8] sm:$0xff] }
 0x1fc   : > { %9605 = vmatprep.subr.bf16.mxu0 %v9604_v34  ;;  %v9622_v52 = vpack.c.bf16 %v2864_v49, %v2861_v48  ;;  %v9644_v5 = vpack.c.bf16 %v3156_v62, %v3154_v53  ;;  %v9646_v0 = vpack.c.bf16 %v3155_v41, %v3153_v31  ;;  %v9648_v2 = vpack.c.bf16 %v3160_v3, %v3158_v4  ;;  %v3165_v59 = vld [vmem:[%s14496_s4 + $0xc0] sm:$0xff]  ;;  %v3167_v30 = vld [vmem:[%s14496_s4 + $0xd0] sm:$0xff]  ;;  %v3170_v39 = vld [vmem:[%s14496_s4 + $0xe8] sm:$0xff] }
 0x1fd   : > { %9607 = vmatpush1.bf16.msra.mxu0 %v9606_v51  ;;  %v9650_v9 = vpack.c.bf16 %v3159_v6, %v3157_v19  ;;  %v9652_v38 = vpack.c.bf16 %v3164_v17, %v3162_v21  ;;  %v9654_v23 = vpack.c.bf16 %v3163_v36, %v3161_v47  ;;  %v9656_v45 = vpack.c.bf16 %v3168_v44, %v3166_v37  ;;  %v3172_v56 = vld [vmem:[%s14496_s4 + $0xf8] sm:$0xff]  ;;  %v3169_v26 = vld [vmem:[%s14496_s4 + $0xe0] sm:$0xff]  ;;  %v3171_v14 = vld [vmem:[%s14496_s4 + $0xf0] sm:$0xff] }
 0x1fe   : > { %9623 = vmatprep.subr.bf16.mxu1 %v9622_v52  ;;  %9610 = vmatprep.subr.msk.bf16.mxu0 %vm9609_vm8, %v9608_v16  ;;  %v9660_v7 = vpack.c.bf16 %v3172_v56, %v3170_v39  ;;  %v3176_v16 = vld [vmem:[%s14496_s4 + $0x118] sm:$0xff]  ;;  %v9662_v27 = vpack.c.bf16 %v3171_v14, %v3169_v26  ;;  %v3173_v34 = vld [vmem:[%s14496_s4 + $0x100] sm:$0xff]  ;;  %v3175_v49 = vld [vmem:[%s14496_s4 + $0x110] sm:$0xff] }
 0x1ff   : > { %9625 = vmatpush3.bf16.msra.mxu1 %v9622_v52  ;;  %v3178_v51 = vld [vmem:[%s14496_s4 + $0x128] sm:$0xff]  ;;  %v3180_v52 = vld [vmem:[%s14496_s4 + $0x138] sm:$0xff]  ;;  %v3181_v11 = vld [vmem:[%s14496_s4 + $0x140] sm:$0xff] }
 0x200   : > { %9628 = vmatprep.subr.msk.bf16.mxu1 %vm9609_vm8, %v9626_v18  ;;  %v3184_v12 = vld [vmem:[%s14496_s4 + $0x158] sm:$0xff]  ;;  %v3183_v20 = vld [vmem:[%s14496_s4 + $0x150] sm:$0xff]  ;;  %v3185_v35 = vld [vmem:[%s14496_s4 + $0x160] sm:$0xff] }
 0x201   : > { %9613 = vmatpush1.bf16.msk.msra.mxu0 %vm9609_vm8, %v9611_v24  ;;  %v9658_v24 = vpack.c.bf16 %v3167_v30, %v3165_v59  ;;  %v9674_v10 = vpack.c.bf16 %v3183_v20, %v3181_v11  ;;  %v3187_v29 = vld [vmem:[%s14496_s4 + $0x170] sm:$0xff]  ;;  %v3189_v53 = vld [vmem:[%s14496_s4 + $0x180] sm:$0xff]  ;;  %v3200_v19 = vld [vmem:[%s14496_s4 + $0x1d8] sm:$0xff] }
 0x202   : > { %v9678_v22 = vpack.c.bf16 %v3187_v29, %v3185_v35  ;;  %v3191_v62 = vld [vmem:[%s14496_s4 + $0x190] sm:$0xff]  ;;  %v3193_v4 = vld [vmem:[%s14496_s4 + $0x1a0] sm:$0xff]  ;;  %v3204_v47 = vld [vmem:[%s14496_s4 + $0x1f8] sm:$0xff] }
 0x203   : > { %9631 = vmatpush3.bf16.msk.msra.mxu1 %vm9609_vm8, %v9626_v18  ;;  %v3174_v18 = vld [vmem:[%s14496_s4 + $0x108] sm:$0xff]  ;;  %v9682_v31 = vpack.c.bf16 %v3191_v62, %v3189_v53  ;;  %v3195_v3 = vld [vmem:[%s14496_s4 + $0x1b0] sm:$0xff]  ;;  %v3197_v21 = vld [vmem:[%s14496_s4 + $0x1c0] sm:$0xff] }
 0x204   : > { %8829 = vmatmul.mubr.msk.f32.vlgmr.msra.gmra.mrb[16].mxu0 %vm2875_vm5, %v11871_v43  ;;  %v3142_v43 = vld [vmem:[%s14496_s4 + $0x8] sm:$0xff]  ;;  %v9664_v48 = vpack.c.bf16 %v3176_v16, %v3174_v18  ;;  %v3199_v17 = vld [vmem:[%s14496_s4 + $0x1d0] sm:$0xff]  ;;  %v3201_v37 = vld [vmem:[%s14496_s4 + $0x1e0] sm:$0xff] }
 0x205   : > { %2968 = vmatprep.mubr.f32.mxu0 %v10893_v63  ;;  %v9632_v40 = vpack.c.bf16 %v3144_v15, %v3142_v43  ;;  %v3179_v43 = vld [vmem:[%s14496_s4 + $0x130] sm:$0xff]  ;;  %v3182_v15 = vld [vmem:[%s14496_s4 + $0x148] sm:$0xff]  ;;  %v3208_v59 = vld [vmem:[%s14496_s4 + $0x218] sm:$0xff] }
 0x206   : > { %9555 = vmatmul.mubr.msk.f32.vlgmr.msra.gmra.mrb[80].mxu1 %vm2875_vm5, %v2872_v25  ;;  %v9672_v8 = vpack.c.bf16 %v3184_v12, %v3182_v15  ;;  %v3203_v44 = vld [vmem:[%s14496_s4 + $0x1f0] sm:$0xff]  ;;  %v3205_v53 = vld [vmem:[%s14496_s4 + $0x200] sm:$0xff] }
 0x207   : > { %9557 = vmatprep.mubr.msk.f32.mxu1 %vm2875_vm5, %v2873_v32  ;;  %9633 = vmatprep.subr.bf16.mxu0 %v9632_v40  ;;  %v10300_v15 = vld [vmem:[%s14497_s5 + $0x194] ss:$16 sps:$4 sm:$0xff]   ;;  %v10298_v12 = vld [vmem:[%s14497_s5 + $0x190] ss:$16 sps:$4 sm:$0xff]  }
 0x208   : > { %8830 = vmatmul.mubr.msk.f32.gmra.mrb[18].mxu0 %vm2875_vm5, %v2872_v25  ;;  %v9666_v25 = vpack.c.bf16 %v3175_v49, %v3173_v34  ;;  %v10306_v11 = vld [vmem:[%s14497_s5 + $0x1d4] ss:$16 sps:$4 sm:$0xff]   ;;  %v10304_v20 = vld [vmem:[%s14497_s5 + $0x1d0] ss:$16 sps:$4 sm:$0xff]  }
 0x209   : > { %2974 = vmatprep.mubr.f32.mxu0 %v10893_v63  ;;  %9635 = vmatpush1.bf16.msra.mxu0 %v9634_v50  ;;  %v3186_v50 = vld [vmem:[%s14496_s4 + $0x168] sm:$0xff]  ;;  %v10315_v35 = vld [vmem:[%s14497_s5 + $0x234] ss:$16 sps:$4 sm:$0xff]   ;;  %v10313_v29 = vld [vmem:[%s14497_s5 + $0x230] ss:$16 sps:$4 sm:$0xff]  }
 0x20a   : > { %9558 = vmatmul.mubr.msk.f32.gmra.mrb[82].mxu1 %vm2875_vm5, %v2874_v54  ;;  %9637 = vmatprep.subr.bf16.mxu0 %v9636_v13  ;;  %v3188_v13 = vld [vmem:[%s14496_s4 + $0x178] sm:$0xff]  ;;  %v3207_v62 = vld [vmem:[%s14496_s4 + $0x210] sm:$0xff] }
 0x20b   : > { %v9676_v46 = vpack.c.bf16 %v3188_v13, %v3186_v50  ;;  %v10309_v50 = vld [vmem:[%s14497_s5 + $0x1f4] ss:$16 sps:$4 sm:$0xff]   ;;  %v10307_v13 = vld [vmem:[%s14497_s5 + $0x1f0] ss:$16 sps:$4 sm:$0xff]  }
 0x20c   : > { %8831 = vmatmul.mubr.msk.f32.gmra.mrb[20].mxu0 %vm2875_vm5, %v2873_v32  ;;  %v9668_v32 = vpack.c.bf16 %v3180_v52, %v3178_v51 }
 0x20d   : > { %2980 = vmatprep.mubr.f32.mxu0 %v10893_v63  ;;  %9639 = vmatpush1.bf16.msra.mxu0 %v9638_v55  ;;  %v3190_v55 = vld [vmem:[%s14496_s4 + $0x188] sm:$0xff] }
 0x20e   : > { %9641 = vmatprep.subr.bf16.mxu0 %v9640_v57  ;;  %v3192_v57 = vld [vmem:[%s14496_s4 + $0x198] sm:$0xff] }
 0x20f   : > { %v9680_v58 = vpack.c.bf16 %v3192_v57, %v3190_v55 }
 0x210   : > { %8832 = vmatmul.mubr.msk.f32.gmra.mrb[22].mxu0 %vm2875_vm5, %v2874_v54  ;;  %v3177_v54 = vld [vmem:[%s14496_s4 + $0x120] sm:$0xff]  ;;  %vm8197_vm5 = vcmask 982016  }
 0x211   : > { %9643 = vmatpush1.bf16.msra.mxu0 %v9642_v33  ;;  %v9670_v40 = vpack.c.bf16 %v3179_v43, %v3177_v54  ;;  %v3194_v33 = vld [vmem:[%s14496_s4 + $0x1a8] sm:$0xff]  ;;  %v10295_v54 = vld [vmem:[%s14497_s5 + $0x170] ss:$16 sps:$4 sm:$0xff]   ;;  %v10297_v43 = vld [vmem:[%s14497_s5 + $0x174] ss:$16 sps:$4 sm:$0xff]  }
 0x212   : > { %9645 = vmatprep.subr.bf16.mxu0 %v9644_v5  ;;  %v3196_v5 = vld [vmem:[%s14496_s4 + $0x1b8] sm:$0xff]  ;;  %3807 = vmatprep.subr.bf16.mxu1 %v10297_v43 }
 0x213   : > { %v9684_v41 = vpack.c.bf16 %v3196_v5, %v3194_v33  ;;  %3808 = vmatpush1.bf16.msra.mxu1 %v10295_v54 }
 0x214   : > { %3809 = vmatprep.subr.bf16.mxu1 %v10300_v15 }
 0x215   : > { %9647 = vmatpush1.bf16.msra.mxu0 %v9646_v0  ;;  %v3198_v0 = vld [vmem:[%s14496_s4 + $0x1c8] sm:$0xff] }
 0x216   : > { %9649 = vmatprep.subr.bf16.mxu0 %v9648_v2  ;;  %v9686_v2 = vpack.c.bf16 %v3195_v3, %v3193_v4  ;;  %v9688_v6 = vpack.c.bf16 %v3200_v19, %v3198_v0  ;;  %v3212_v4 = vld [vmem:[%s14496_s4 + $0x238] sm:$0xff] }
 0x217   : > { %3810 = vmatpush1.bf16.msra.mxu1 %v10298_v12  ;;  %v3220_v12 = vld [vmem:[%s14496_s4 + $0x278] sm:$0xff] }
 0x219   : > { %9651 = vmatpush1.bf16.msra.mxu0 %v9650_v9  ;;  %v3202_v9 = vld [vmem:[%s14496_s4 + $0x1e8] sm:$0xff] }
 0x21a   : > { %9653 = vmatprep.subr.bf16.mxu0 %v9652_v38  ;;  %v9690_v38 = vpack.c.bf16 %v3199_v17, %v3197_v21  ;;  %v9692_v36 = vpack.c.bf16 %v3204_v47, %v3202_v9  ;;  %v3211_v47 = vld [vmem:[%s14496_s4 + $0x230] sm:$0xff] }
 0x21d   : > { %9655 = vmatpush1.bf16.msra.mxu0 %v9654_v23  ;;  %v9694_v23 = vpack.c.bf16 %v3203_v44, %v3201_v37 }
 0x21e   : > { %9657 = vmatprep.subr.bf16.mxu0 %v9656_v45  ;;  %v3206_v45 = vld [vmem:[%s14496_s4 + $0x208] sm:$0xff] }
 0x21f   : > { %v9696_v30 = vpack.c.bf16 %v3208_v59, %v3206_v45  ;;  %v3214_v45 = vld [vmem:[%s14496_s4 + $0x248] sm:$0xff]  ;;  %v3216_v59 = vld [vmem:[%s14496_s4 + $0x258] sm:$0xff] }
 0x221   : > { %9659 = vmatpush1.bf16.msra.mxu0 %v9658_v24 }
 0x222   : > { %9661 = vmatprep.subr.bf16.mxu0 %v9660_v7 }
 0x225   : > { %9663 = vmatpush1.bf16.msra.mxu0 %v9662_v27 }
 0x226   : > { %9665 = vmatprep.subr.bf16.mxu0 %v9664_v48 }
 0x229   : > { %9667 = vmatpush1.bf16.msra.mxu0 %v9666_v25 }
 0x22a   : > { %9669 = vmatprep.subr.bf16.mxu0 %v9668_v32 }
 0x22d   : > { %9671 = vmatpush1.bf16.msra.mxu0 %v9670_v40  ;;  %v10303_v40 = vld [vmem:[%s14497_s5 + $0x1b4] ss:$16 sps:$4 sm:$0xff]  }
 0x22e   : > { %9673 = vmatprep.subr.bf16.mxu0 %v9672_v8  ;;  %v10301_v8 = vld [vmem:[%s14497_s5 + $0x1b0] ss:$16 sps:$4 sm:$0xff]   ;;  %3811 = vmatprep.subr.bf16.mxu1 %v10303_v40 }
 0x22f   : > { %3812 = vmatpush1.bf16.msra.mxu1 %v10301_v8 }
 0x230   : > { %3813 = vmatprep.subr.bf16.mxu1 %v10306_v11 }
 0x231   : > { %9675 = vmatpush1.bf16.msra.mxu0 %v9674_v10  ;;  %v10312_v10 = vld [vmem:[%s14497_s5 + $0x214] ss:$16 sps:$4 sm:$0xff]  }
 0x232   : > { %9677 = vmatprep.subr.bf16.mxu0 %v9676_v46  ;;  %v10310_v46 = vld [vmem:[%s14497_s5 + $0x210] ss:$16 sps:$4 sm:$0xff]  }
 0x233   : > { %3814 = vmatpush1.bf16.msra.mxu1 %v10304_v20 }
 0x234   : > { %3815 = vmatprep.subr.bf16.mxu1 %v10309_v50 }
 0x235   : > { %9679 = vmatpush1.bf16.msra.mxu0 %v9678_v22 }
 0x236   : > { %9681 = vmatprep.subr.bf16.mxu0 %v9680_v58 }
 0x237   : > { %3816 = vmatpush1.bf16.msra.mxu1 %v10307_v13 }
 0x238   : > { %3817 = vmatprep.subr.bf16.mxu1 %v10312_v10  ;;  %v3217_v10 = vld [vmem:[%s14496_s4 + $0x260] sm:$0xff] }
 0x239   : > { %9683 = vmatpush1.bf16.msra.mxu0 %v9682_v31 }
 0x23a   : > { %9685 = vmatprep.subr.bf16.mxu0 %v9684_v41  ;;  %v3210_v41 = vld [vmem:[%s14496_s4 + $0x228] sm:$0xff] }
 0x23b   : > { %3818 = vmatpush1.bf16.msra.mxu1 %v10310_v46  ;;  %v9700_v9 = vpack.c.bf16 %v3212_v4, %v3210_v41  ;;  %v3219_v46 = vld [vmem:[%s14496_s4 + $0x270] sm:$0xff]  ;;  %v3225_v4 = vld [vmem:[%s14496_s4 + $0x2a0] sm:$0xff] }
 0x23c   : > { %3819 = vmatprep.subr.bf16.mxu1 %v10315_v35 }
 0x23d   : > { %9687 = vmatpush1.bf16.msra.mxu0 %v9686_v2 }
 0x23e   : > { %9689 = vmatprep.subr.bf16.mxu0 %v9688_v6  ;;  %v9698_v6 = vpack.c.bf16 %v3207_v62, %v3205_v53  ;;  %v3223_v62 = vld [vmem:[%s14496_s4 + $0x290] sm:$0xff] }
 0x23f   : > { %3820 = vmatpush1.bf16.msra.mxu1 %v10313_v29 }
 0x241   : > { %9691 = vmatpush1.bf16.msra.mxu0 %v9690_v38  ;;  %v3209_v38 = vld [vmem:[%s14496_s4 + $0x220] sm:$0xff] }
 0x242   : > { %9693 = vmatprep.subr.bf16.mxu0 %v9692_v36 }
 0x245   : > { %9695 = vmatpush1.bf16.msra.mxu0 %v9694_v23 }
 0x246   : > { %9697 = vmatprep.subr.bf16.mxu0 %v9696_v30 }
 0x2d7   : > { %v12267_v39 = vpop.f32.mrb[16].mxu0 }
 0x2d8   : > { %v12269_v56 = vpop.f32.mrb[17].mxu0 }
 0x2d9   : > { %v12271_v24 = vpop.f32.mrb[80].mxu1  ;;  %v10025_v7 = vpack.i.bf16 %v12267_v39, %v12269_v56 }
 0x2da   : > { %3094 = vrot.lane.b32.xlu1 %v12271_v24, %s10895_s17  ;;  %v12276_v26 = vpop.f32.mrb[81].mxu1 }
 0x2db   : > { %10026 = vrot.lane.b32.xlu0 %v10025_v7, %s10895_s17  ;;  %v12278_v14 = vpop.f32.mrb[18].mxu0 }
 0x2dc   : > { %v12280_v18 = vpop.f32.mrb[19].mxu0 }
 0x2dd   : > { %v10030_v16 = vpack.i.bf16 %v12278_v14, %v12280_v18  ;;  %v12284_v27 = vpop.f32.mrb[82].mxu1 }
 0x2de   : > { %v12286_v48 = vpop.f32.mrb[83].mxu1 }
 0x2df   : > { %3088 = vrot.lane.b32.xlu0 %v12276_v26, %s10895_s17  ;;  %10031 = vrot.lane.b32.xlu1 %v10030_v16, %s10895_s17  ;;  %v12289_v34 = vpop.f32.mrb[20].mxu0  ;;  %v9704_v16 = vpack.c.bf16 %v3216_v59, %v3214_v45  ;;  %v10332_v45 = vld [vmem:[%s14497_s5 + $0x17c] ss:$16 sps:$4 sm:$0xff]  }
 0x2e0   : > { %v12291_v49 = vpop.f32.mrb[21].mxu0 }
 0x2e1   : > { %v10035_v51 = vpack.i.bf16 %v12289_v34, %v12291_v49 }
 0x2e3   : > { %3100 = vrot.lane.b32.xlu1 %v12286_v48, %s10895_s17  ;;  %10036 = vrot.lane.b32.xlu0 %v10035_v51, %s10895_s17  ;;  %v12296_v52 = vpop.f32.mrb[22].mxu0  ;;  %v3213_v51 = vld [vmem:[%s14496_s4 + $0x240] sm:$0xff] }
 0x2e4   : > { %v12298_v25 = vpop.f32.mrb[23].mxu0 }
 0x2e5   : > { %v10040_v32 = vpack.i.bf16 %v12296_v52, %v12298_v25 }
 0x2e7   : > { %3106 = vrot.lane.b32.xlu1 %v12284_v27, %s10895_s17  ;;  %10041 = vrot.lane.b32.xlu0 %v10040_v32, %s10895_s17  ;;  %v3215_v32 = vld [vmem:[%s14496_s4 + $0x250] sm:$0xff]  ;;  %s10834_s17 = scalar_lea.vmem %s10833_s16, 32 }
 0x2e8   : > { %v9706_v20 = vpack.c.bf16 %v3215_v32, %v3213_v51  ;;  %p10836_p1 = scmp.lt.s32.totalorder %s10834_s17, %s10828_s20 }
 0x2ea   : > { %p10837_p2 = por %p10836_p1, %p10835_p0 }
 0x2ec   : > { %p10838_p3 = pnand %p10837_p2, %p10831_p13 }
 0x34c   : > { %v12345_v55 = vpop.permute.xlu1 %3094 }
 0x34d   : > { %v10027_v57 = vpop.permute.xlu0 %10026 }
 0x34e   : > { %v10029_v22 = vunpack.i.h.bf16 %v10027_v57  ;;  %v10028_v58 = vunpack.i.l.bf16 %v10027_v57  ;;  %v3222_v57 = vld [vmem:[%s14496_s4 + $0x288] sm:$0xff] }
 0x350   : > { %v3109_v33 = vsel %vm3108_vm9, %v10029_v22, %v10028_v58  ;;  %v9710_v22 = vpack.c.bf16 %v3219_v46, %v3217_v10 }
 0x351   : > { %v12354_v5 = vpop.permute.xlu0 %3088  ;;  %v10032_v31 = vpop.permute.xlu1 %10031  ;;  %v3129_v21 = vmax.f32 %v12267_v39, %v3109_v33  ;;  %v3226_v33 = vld [vmem:[%s14496_s4 + $0x2a8] sm:$0xff] }
 0x352   : > { %v3110_v3 = vsel %vm3108_vm9, %v10028_v58, %v12354_v5  ;;  %v10034_v0 = vunpack.i.h.bf16 %v10032_v31  ;;  %v10033_v2 = vunpack.i.l.bf16 %v10032_v31  ;;  %v3228_v31 = vld [vmem:[%s14496_s4 + $0x2b8] sm:$0xff] }
 0x353   : > { %v3130_v19 = vmax.f32 %v12269_v56, %v3110_v3  ;;  %v9702_v56 = vpack.c.bf16 %v3211_v47, %v3209_v38  ;;  %v9716_v41 = vpack.c.bf16 %v3228_v31, %v3226_v33  ;;  %v3227_v3 = vld [vmem:[%s14496_s4 + $0x2b0] sm:$0xff] }
 0x354   : > { %v3112_v17 = vsel %vm3108_vm9, %v10033_v2, %v12345_v55  ;;  %v3111_v23 = vsel %vm3108_vm9, %v10034_v0, %v10033_v2  ;;  %v9718_v0 = vpack.c.bf16 %v3227_v3, %v3225_v4  ;;  %v3230_v2 = vld [vmem:[%s14496_s4 + $0x2c8] sm:$0x3]  ;;  %v10325_v38 = vld [vmem:[%s14497_s5 + $0x2b0] ss:$16 sps:$4 sm:$0xff]   ;;  %v10327_v47 = vld [vmem:[%s14497_s5 + $0x2b4] ss:$16 sps:$4 sm:$0xff]  }
 0x355   : > { %3315 = vmatprep.mubr.f32.mxu0 %v3130_v19  ;;  %v12374_v36 = vpop.permute.xlu1 %3100  ;;  %v10037_v37 = vpop.permute.xlu0 %10036  ;;  %v3133_v44 = vmax.f32 %v12280_v18, %v3112_v17  ;;  %v3132_v7 = vmax.f32 %v12278_v14, %v3111_v23  ;;  %v3218_v14 = vld [vmem:[%s14496_s4 + $0x268] sm:$0xff]  ;;  %v3229_v19 = vld [vmem:[%s14496_s4 + $0x2c0] sm:$0x3] }
 0x356   : > { %v10039_v30 = vunpack.i.h.bf16 %v10037_v37  ;;  %v10038_v39 = vunpack.i.l.bf16 %v10037_v37  ;;  %3316 = vmatmul.mubr.f32.vlgmr.msra.gmra.mrb[24].mxu0 %v3129_v21  ;;  %v9708_v13 = vpack.c.bf16 %v3220_v12, %v3218_v14  ;;  %v3134_v21 = vmax.f32 %v12271_v24, %v12345_v55  ;;  %v10318_v24 = vld [vmem:[%s14497_s5 + $0x254] ss:$16 sps:$4 sm:$0xff]   ;;  %v10322_v55 = vld [vmem:[%s14497_s5 + $0x290] ss:$16 sps:$4 sm:$0xff]  }
 0x357   : > { %9699 = vmatpush1.bf16.msra.mxu0 %v9698_v6  ;;  %3321 = vmatprep.mubr.f32.mxu0 %v3133_v44  ;;  %v3131_v6 = vmax.f32 %v12276_v26, %v12354_v5  ;;  %v3137_v17 = vmax.f32 %v12286_v48, %v12374_v36  ;;  %v10316_v26 = vld [vmem:[%s14497_s5 + $0x250] ss:$16 sps:$4 sm:$0xff]   ;;  %v10324_v5 = vld [vmem:[%s14497_s5 + $0x294] ss:$16 sps:$4 sm:$0xff]  }
 0x358   : > { %9701 = vmatprep.subr.bf16.mxu0 %v9700_v9  ;;  %v3114_v18 = vsel %vm3108_vm9, %v10038_v39, %v12374_v36  ;;  %v3113_v15 = vsel %vm3108_vm9, %v10039_v30, %v10038_v39  ;;  %3821 = vmatprep.subr.bf16.mxu1 %v10318_v24  ;;  %v10319_v48 = vld [vmem:[%s14497_s5 + $0x270] ss:$16 sps:$4 sm:$0xff]   ;;  %v10336_v24 = vld [vmem:[%s14497_s5 + $0x1b8] ss:$16 sps:$4 sm:$0xff]  }
 0x359   : > { %v10042_v54 = vpop.permute.xlu0 %10041  ;;  %v3136_v43 = vmax.f32 %v12291_v49, %v3114_v18  ;;  %v3107_v11 = vpop.permute.xlu1 %3106  ;;  %v3135_v49 = vmax.f32 %v12289_v34, %v3113_v15  ;;  %v3224_v34 = vld [vmem:[%s14496_s4 + $0x298] sm:$0xff]  ;;  %3822 = vmatpush1.bf16.msra.mxu1 %v10316_v26  ;;  %v8888_v36 = vld [vmem:[%s14497_s5 + $0x2d0] sm:$0x33] }
 0x35a   : > { %v10044_v40 = vunpack.i.h.bf16 %v10042_v54  ;;  %v10043_v8 = vunpack.i.l.bf16 %v10042_v54  ;;  %3322 = vmatmul.mubr.f32.gmra.mrb[26].mxu0 %v3132_v7  ;;  %v9712_v53 = vpack.c.bf16 %v3224_v34, %v3222_v57  ;;  %v3140_v9 = vmax.f32 %v12284_v27, %v3107_v11  ;;  %v10321_v27 = vld [vmem:[%s14497_s5 + $0x274] ss:$16 sps:$4 sm:$0xff]   ;;  %v10338_v26 = vld [vmem:[%s14497_s5 + $0x1bc] ss:$16 sps:$4 sm:$0xff]  }
 0x35b   : > { %9703 = vmatpush1.bf16.msra.mxu0 %v9702_v56  ;;  %3327 = vmatprep.mubr.f32.mxu0 %v3136_v43  ;;  %v8935_v37 = vcombine.high %v8888_v36, %v8888_v36  ;;  %v8934_v44 = vcombine.low %v8888_v36, %v8888_v36  ;;  %v10345_v36 = vld [vmem:[%s14497_s5 + $0x218] ss:$16 sps:$4 sm:$0xff]  }
 0x35c   : > { %9705 = vmatprep.subr.bf16.mxu0 %v9704_v16  ;;  %v3116_v50 = vsel %vm3108_vm9, %v10043_v8, %v3107_v11  ;;  %v3115_v29 = vsel %vm3108_vm9, %v10044_v40, %v10043_v8  ;;  %3823 = vmatprep.subr.bf16.mxu1 %v10321_v27  ;;  %v10341_v27 = vld [vmem:[%s14497_s5 + $0x1dc] ss:$16 sps:$4 sm:$0xff]  }
 0x35d   : > { %v3139_v35 = vmax.f32 %v12298_v25, %v3116_v50  ;;  %v3138_v58 = vmax.f32 %v12296_v52, %v3115_v29  ;;  %v3221_v25 = vld [vmem:[%s14496_s4 + $0x280] sm:$0xff]  ;;  %3824 = vmatpush1.bf16.msra.mxu1 %v10319_v48  ;;  %v3796_v23 = vsel %vm3244_vm10, %v8934_v44, 0  ;;  %v10348_v44 = vld [vmem:[%s14497_s5 + $0x238] ss:$16 sps:$4 sm:$0xff]  }
 0x35e   : > { %3328 = vmatmul.mubr.f32.gmra.mrb[28].mxu0 %v3135_v49  ;;  %v9714_v52 = vpack.c.bf16 %v3223_v62, %v3221_v25  ;;  %3825 = vmatprep.subr.bf16.mxu1 %v10324_v5  ;;  %v10344_v5 = vld [vmem:[%s14497_s5 + $0x1fc] ss:$16 sps:$4 sm:$0xff]  }
 0x35f   : > { %9707 = vmatpush1.bf16.msra.mxu0 %v9706_v20  ;;  %3333 = vmatprep.mubr.f32.mxu0 %v3139_v35 }
 0x360   : > { %9709 = vmatprep.subr.bf16.mxu0 %v9708_v13 }
 0x361   : > { %3826 = vmatpush1.bf16.msra.mxu1 %v10322_v55  ;;  %v10339_v55 = vld [vmem:[%s14497_s5 + $0x1d8] ss:$16 sps:$4 sm:$0xff]  }
 0x362   : > { %3334 = vmatmul.mubr.f32.gmra.mrb[30].mxu0 %v3138_v58  ;;  %3827 = vmatprep.subr.bf16.mxu1 %v10327_v47  ;;  %v10347_v47 = vld [vmem:[%s14497_s5 + $0x21c] ss:$16 sps:$4 sm:$0xff]  }
 0x363   : > { %9711 = vmatpush1.bf16.msra.mxu0 %v9710_v22  ;;  %3404 = vmatprep.mubr.f32.mxu0 %v10893_v63 }
 0x364   : > { %9713 = vmatprep.subr.bf16.mxu0 %v9712_v53 }
 0x365   : > { %3828 = vmatpush1.bf16.msra.mxu1 %v10325_v38  ;;  %v10342_v38 = vld [vmem:[%s14497_s5 + $0x1f8] ss:$16 sps:$4 sm:$0xff]  }
 0x366   : > { %8938 = vmatprep.subr.msk.bf16.mxu1 %vm3244_vm10, %v8935_v37  ;;  %v10350_v37 = vld [vmem:[%s14497_s5 + $0x23c] ss:$16 sps:$4 sm:$0xff]  }
 0x367   : > { %9715 = vmatpush1.bf16.msra.mxu0 %v9714_v52  ;;  %v10330_v52 = vld [vmem:[%s14497_s5 + $0x178] ss:$16 sps:$4 sm:$0xff]  }
 0x368   : > { %9717 = vmatprep.subr.bf16.mxu0 %v9716_v41 }
 0x369   : > { %3830 = vmatpush1.bf16.msra.mxu1 %v3796_v23  ;;  %v10353_v23 = vld [vmem:[%s14497_s5 + $0x25c] ss:$16 sps:$4 sm:$0xff]  }
 0x36a   : > { %3860 = vmatprep.subr.bf16.mxu1 %v10332_v45  ;;  %v10351_v45 = vld [vmem:[%s14497_s5 + $0x258] ss:$16 sps:$4 sm:$0xff]  }
 0x36b   : > { %9719 = vmatpush1.bf16.msra.mxu0 %v9718_v0 }
 0x36c   : > { %8838 = vmatprep.subr.msk.mxu0 %vm3244_vm10, %v3230_v2 }
 0x36f   : > { %8839 = vmatpush1.msk.msra.mxu0 %vm3244_vm10, %v3229_v19  ;;  %v10335_v19 = vld [vmem:[%s14497_s5 + $0x19c] ss:$16 sps:$4 sm:$0xff]  }
 0x370   : > { %8840 = vmatmul.mubr.msk.f32.vlgmr.msra.gmra.mrb[24].mxu0 %vm3231_vm11, %v3131_v6 }
 0x371   : > { %3410 = vmatprep.mubr.f32.mxu0 %v10893_v63 }
 0x374   : > { %8841 = vmatmul.mubr.msk.f32.gmra.mrb[26].mxu0 %vm3231_vm11, %v3134_v21 }
 0x375   : > { %3416 = vmatprep.mubr.f32.mxu0 %v10893_v63 }
 0x378   : > { %8842 = vmatmul.mubr.msk.f32.gmra.mrb[28].mxu0 %vm3231_vm11, %v3137_v17 }
 0x379   : > { %3422 = vmatprep.mubr.f32.mxu0 %v10893_v63 }
 0x37c   : > { %8843 = vmatmul.mubr.msk.f32.gmra.mrb[30].mxu0 %vm3231_vm11, %v3140_v9  ;;  %v10333_v9 = vld [vmem:[%s14497_s5 + $0x198] ss:$16 sps:$4 sm:$0xff]  }
 0x37d   : > { %5768 = vmatprep.mubr.f32.mxu0 %v10893_v63 }
 0x443   : > { %v3406_v59 = vpop.f32.mrb[24].mxu0 }
 0x444   : > { %v3408_v30 = vpop.f32.mrb[25].mxu0 }
 0x447   : > { %v3412_v39 = vpop.f32.mrb[26].mxu0 }
 0x448   : > { %v12488_v56 = vpack.c.bf16 %v3412_v39, %v3406_v59  ;;  %v3414_v7 = vpop.f32.mrb[27].mxu0  ;;  %v10356_v59 = vld [vmem:[%s14497_s5 + $0x27c] ss:$16 sps:$4 sm:$0xff]  }
 0x449   : > { %v12490_v18 = vpack.c.bf16 %v3414_v7, %v3408_v30  ;;  %v10354_v30 = vld [vmem:[%s14497_s5 + $0x278] ss:$16 sps:$4 sm:$0xff]   ;;  %v10359_v39 = vld [vmem:[%s14497_s5 + $0x29c] ss:$16 sps:$4 sm:$0xff]  }
 0x44a   : > { %v3527_v16 = vshrl.u32 %v12488_v56, 16  ;;  %v3529_v51 = vshll.u32 %v12488_v56, 16  ;;  %v10357_v7 = vld [vmem:[%s14497_s5 + $0x298] ss:$16 sps:$4 sm:$0xff]  }
 0x44b   : > { %v3418_v32 = vpop.f32.mrb[28].mxu0  ;;  %v3539_v54 = vshrl.u32 %v12490_v18, 16  ;;  %v3541_v43 = vshll.u32 %v12490_v18, 16 }
 0x44c   : > { %v3420_v15 = vpop.f32.mrb[29].mxu0  ;;  %v4741_v14 = vrot.slane %v3527_v16, 1  ;;  %v4742_v12 = vrot.slane %v3529_v51, 2  ;;  %v3531_v35 = vrot.slane %v3529_v51, 1  ;;  %v8889_v51 = vld [vmem:[%s14497_s5 + $0x2d8] sm:$0x33] }
 0x44d   : > { %v12496_v40 = vrot.slane %v3539_v54, 1  ;;  %v12498_v8 = vrot.slane %v3541_v43, 2  ;;  %v3543_v46 = vrot.slane %v3541_v43, 1  ;;  %v8936_v43 = vcombine.low %v8889_v51, %v8889_v51 }
 0x44e   : > { %v4743_v11 = vor.u32 %v4742_v12, %v4741_v14  ;;  %v3532_v41 = vor.u32 %v3531_v35, %v3527_v16  ;;  %v10362_v16 = vld [vmem:[%s14497_s5 + $0x2bc] ss:$16 sps:$4 sm:$0xff]   ;;  %v10367_v14 = vld [vmem:[%s14497_s5 + $0x4] ss:$16 sps:$4 sm:$0xff]   ;;  %v10365_v12 = vld [vmem:[%s14497_s5] ss:$16 sps:$4 sm:$0xff]  }
 0x44f   : > { %v3424_v20 = vpop.f32.mrb[30].mxu0  ;;  %v4750_v49 = vor.u32 %v12498_v8, %v12496_v40  ;;  %v3544_v62 = vor.u32 %v3543_v46, %v3539_v54  ;;  %v8937_v54 = vcombine.high %v8889_v51, %v8889_v51  ;;  %v10371_v46 = vld [vmem:[%s14497_s5 + $0x40] ss:$16 sps:$4 sm:$0xff]   ;;  %v10376_v35 = vld [vmem:[%s14497_s5 + $0x64] ss:$16 sps:$4 sm:$0xff]  }
 0x450   : > { %v12502_v50 = vpack.c.bf16 %v3424_v20, %v3418_v32  ;;  %v3426_v13 = vpop.f32.mrb[31].mxu0  ;;  %v10360_v32 = vld [vmem:[%s14497_s5 + $0x2b8] ss:$16 sps:$4 sm:$0xff]   ;;  %v10368_v20 = vld [vmem:[%s14497_s5 + $0x20] ss:$16 sps:$4 sm:$0xff]  }
 0x451   : > { %v12504_v10 = vpack.c.bf16 %v3426_v13, %v3420_v15  ;;  %v3802_v15 = vsel %vm3244_vm10, %v8936_v43, 0  ;;  %v10373_v13 = vld [vmem:[%s14497_s5 + $0x44] ss:$16 sps:$4 sm:$0xff]   ;;  %v10424_v51 = vld [vmem:[%s14497_s5 + $0x108] ss:$16 sps:$4 sm:$0xff]  }
 0x452   : > { %v3534_v29 = vshll.u32 %v12502_v50, 16  ;;  %v3550_v57 = vshrl.u32 %v12502_v50, 16  ;;  %v10432_v43 = vld [vmem:[%s14497_s5 + $0x14c] ss:$16 sps:$4 sm:$0xff]   ;;  %v10522_v40 = vld [vmem:[%s14497_s5 + $0x4f4] ss:$16 sps:$4 sm:$0xff]  }
 0x453   : > { %v3546_v34 = vshll.u32 %v12504_v10, 16  ;;  %v3553_v22 = vshrl.u32 %v12504_v10, 16  ;;  %v10520_v8 = vld [vmem:[%s14497_s5 + $0x4f0] ss:$16 sps:$4 sm:$0xff]  }
 0x454   : > { %v3536_v58 = vrot.slane %v3534_v29, 1  ;;  %v4744_v53 = vrot.slane %v3550_v57, 1  ;;  %v4745_v25 = vrot.slane %v3534_v29, 2  ;;  %v10374_v29 = vld [vmem:[%s14497_s5 + $0x60] ss:$16 sps:$4 sm:$0xff]  }
 0x455   : > { %v3548_v33 = vrot.slane %v3546_v34, 1  ;;  %v4751_v31 = vrot.slane %v3553_v22, 1  ;;  %v4752_v3 = vrot.slane %v3546_v34, 2  ;;  %v10377_v34 = vld [vmem:[%s14497_s5 + $0x80] ss:$16 sps:$4 sm:$0xff]  }
 0x456   : > { %v12513_v4 = vor.u32 %v4745_v25, %v4744_v53  ;;  %v3537_v6 = vsel %vm614_vm0, %v3532_v41, %v3536_v58  ;;  %v3552_v48 = vor.u32 %v3550_v57, %v3536_v58  ;;  %v10379_v57 = vld [vmem:[%s14497_s5 + $0x84] ss:$16 sps:$4 sm:$0xff]   ;;  %v10380_v58 = vld [vmem:[%s14497_s5 + $0xa0] ss:$16 sps:$4 sm:$0xff]  }
 0x457   : > { %v3549_v0 = vsel %vm614_vm0, %v3544_v62, %v3548_v33  ;;  %v3555_v2 = vor.u32 %v3553_v22, %v3548_v33  ;;  %v12521_v21 = vor.u32 %v4752_v3, %v4751_v31  ;;  %v10382_v22 = vld [vmem:[%s14497_s5 + $0xa4] ss:$16 sps:$4 sm:$0xff]   ;;  %v10383_v25 = vld [vmem:[%s14497_s5 + $0xc0] ss:$16 sps:$4 sm:$0xff]   ;;  %vm5882_vm0 = vcmask 916480  }
 0x458   : > { %8939 = vmatprep.mubr.msk.bf16.mxu1 %vm3788_vm12, %v3549_v0  ;;  %v12525_v17 = vsel %vm1853_vm2, %v4743_v11, %v12513_v4  ;;  %v10370_v11 = vld [vmem:[%s14497_s5 + $0x24] ss:$16 sps:$4 sm:$0xff]   ;;  %v10386_v33 = vld [vmem:[%s14497_s5 + $0xe0] ss:$16 sps:$4 sm:$0xff]  }
 0x459   : > { %3840 = vmatmul.mubr.bf16.vlgmr.msra.gmra.mrb[84].mxu1 %v3537_v6  ;;  %v10385_v53 = vld [vmem:[%s14497_s5 + $0xc4] ss:$16 sps:$4 sm:$0xff]   ;;  %v10392_v3 = vld [vmem:[%s14497_s5 + $0x120] ss:$16 sps:$4 sm:$0xff]  }
 0x45a   : > { %3861 = vmatpush1.bf16.msra.mxu1 %v10330_v52  ;;  %8940 = vmatprep.mubr.msk.bf16.mxu1 %vm3788_vm12, %v3555_v2  ;;  %v10388_v62 = vld [vmem:[%s14497_s5 + $0xe4] ss:$16 sps:$4 sm:$0xff]   ;;  %v10389_v52 = vld [vmem:[%s14497_s5 + $0x100] ss:$16 sps:$4 sm:$0xff]  }
 0x45b   : > { %3862 = vmatprep.subr.bf16.mxu1 %v10335_v19  ;;  %v10391_v31 = vld [vmem:[%s14497_s5 + $0x104] ss:$16 sps:$4 sm:$0xff]   ;;  %v10395_v19 = vld [vmem:[%s14497_s5 + $0x140] ss:$16 sps:$4 sm:$0xff]  }
 0x45c   : > { %v10394_v41 = vld [vmem:[%s14497_s5 + $0x124] ss:$16 sps:$4 sm:$0xff]  }
 0x45e   : > { %3863 = vmatpush1.bf16.msra.mxu1 %v10333_v9 }
 0x45f   : > { %3864 = vmatprep.subr.bf16.mxu1 %v10338_v26 }
 0x461   : > { %3850 = vmatmul.mubr.bf16.gmra.mrb[88].mxu1 %v3552_v48 }
 0x462   : > { %3865 = vmatpush1.bf16.msra.mxu1 %v10336_v24  ;;  %8942 = vmatprep.mubr.msk.bf16.mxu1 %vm3788_vm12, %v3549_v0  ;;  %v10397_v0 = vld [vmem:[%s14497_s5 + $0x144] ss:$16 sps:$4 sm:$0xff]   ;;  %v10402_v24 = vld [vmem:[%s14497_s5 + $0xc] ss:$16 sps:$4 sm:$0xff]  }
 0x463   : > { %3866 = vmatprep.subr.bf16.mxu1 %v10341_v27  ;;  %v10405_v27 = vld [vmem:[%s14497_s5 + $0x2c] ss:$16 sps:$4 sm:$0xff]  }
 0x466   : > { %3867 = vmatpush1.bf16.msra.mxu1 %v10339_v55  ;;  %v10403_v55 = vld [vmem:[%s14497_s5 + $0x28] ss:$16 sps:$4 sm:$0xff]  }
 0x467   : > { %3868 = vmatprep.subr.bf16.mxu1 %v10344_v5  ;;  %v10408_v5 = vld [vmem:[%s14497_s5 + $0x4c] ss:$16 sps:$4 sm:$0xff]  }
 0x46a   : > { %3869 = vmatpush1.bf16.msra.mxu1 %v10342_v38  ;;  %v10406_v38 = vld [vmem:[%s14497_s5 + $0x48] ss:$16 sps:$4 sm:$0xff]  }
 0x46b   : > { %3870 = vmatprep.subr.bf16.mxu1 %v10347_v47  ;;  %v10411_v47 = vld [vmem:[%s14497_s5 + $0x6c] ss:$16 sps:$4 sm:$0xff]  }
 0x46e   : > { %3871 = vmatpush1.bf16.msra.mxu1 %v10345_v36  ;;  %v10409_v36 = vld [vmem:[%s14497_s5 + $0x68] ss:$16 sps:$4 sm:$0xff]  }
 0x46f   : > { %3872 = vmatprep.subr.bf16.mxu1 %v10350_v37  ;;  %v10414_v37 = vld [vmem:[%s14497_s5 + $0x8c] ss:$16 sps:$4 sm:$0xff]  }
 0x472   : > { %3873 = vmatpush1.bf16.msra.mxu1 %v10348_v44  ;;  %v10412_v44 = vld [vmem:[%s14497_s5 + $0x88] ss:$16 sps:$4 sm:$0xff]  }
 0x473   : > { %3874 = vmatprep.subr.bf16.mxu1 %v10353_v23  ;;  %v10417_v23 = vld [vmem:[%s14497_s5 + $0xac] ss:$16 sps:$4 sm:$0xff]  }
 0x476   : > { %3875 = vmatpush1.bf16.msra.mxu1 %v10351_v45  ;;  %v10415_v45 = vld [vmem:[%s14497_s5 + $0xa8] ss:$16 sps:$4 sm:$0xff]  }
 0x477   : > { %3876 = vmatprep.subr.bf16.mxu1 %v10356_v59  ;;  %v10420_v59 = vld [vmem:[%s14497_s5 + $0xcc] ss:$16 sps:$4 sm:$0xff]  }
 0x47a   : > { %3877 = vmatpush1.bf16.msra.mxu1 %v10354_v30  ;;  %v10418_v30 = vld [vmem:[%s14497_s5 + $0xc8] ss:$16 sps:$4 sm:$0xff]  }
 0x47b   : > { %3878 = vmatprep.subr.bf16.mxu1 %v10359_v39  ;;  %v10423_v39 = vld [vmem:[%s14497_s5 + $0xec] ss:$16 sps:$4 sm:$0xff]  }
 0x47e   : > { %3879 = vmatpush1.bf16.msra.mxu1 %v10357_v7  ;;  %v10421_v7 = vld [vmem:[%s14497_s5 + $0xe8] ss:$16 sps:$4 sm:$0xff]  }
 0x47f   : > { %3880 = vmatprep.subr.bf16.mxu1 %v10362_v16  ;;  %v10426_v16 = vld [vmem:[%s14497_s5 + $0x10c] ss:$16 sps:$4 sm:$0xff]  }
 0x482   : > { %3881 = vmatpush1.bf16.msra.mxu1 %v10360_v32  ;;  %v10429_v32 = vld [vmem:[%s14497_s5 + $0x12c] ss:$16 sps:$4 sm:$0xff]  }
 0x483   : > { %8941 = vmatprep.subr.msk.bf16.mxu1 %vm3244_vm10, %v8937_v54  ;;  %v10427_v54 = vld [vmem:[%s14497_s5 + $0x128] ss:$16 sps:$4 sm:$0xff]  }
 0x486   : > { %3883 = vmatpush1.bf16.msra.mxu1 %v3802_v15  ;;  %v3478_v15 = vld [vmem:[%s14497_s5 + $0x168] sm:$0x33] }
 0x487   : > { %4159 = vmatprep.subr.bf16.mxu1 %v10367_v14  ;;  %v10430_v14 = vld [vmem:[%s14497_s5 + $0x148] ss:$16 sps:$4 sm:$0xff]  }
 0x489   : > { %3893 = vmatmul.mubr.bf16.vlgmr.msra.gmra.mrb[92].mxu1 %v3537_v6 }
 0x48a   : > { %8943 = vmatprep.mubr.msk.bf16.mxu1 %vm3788_vm12, %v3555_v2  ;;  %4160 = vmatpush1.bf16.msra.mxu1 %v10365_v12  ;;  %v3477_v2 = vld [vmem:[%s14497_s5 + $0x160] sm:$0x33]  ;;  %v8991_v12 = vcombine.high %v3478_v15, %v3478_v15 }
 0x48b   : > { %4161 = vmatprep.subr.bf16.mxu1 %v10370_v11  ;;  %v8989_v6 = vcombine.high %v3477_v2, %v3477_v2  ;;  %v8988_v9 = vcombine.low %v3477_v2, %v3477_v2  ;;  %v8990_v11 = vcombine.low %v3478_v15, %v3478_v15  ;;  %v10458_v2 = vld [vmem:[%s14497_s5 + $0x3c4] ss:$16 sps:$4 sm:$0xff]   ;;  %v10485_v15 = vld [vmem:[%s14497_s5 + $0x388] ss:$16 sps:$4 sm:$0xff]  }
 0x48d   : > { %v4148_v26 = vsel %vm3244_vm10, %v8988_v9, 0  ;;  %v10459_v9 = vld [vmem:[%s14497_s5 + $0x3e0] ss:$16 sps:$4 sm:$0xff]  }
 0x48e   : > { %4162 = vmatpush1.bf16.msra.mxu1 %v10368_v20  ;;  %v4154_v20 = vsel %vm3244_vm10, %v8990_v11, 0  ;;  %v10493_v11 = vld [vmem:[%s14497_s5 + $0x3cc] ss:$16 sps:$4 sm:$0xff]  }
 0x48f   : > { %4163 = vmatprep.subr.bf16.mxu1 %v10373_v13  ;;  %v10437_v13 = vld [vmem:[%s14497_s5 + $0x2e4] ss:$16 sps:$4 sm:$0xff]  }
 0x491   : > { %3903 = vmatmul.mubr.bf16.gmra.mrb[96].mxu1 %v3552_v48  ;;  %v10400_v48 = vld [vmem:[%s14497_s5 + $0x8] ss:$16 sps:$4 sm:$0xff]  }
 0x492   : > { %4164 = vmatpush1.bf16.msra.mxu1 %v10371_v46  ;;  %8993 = vmatprep.mubr.msk.bf16.mxu1 %vm3788_vm12, %v12490_v18  ;;  %v10435_v46 = vld [vmem:[%s14497_s5 + $0x2e0] ss:$16 sps:$4 sm:$0xff]  }
 0x493   : > { %4165 = vmatprep.subr.bf16.mxu1 %v10376_v35  ;;  %v10440_v35 = vld [vmem:[%s14497_s5 + $0x304] ss:$16 sps:$4 sm:$0xff]  }
 0x496   : > { %4166 = vmatpush1.bf16.msra.mxu1 %v10374_v29  ;;  %v10438_v29 = vld [vmem:[%s14497_s5 + $0x300] ss:$16 sps:$4 sm:$0xff]  }
 0x497   : > { %4167 = vmatprep.subr.bf16.mxu1 %v10379_v57  ;;  %v10443_v57 = vld [vmem:[%s14497_s5 + $0x324] ss:$16 sps:$4 sm:$0xff]  }
 0x49a   : > { %4168 = vmatpush1.bf16.msra.mxu1 %v10377_v34  ;;  %v12761_v34 = vrot.slane %v12504_v10, 1 }
 0x49b   : > { %4169 = vmatprep.subr.bf16.mxu1 %v10382_v22  ;;  %v10441_v22 = vld [vmem:[%s14497_s5 + $0x320] ss:$16 sps:$4 sm:$0xff]  }
 0x49e   : > { %4170 = vmatpush1.bf16.msra.mxu1 %v10380_v58  ;;  %v4319_v58 = vrot.slane %v12490_v18, 1 }
 0x49f   : > { %4171 = vmatprep.subr.bf16.mxu1 %v10385_v53  ;;  %v10446_v53 = vld [vmem:[%s14497_s5 + $0x344] ss:$16 sps:$4 sm:$0xff]  }
 0x4a2   : > { %4172 = vmatpush1.bf16.msra.mxu1 %v10383_v25  ;;  %v4321_v25 = vsel %vm1419_vm3, %v4319_v58, %v12761_v34  ;;  %v10500_v58 = vld [vmem:[%s14497_s5 + $0x428] ss:$16 sps:$4 sm:$0xff]  }
 0x4a3   : > { %4173 = vmatprep.subr.bf16.mxu1 %v10388_v62  ;;  %v10444_v62 = vld [vmem:[%s14497_s5 + $0x340] ss:$16 sps:$4 sm:$0xff]  }
 0x4a6   : > { %4174 = vmatpush1.bf16.msra.mxu1 %v10386_v33  ;;  %v10449_v33 = vld [vmem:[%s14497_s5 + $0x364] ss:$16 sps:$4 sm:$0xff]  }
 0x4a7   : > { %4175 = vmatprep.subr.bf16.mxu1 %v10391_v31  ;;  %v10447_v31 = vld [vmem:[%s14497_s5 + $0x360] ss:$16 sps:$4 sm:$0xff]  }
 0x4aa   : > { %4176 = vmatpush1.bf16.msra.mxu1 %v10389_v52  ;;  %v10452_v52 = vld [vmem:[%s14497_s5 + $0x384] ss:$16 sps:$4 sm:$0xff]  }
 0x4ab   : > { %4177 = vmatprep.subr.bf16.mxu1 %v10394_v41  ;;  %v10450_v41 = vld [vmem:[%s14497_s5 + $0x380] ss:$16 sps:$4 sm:$0xff]  }
 0x4ae   : > { %4178 = vmatpush1.bf16.msra.mxu1 %v10392_v3  ;;  %v10455_v3 = vld [vmem:[%s14497_s5 + $0x3a4] ss:$16 sps:$4 sm:$0xff]  }
 0x4af   : > { %4179 = vmatprep.subr.bf16.mxu1 %v10397_v0  ;;  %v10453_v0 = vld [vmem:[%s14497_s5 + $0x3a0] ss:$16 sps:$4 sm:$0xff]  }
 0x4b2   : > { %4180 = vmatpush1.bf16.msra.mxu1 %v10395_v19  ;;  %v10456_v19 = vld [vmem:[%s14497_s5 + $0x3c0] ss:$16 sps:$4 sm:$0xff]  }
 0x4b3   : > { %8992 = vmatprep.subr.msk.bf16.mxu1 %vm3244_vm10, %v8989_v6  ;;  %v10461_v6 = vld [vmem:[%s14497_s5 + $0x3e4] ss:$16 sps:$4 sm:$0xff]  }
 0x4b6   : > { %4182 = vmatpush1.bf16.msra.mxu1 %v4148_v26  ;;  %v10464_v26 = vld [vmem:[%s14497_s5 + $0x404] ss:$16 sps:$4 sm:$0xff]  }
 0x4b7   : > { %4212 = vmatprep.subr.bf16.mxu1 %v10402_v24  ;;  %v10462_v24 = vld [vmem:[%s14497_s5 + $0x400] ss:$16 sps:$4 sm:$0xff]  }
 0x4b9   : > { %4192 = vmatmul.mubr.bf16.vlgmr.msra.gmra.mrb[84].mxu1 %v12488_v56 }
 0x4ba   : > { %8994 = vmatprep.mubr.msk.bf16.mxu1 %vm3788_vm12, %v12504_v10  ;;  %4213 = vmatpush1.bf16.msra.mxu1 %v10400_v48  ;;  %v10467_v48 = vld [vmem:[%s14497_s5 + $0x424] ss:$16 sps:$4 sm:$0xff]  }
 0x4bb   : > { %4214 = vmatprep.subr.bf16.mxu1 %v10405_v27  ;;  %v9042_v27 = vld [vmem:[%s14497_s5 + $0x440] sm:$0x33] }
 0x4be   : > { %4215 = vmatpush1.bf16.msra.mxu1 %v10403_v55  ;;  %v10465_v55 = vld [vmem:[%s14497_s5 + $0x420] ss:$16 sps:$4 sm:$0xff]  }
 0x4bf   : > { %4216 = vmatprep.subr.bf16.mxu1 %v10408_v5  ;;  %v9089_v5 = vcombine.high %v9042_v27, %v9042_v27 }
 0x4c1   : > { %4202 = vmatmul.mubr.bf16.gmra.mrb[88].mxu1 %v12502_v50 }
 0x4c2   : > { %4217 = vmatpush1.bf16.msra.mxu1 %v10406_v38  ;;  %8996 = vmatprep.mubr.msk.bf16.mxu1 %vm3788_vm12, %v12490_v18  ;;  %v9088_v38 = vcombine.low %v9042_v27, %v9042_v27  ;;  %v10531_v27 = vld [vmem:[%s14497_s5 + $0x554] ss:$16 sps:$4 sm:$0xff]  }
 0x4c3   : > { %4218 = vmatprep.subr.bf16.mxu1 %v10411_v47 }
 0x4c4   : > { %v4561_v47 = vsel %vm3244_vm10, %v9088_v38, 0  ;;  %v10532_v38 = vld [vmem:[%s14497_s5 + $0x570] ss:$16 sps:$4 sm:$0xff]  }
 0x4c6   : > { %4219 = vmatpush1.bf16.msra.mxu1 %v10409_v36  ;;  %v10472_v36 = vld [vmem:[%s14497_s5 + $0x2ec] ss:$16 sps:$4 sm:$0xff]  }
 0x4c7   : > { %4220 = vmatprep.subr.bf16.mxu1 %v10414_v37  ;;  %v12828_v37 = vrot.slane %v12502_v50, 1 }
 0x4ca   : > { %4221 = vmatpush1.bf16.msra.mxu1 %v10412_v44  ;;  %v4316_v44 = vrot.slane %v12488_v56, 1 }
 0x4cb   : > { %4222 = vmatprep.subr.bf16.mxu1 %v10417_v23  ;;  %v10470_v23 = vld [vmem:[%s14497_s5 + $0x2e8] ss:$16 sps:$4 sm:$0xff]  }
 0x4ce   : > { %4223 = vmatpush1.bf16.msra.mxu1 %v10415_v45  ;;  %v10475_v45 = vld [vmem:[%s14497_s5 + $0x30c] ss:$16 sps:$4 sm:$0xff]  }
 0x4cf   : > { %4224 = vmatprep.subr.bf16.mxu1 %v10420_v59  ;;  %v4318_v59 = vsel %vm1419_vm3, %v4316_v44, %v12828_v37 }
 0x4d2   : > { %4225 = vmatpush1.bf16.msra.mxu1 %v10418_v30  ;;  %v10473_v30 = vld [vmem:[%s14497_s5 + $0x308] ss:$16 sps:$4 sm:$0xff]  }
 0x4d3   : > { %4226 = vmatprep.subr.bf16.mxu1 %v10423_v39  ;;  %v10478_v39 = vld [vmem:[%s14497_s5 + $0x32c] ss:$16 sps:$4 sm:$0xff]  }
 0x4d6   : > { %4227 = vmatpush1.bf16.msra.mxu1 %v10421_v7  ;;  %v10476_v7 = vld [vmem:[%s14497_s5 + $0x328] ss:$16 sps:$4 sm:$0xff]  }
 0x4d7   : > { %4228 = vmatprep.subr.bf16.mxu1 %v10426_v16  ;;  %v10481_v16 = vld [vmem:[%s14497_s5 + $0x34c] ss:$16 sps:$4 sm:$0xff]  }
 0x4da   : > { %4229 = vmatpush1.bf16.msra.mxu1 %v10424_v51  ;;  %v10479_v51 = vld [vmem:[%s14497_s5 + $0x348] ss:$16 sps:$4 sm:$0xff]  }
 0x4db   : > { %4230 = vmatprep.subr.bf16.mxu1 %v10429_v32  ;;  %v10484_v32 = vld [vmem:[%s14497_s5 + $0x36c] ss:$16 sps:$4 sm:$0xff]  }
 0x4de   : > { %4231 = vmatpush1.bf16.msra.mxu1 %v10427_v54  ;;  %v10482_v54 = vld [vmem:[%s14497_s5 + $0x368] ss:$16 sps:$4 sm:$0xff]  }
 0x4df   : > { %4232 = vmatprep.subr.bf16.mxu1 %v10432_v43  ;;  %v10487_v43 = vld [vmem:[%s14497_s5 + $0x38c] ss:$16 sps:$4 sm:$0xff]  }
 0x4e2   : > { %4233 = vmatpush1.bf16.msra.mxu1 %v10430_v14  ;;  %v10490_v14 = vld [vmem:[%s14497_s5 + $0x3ac] ss:$16 sps:$4 sm:$0xff]  }
 0x4e3   : > { %8995 = vmatprep.subr.msk.bf16.mxu1 %vm3244_vm10, %v8991_v12  ;;  %v10488_v12 = vld [vmem:[%s14497_s5 + $0x3a8] ss:$16 sps:$4 sm:$0xff]  }
 0x4e6   : > { %4235 = vmatpush1.bf16.msra.mxu1 %v4154_v20  ;;  %v10491_v20 = vld [vmem:[%s14497_s5 + $0x3c8] ss:$16 sps:$4 sm:$0xff]  }
 0x4e7   : > { %4572 = vmatprep.subr.bf16.mxu1 %v10437_v13  ;;  %v10496_v13 = vld [vmem:[%s14497_s5 + $0x3ec] ss:$16 sps:$4 sm:$0xff]  }
 0x4e9   : > { %4245 = vmatmul.mubr.bf16.vlgmr.msra.gmra.mrb[92].mxu1 %v12488_v56 }
 0x4ea   : > { %8997 = vmatprep.mubr.msk.bf16.mxu1 %vm3788_vm12, %v12504_v10  ;;  %4573 = vmatpush1.bf16.msra.mxu1 %v10435_v46  ;;  %v10494_v46 = vld [vmem:[%s14497_s5 + $0x3e8] ss:$16 sps:$4 sm:$0xff]  }
 0x4eb   : > { %4574 = vmatprep.subr.bf16.mxu1 %v10440_v35  ;;  %v10499_v35 = vld [vmem:[%s14497_s5 + $0x40c] ss:$16 sps:$4 sm:$0xff]  }
 0x4ee   : > { %4575 = vmatpush1.bf16.msra.mxu1 %v10438_v29  ;;  %v10497_v29 = vld [vmem:[%s14497_s5 + $0x408] ss:$16 sps:$4 sm:$0xff]  }
 0x4ef   : > { %4576 = vmatprep.subr.bf16.mxu1 %v10443_v57  ;;  %v10502_v57 = vld [vmem:[%s14497_s5 + $0x42c] ss:$16 sps:$4 sm:$0xff]  }
 0x4f1   : > { %4255 = vmatmul.mubr.bf16.gmra.mrb[96].mxu1 %v12502_v50 }
 0x4f2   : > { %4577 = vmatpush1.bf16.msra.mxu1 %v10441_v22  ;;  %9093 = vmatprep.mubr.msk.bf16.mxu1 %vm3788_vm12, %v4321_v25  ;;  %v9043_v22 = vld [vmem:[%s14497_s5 + $0x448] sm:$0x33] }
 0x4f3   : > { %4578 = vmatprep.subr.bf16.mxu1 %v10446_v53  ;;  %v9091_v53 = vcombine.high %v9043_v22, %v9043_v22 }
 0x4f6   : > { %4579 = vmatpush1.bf16.msra.mxu1 %v10444_v62 }
 0x4f7   : > { %4580 = vmatprep.subr.bf16.mxu1 %v10449_v33  ;;  %v10507_v33 = vld [vmem:[%s14497_s5 + $0x454] ss:$16 sps:$4 sm:$0xff]  }
 0x4fa   : > { %4581 = vmatpush1.bf16.msra.mxu1 %v10447_v31  ;;  %v10505_v31 = vld [vmem:[%s14497_s5 + $0x450] ss:$16 sps:$4 sm:$0xff]  }
 0x4fb   : > { %4582 = vmatprep.subr.bf16.mxu1 %v10452_v52  ;;  %v10510_v52 = vld [vmem:[%s14497_s5 + $0x474] ss:$16 sps:$4 sm:$0xff]  }
 0x4fe   : > { %4583 = vmatpush1.bf16.msra.mxu1 %v10450_v41  ;;  %v10508_v41 = vld [vmem:[%s14497_s5 + $0x470] ss:$16 sps:$4 sm:$0xff]  }
 0x4ff   : > { %4584 = vmatprep.subr.bf16.mxu1 %v10455_v3  ;;  %v10513_v3 = vld [vmem:[%s14497_s5 + $0x494] ss:$16 sps:$4 sm:$0xff]  }
 0x502   : > { %4585 = vmatpush1.bf16.msra.mxu1 %v10453_v0  ;;  %v10511_v0 = vld [vmem:[%s14497_s5 + $0x490] ss:$16 sps:$4 sm:$0xff]  }
 0x503   : > { %4586 = vmatprep.subr.bf16.mxu1 %v10458_v2  ;;  %v4754_v2 = vsel %vm1853_vm2, %v4750_v49, %v12521_v21  ;;  %v10525_v49 = vld [vmem:[%s14497_s5 + $0x514] ss:$16 sps:$4 sm:$0xff]   ;;  %vm6305_vm2 = vcmask 654336  }
 0x506   : > { %4587 = vmatpush1.bf16.msra.mxu1 %v10456_v19  ;;  %v10514_v19 = vld [vmem:[%s14497_s5 + $0x4b0] ss:$16 sps:$4 sm:$0xff]  }
 0x507   : > { %4588 = vmatprep.subr.bf16.mxu1 %v10461_v6  ;;  %v10519_v6 = vld [vmem:[%s14497_s5 + $0x4d4] ss:$16 sps:$4 sm:$0xff]  }
 0x50a   : > { %4589 = vmatpush1.bf16.msra.mxu1 %v10459_v9  ;;  %v10517_v9 = vld [vmem:[%s14497_s5 + $0x4d0] ss:$16 sps:$4 sm:$0xff]  }
 0x50b   : > { %4590 = vmatprep.subr.bf16.mxu1 %v10464_v26  ;;  %v10523_v26 = vld [vmem:[%s14497_s5 + $0x510] ss:$16 sps:$4 sm:$0xff]  }
 0x50e   : > { %4591 = vmatpush1.bf16.msra.mxu1 %v10462_v24  ;;  %v10528_v24 = vld [vmem:[%s14497_s5 + $0x534] ss:$16 sps:$4 sm:$0xff]  }
 0x50f   : > { %4592 = vmatprep.subr.bf16.mxu1 %v10467_v48  ;;  %v10526_v48 = vld [vmem:[%s14497_s5 + $0x530] ss:$16 sps:$4 sm:$0xff]  }
 0x512   : > { %4593 = vmatpush1.bf16.msra.mxu1 %v10465_v55  ;;  %v10529_v55 = vld [vmem:[%s14497_s5 + $0x550] ss:$16 sps:$4 sm:$0xff]  }
 0x513   : > { %9092 = vmatprep.subr.msk.bf16.mxu1 %vm3244_vm10, %v9089_v5  ;;  %v10534_v5 = vld [vmem:[%s14497_s5 + $0x574] ss:$16 sps:$4 sm:$0xff]  }
 0x516   : > { %4595 = vmatpush1.bf16.msra.mxu1 %v4561_v47  ;;  %v10537_v47 = vld [vmem:[%s14497_s5 + $0x594] ss:$16 sps:$4 sm:$0xff]  }
 0x517   : > { %4625 = vmatprep.subr.bf16.mxu1 %v10472_v36  ;;  %v9142_v36 = vld [vmem:[%s14497_s5 + $0x5b0] sm:$0x33] }
 0x518   : > { %v9189_v44 = vcombine.high %v9142_v36, %v9142_v36 }
 0x519   : > { %4605 = vmatmul.mubr.bf16.vlgmr.msra.gmra.mrb[84].mxu1 %v4318_v59 }
 0x51a   : > { %9094 = vmatprep.mubr.msk.bf16.mxu1 %vm3788_vm12, %v12761_v34  ;;  %4626 = vmatpush1.bf16.msra.mxu1 %v10470_v23  ;;  %v9188_v23 = vcombine.low %v9142_v36, %v9142_v36  ;;  %v10605_v36 = vld [vmem:[%s14497_s5 + $0x700] ss:$16 sps:$4 sm:$0xff]  }
 0x51b   : > { %4627 = vmatprep.subr.bf16.mxu1 %v10475_v45 }
 0x51c   : > { %v4994_v45 = vsel %vm3244_vm10, %v9188_v23, 0 }
 0x51e   : > { %4628 = vmatpush1.bf16.msra.mxu1 %v10473_v30  ;;  %v10540_v30 = vld [vmem:[%s14497_s5 + $0x458] ss:$16 sps:$4 sm:$0xff]  }
 0x51f   : > { %4629 = vmatprep.subr.bf16.mxu1 %v10478_v39  ;;  %v10545_v39 = vld [vmem:[%s14497_s5 + $0x47c] ss:$16 sps:$4 sm:$0xff]  }
 0x521   : > { %4615 = vmatmul.mubr.bf16.gmra.mrb[88].mxu1 %v12828_v37 }
 0x522   : > { %4630 = vmatpush1.bf16.msra.mxu1 %v10476_v7  ;;  %9096 = vmatprep.mubr.msk.bf16.mxu1 %vm3788_vm12, %v4321_v25  ;;  %v9090_v25 = vcombine.low %v9043_v22, %v9043_v22  ;;  %v10543_v7 = vld [vmem:[%s14497_s5 + $0x478] ss:$16 sps:$4 sm:$0xff]  }
 0x523   : > { %4631 = vmatprep.subr.bf16.mxu1 %v10481_v16  ;;  %v10548_v16 = vld [vmem:[%s14497_s5 + $0x49c] ss:$16 sps:$4 sm:$0xff]   ;;  %v10567_v22 = vld [vmem:[%s14497_s5 + $0x578] ss:$16 sps:$4 sm:$0xff]  }
 0x524   : > { %v4567_v62 = vsel %vm3244_vm10, %v9090_v25, 0  ;;  %v10570_v25 = vld [vmem:[%s14497_s5 + $0x598] ss:$16 sps:$4 sm:$0xff]  }
 0x526   : > { %4632 = vmatpush1.bf16.msra.mxu1 %v10479_v51  ;;  %v10546_v51 = vld [vmem:[%s14497_s5 + $0x498] ss:$16 sps:$4 sm:$0xff]  }
 0x527   : > { %4633 = vmatprep.subr.bf16.mxu1 %v10484_v32  ;;  %v10551_v32 = vld [vmem:[%s14497_s5 + $0x4bc] ss:$16 sps:$4 sm:$0xff]  }
 0x52a   : > { %4634 = vmatpush1.bf16.msra.mxu1 %v10482_v54  ;;  %v10549_v54 = vld [vmem:[%s14497_s5 + $0x4b8] ss:$16 sps:$4 sm:$0xff]  }
 0x52b   : > { %4635 = vmatprep.subr.bf16.mxu1 %v10487_v43  ;;  %v10554_v43 = vld [vmem:[%s14497_s5 + $0x4dc] ss:$16 sps:$4 sm:$0xff]  }
 0x52e   : > { %4636 = vmatpush1.bf16.msra.mxu1 %v10485_v15  ;;  %v10552_v15 = vld [vmem:[%s14497_s5 + $0x4d8] ss:$16 sps:$4 sm:$0xff]  }
 0x52f   : > { %4637 = vmatprep.subr.bf16.mxu1 %v10490_v14  ;;  %v10557_v14 = vld [vmem:[%s14497_s5 + $0x4fc] ss:$16 sps:$4 sm:$0xff]  }
 0x532   : > { %4638 = vmatpush1.bf16.msra.mxu1 %v10488_v12  ;;  %v10555_v12 = vld [vmem:[%s14497_s5 + $0x4f8] ss:$16 sps:$4 sm:$0xff]  }
 0x533   : > { %4639 = vmatprep.subr.bf16.mxu1 %v10493_v11  ;;  %v10560_v11 = vld [vmem:[%s14497_s5 + $0x51c] ss:$16 sps:$4 sm:$0xff]  }
 0x536   : > { %4640 = vmatpush1.bf16.msra.mxu1 %v10491_v20  ;;  %v10558_v20 = vld [vmem:[%s14497_s5 + $0x518] ss:$16 sps:$4 sm:$0xff]  }
 0x537   : > { %4641 = vmatprep.subr.bf16.mxu1 %v10496_v13  ;;  %v10563_v13 = vld [vmem:[%s14497_s5 + $0x53c] ss:$16 sps:$4 sm:$0xff]  }
 0x53a   : > { %4642 = vmatpush1.bf16.msra.mxu1 %v10494_v46  ;;  %v10561_v46 = vld [vmem:[%s14497_s5 + $0x538] ss:$16 sps:$4 sm:$0xff]  }
 0x53b   : > { %4643 = vmatprep.subr.bf16.mxu1 %v10499_v35  ;;  %v10566_v35 = vld [vmem:[%s14497_s5 + $0x55c] ss:$16 sps:$4 sm:$0xff]  }
 0x53e   : > { %4644 = vmatpush1.bf16.msra.mxu1 %v10497_v29  ;;  %v10564_v29 = vld [vmem:[%s14497_s5 + $0x558] ss:$16 sps:$4 sm:$0xff]  }
 0x53f   : > { %4645 = vmatprep.subr.bf16.mxu1 %v10502_v57  ;;  %v10569_v57 = vld [vmem:[%s14497_s5 + $0x57c] ss:$16 sps:$4 sm:$0xff]  }
 0x542   : > { %4646 = vmatpush1.bf16.msra.mxu1 %v10500_v58  ;;  %v10572_v58 = vld [vmem:[%s14497_s5 + $0x59c] ss:$16 sps:$4 sm:$0xff]  }
 0x543   : > { %9095 = vmatprep.subr.msk.bf16.mxu1 %vm3244_vm10, %v9091_v53  ;;  %v9143_v53 = vld [vmem:[%s14497_s5 + $0x5b8] sm:$0x33] }
 0x546   : > { %4648 = vmatpush1.bf16.msra.mxu1 %v4567_v62  ;;  %v9191_v62 = vcombine.high %v9143_v53, %v9143_v53 }
 0x547   : > { %5005 = vmatprep.subr.bf16.mxu1 %v10507_v33  ;;  %v9190_v33 = vcombine.low %v9143_v53, %v9143_v53  ;;  %v9243_v53 = vld [vmem:[%s14497_s5 + $0x728] sm:$0x33] }
 0x549   : > { %4658 = vmatmul.mubr.bf16.vlgmr.msra.gmra.mrb[92].mxu1 %v4318_v59  ;;  %v10542_v59 = vld [vmem:[%s14497_s5 + $0x45c] ss:$16 sps:$4 sm:$0xff]  }
 0x54a   : > { %9097 = vmatprep.mubr.msk.bf16.mxu1 %vm3788_vm12, %v12761_v34  ;;  %5006 = vmatpush1.bf16.msra.mxu1 %v10505_v31  ;;  %v10516_v34 = vld [vmem:[%s14497_s5 + $0x4b4] ss:$16 sps:$4 sm:$0xff]   ;;  %v5000_v31 = vsel %vm3244_vm10, %v9190_v33, 0  ;;  %v9290_v33 = vcombine.low %v9243_v53, %v9243_v53 }
 0x54b   : > { %5007 = vmatprep.subr.bf16.mxu1 %v10510_v52  ;;  %v10577_v52 = vld [vmem:[%s14497_s5 + $0x5c4] ss:$16 sps:$4 sm:$0xff]  }
 0x54e   : > { %5008 = vmatpush1.bf16.msra.mxu1 %v10508_v41  ;;  %v10575_v41 = vld [vmem:[%s14497_s5 + $0x5c0] ss:$16 sps:$4 sm:$0xff]  }
 0x54f   : > { %5009 = vmatprep.subr.bf16.mxu1 %v10513_v3  ;;  %v10580_v3 = vld [vmem:[%s14497_s5 + $0x5e4] ss:$16 sps:$4 sm:$0xff]  }
 0x551   : > { %4668 = vmatmul.mubr.bf16.gmra.mrb[96].mxu1 %v12828_v37  ;;  %v10535_v37 = vld [vmem:[%s14497_s5 + $0x590] ss:$16 sps:$4 sm:$0xff]  }
 0x552   : > { %5010 = vmatpush1.bf16.msra.mxu1 %v10511_v0  ;;  %9193 = vmatprep.mubr.msk.bf16.mxu1 %vm3788_vm12, %v4754_v2  ;;  %v10578_v0 = vld [vmem:[%s14497_s5 + $0x5e0] ss:$16 sps:$4 sm:$0xff]  }
 0x553   : > { %5011 = vmatprep.subr.bf16.mxu1 %v10516_v34  ;;  %v10583_v34 = vld [vmem:[%s14497_s5 + $0x604] ss:$16 sps:$4 sm:$0xff]  }
 0x556   : > { %5012 = vmatpush1.bf16.msra.mxu1 %v10514_v19  ;;  %v10586_v19 = vld [vmem:[%s14497_s5 + $0x624] ss:$16 sps:$4 sm:$0xff]  }
 0x557   : > { %5013 = vmatprep.subr.bf16.mxu1 %v10519_v6 }
 0x55a   : > { %5014 = vmatpush1.bf16.msra.mxu1 %v10517_v9  ;;  %v10592_v9 = vld [vmem:[%s14497_s5 + $0x664] ss:$16 sps:$4 sm:$0xff]  }
 0x55b   : > { %5015 = vmatprep.subr.bf16.mxu1 %v10522_v40  ;;  %v10590_v40 = vld [vmem:[%s14497_s5 + $0x660] ss:$16 sps:$4 sm:$0xff]  }
 0x55e   : > { %5016 = vmatpush1.bf16.msra.mxu1 %v10520_v8  ;;  %v10595_v8 = vld [vmem:[%s14497_s5 + $0x684] ss:$16 sps:$4 sm:$0xff]  }
 0x55f   : > { %5017 = vmatprep.subr.bf16.mxu1 %v10525_v49  ;;  %v10593_v49 = vld [vmem:[%s14497_s5 + $0x680] ss:$16 sps:$4 sm:$0xff]  }
 0x562   : > { %5018 = vmatpush1.bf16.msra.mxu1 %v10523_v26  ;;  %v10598_v26 = vld [vmem:[%s14497_s5 + $0x6a4] ss:$16 sps:$4 sm:$0xff]  }
 0x563   : > { %5019 = vmatprep.subr.bf16.mxu1 %v10528_v24  ;;  %v10596_v24 = vld [vmem:[%s14497_s5 + $0x6a0] ss:$16 sps:$4 sm:$0xff]  }
 0x566   : > { %5020 = vmatpush1.bf16.msra.mxu1 %v10526_v48  ;;  %v10601_v48 = vld [vmem:[%s14497_s5 + $0x6c4] ss:$16 sps:$4 sm:$0xff]  }
 0x567   : > { %5021 = vmatprep.subr.bf16.mxu1 %v10531_v27  ;;  %v10599_v27 = vld [vmem:[%s14497_s5 + $0x6c0] ss:$16 sps:$4 sm:$0xff]  }
 0x56a   : > { %5022 = vmatpush1.bf16.msra.mxu1 %v10529_v55  ;;  %v10604_v55 = vld [vmem:[%s14497_s5 + $0x6e4] ss:$16 sps:$4 sm:$0xff]  }
 0x56b   : > { %5023 = vmatprep.subr.bf16.mxu1 %v10534_v5  ;;  %v10602_v5 = vld [vmem:[%s14497_s5 + $0x6e0] ss:$16 sps:$4 sm:$0xff]  }
 0x56e   : > { %5024 = vmatpush1.bf16.msra.mxu1 %v10532_v38  ;;  %v10607_v38 = vld [vmem:[%s14497_s5 + $0x704] ss:$16 sps:$4 sm:$0xff]  }
 0x56f   : > { %5025 = vmatprep.subr.bf16.mxu1 %v10537_v47  ;;  %v9242_v47 = vld [vmem:[%s14497_s5 + $0x720] sm:$0x33] }
 0x572   : > { %5026 = vmatpush1.bf16.msra.mxu1 %v10535_v37  ;;  %v9289_v37 = vcombine.high %v9242_v47, %v9242_v47 }
 0x573   : > { %9192 = vmatprep.subr.msk.bf16.mxu1 %vm3244_vm10, %v9189_v44  ;;  %v9288_v44 = vcombine.low %v9242_v47, %v9242_v47 }
 0x575   : > { %v5419_v23 = vsel %vm3244_vm10, %v9288_v44, 0 }
 0x576   : > { %5028 = vmatpush1.bf16.msra.mxu1 %v4994_v45  ;;  %v10612_v45 = vld [vmem:[%s14497_s5 + $0x5cc] ss:$16 sps:$4 sm:$0xff]  }
 0x577   : > { %5058 = vmatprep.subr.bf16.mxu1 %v10542_v59  ;;  %v5175_v59 = vrot.slane %v12502_v50, 2  ;;  %v10618_v50 = vld [vmem:[%s14497_s5 + $0x60c] ss:$16 sps:$4 sm:$0xff]  }
 0x579   : > { %5038 = vmatmul.mubr.bf16.vlgmr.msra.gmra.mrb[84].mxu1 %v12525_v17 }
 0x57a   : > { %9194 = vmatprep.mubr.msk.bf16.mxu1 %vm3788_vm12, %v12521_v21  ;;  %5059 = vmatpush1.bf16.msra.mxu1 %v10540_v30  ;;  %v5174_v30 = vrot.slane %v12488_v56, 2  ;;  %v10613_v56 = vld [vmem:[%s14497_s5 + $0x5e8] ss:$16 sps:$4 sm:$0xff]  }
 0x57b   : > { %5060 = vmatprep.subr.bf16.mxu1 %v10545_v39  ;;  %v10610_v39 = vld [vmem:[%s14497_s5 + $0x5c8] ss:$16 sps:$4 sm:$0xff]  }
 0x57e   : > { %5061 = vmatpush1.bf16.msra.mxu1 %v10543_v7  ;;  %v10615_v7 = vld [vmem:[%s14497_s5 + $0x5ec] ss:$16 sps:$4 sm:$0xff]  }
 0x57f   : > { %5062 = vmatprep.subr.bf16.mxu1 %v10548_v16  ;;  %v5176_v16 = vsel %vm2303_vm4, %v5174_v30, %v5175_v59 }
 0x581   : > { %5048 = vmatmul.mubr.bf16.gmra.mrb[88].mxu1 %v12513_v4 }
 0x582   : > { %5063 = vmatpush1.bf16.msra.mxu1 %v10546_v51  ;;  %9196 = vmatprep.mubr.msk.bf16.mxu1 %vm3788_vm12, %v4754_v2  ;;  %v13080_v2 = vrot.slane %v12504_v10, 2  ;;  %v10584_v10 = vld [vmem:[%s14497_s5 + $0x620] ss:$16 sps:$4 sm:$0xff]   ;;  %v10616_v51 = vld [vmem:[%s14497_s5 + $0x608] ss:$16 sps:$4 sm:$0xff]  }
 0x583   : > { %5064 = vmatprep.subr.bf16.mxu1 %v10551_v32  ;;  %v10621_v32 = vld [vmem:[%s14497_s5 + $0x62c] ss:$16 sps:$4 sm:$0xff]  }
 0x586   : > { %5065 = vmatpush1.bf16.msra.mxu1 %v10549_v54  ;;  %v10619_v54 = vld [vmem:[%s14497_s5 + $0x628] ss:$16 sps:$4 sm:$0xff]  }
 0x587   : > { %5066 = vmatprep.subr.bf16.mxu1 %v10554_v43  ;;  %v10624_v43 = vld [vmem:[%s14497_s5 + $0x64c] ss:$16 sps:$4 sm:$0xff]  }
 0x58a   : > { %5067 = vmatpush1.bf16.msra.mxu1 %v10552_v15  ;;  %v10622_v15 = vld [vmem:[%s14497_s5 + $0x648] ss:$16 sps:$4 sm:$0xff]  }
 0x58b   : > { %5068 = vmatprep.subr.bf16.mxu1 %v10557_v14  ;;  %v10627_v14 = vld [vmem:[%s14497_s5 + $0x66c] ss:$16 sps:$4 sm:$0xff]  }
 0x58e   : > { %5069 = vmatpush1.bf16.msra.mxu1 %v10555_v12  ;;  %v10625_v12 = vld [vmem:[%s14497_s5 + $0x668] ss:$16 sps:$4 sm:$0xff]  }
 0x58f   : > { %5070 = vmatprep.subr.bf16.mxu1 %v10560_v11  ;;  %v10630_v11 = vld [vmem:[%s14497_s5 + $0x68c] ss:$16 sps:$4 sm:$0xff]  }
 0x592   : > { %5071 = vmatpush1.bf16.msra.mxu1 %v10558_v20  ;;  %v10628_v20 = vld [vmem:[%s14497_s5 + $0x688] ss:$16 sps:$4 sm:$0xff]  }
 0x593   : > { %5072 = vmatprep.subr.bf16.mxu1 %v10563_v13  ;;  %v10633_v13 = vld [vmem:[%s14497_s5 + $0x6ac] ss:$16 sps:$4 sm:$0xff]  }
 0x596   : > { %5073 = vmatpush1.bf16.msra.mxu1 %v10561_v46  ;;  %v10631_v46 = vld [vmem:[%s14497_s5 + $0x6a8] ss:$16 sps:$4 sm:$0xff]  }
 0x597   : > { %5074 = vmatprep.subr.bf16.mxu1 %v10566_v35  ;;  %v10636_v35 = vld [vmem:[%s14497_s5 + $0x6cc] ss:$16 sps:$4 sm:$0xff]  }
 0x59a   : > { %5075 = vmatpush1.bf16.msra.mxu1 %v10564_v29  ;;  %v10634_v29 = vld [vmem:[%s14497_s5 + $0x6c8] ss:$16 sps:$4 sm:$0xff]  }
 0x59b   : > { %5076 = vmatprep.subr.bf16.mxu1 %v10569_v57  ;;  %v10639_v57 = vld [vmem:[%s14497_s5 + $0x6ec] ss:$16 sps:$4 sm:$0xff]  }
 0x59e   : > { %5077 = vmatpush1.bf16.msra.mxu1 %v10567_v22  ;;  %v10637_v22 = vld [vmem:[%s14497_s5 + $0x6e8] ss:$16 sps:$4 sm:$0xff]  }
 0x59f   : > { %5078 = vmatprep.subr.bf16.mxu1 %v10572_v58  ;;  %v10642_v58 = vld [vmem:[%s14497_s5 + $0x70c] ss:$16 sps:$4 sm:$0xff]  }
 0x5a2   : > { %5079 = vmatpush1.bf16.msra.mxu1 %v10570_v25  ;;  %v10640_v25 = vld [vmem:[%s14497_s5 + $0x708] ss:$16 sps:$4 sm:$0xff]  }
 0x5a3   : > { %9195 = vmatprep.subr.msk.bf16.mxu1 %vm3244_vm10, %v9191_v62  ;;  %v9291_v62 = vcombine.high %v9243_v53, %v9243_v53  ;;  %v5683_v53 = vld [vmem:[%s14499_s7 + $0x8] sm:$0x1f] }
 0x5a6   : > { %5081 = vmatpush1.bf16.msra.mxu1 %v5000_v31  ;;  %v5425_v31 = vsel %vm3244_vm10, %v9290_v33, 0 }
 0x5a7   : > { %5430 = vmatprep.subr.bf16.mxu1 %v10577_v52  ;;  %v13226_v52 = vld [vmem:[%s14498_s6] sm:$0xf] }
 0x5a9   : > { %5091 = vmatmul.mubr.bf16.vlgmr.msra.gmra.mrb[92].mxu1 %v12525_v17  ;;  %v10581_v17 = vld [vmem:[%s14497_s5 + $0x600] ss:$16 sps:$4 sm:$0xff]  }
 0x5aa   : > { %9197 = vmatprep.mubr.msk.bf16.mxu1 %vm3788_vm12, %v12521_v21  ;;  %5431 = vmatpush1.bf16.msra.mxu1 %v10575_v41  ;;  %v5177_v21 = vrot.slane %v12490_v18, 2  ;;  %v10589_v18 = vld [vmem:[%s14497_s5 + $0x644] ss:$16 sps:$4 sm:$0xff]   ;;  %v5557_v41 = vrot.slane %v13226_v52, %v2692_v28 }
 0x5ab   : > { %5432 = vmatprep.subr.bf16.mxu1 %v10580_v3  ;;  %v5561_v3 = vrot.slane %v13226_v52, %v2696_v61 }
 0x5ac   : > { %v5179_v6 = vsel %vm2303_vm4, %v5177_v21, %v13080_v2  ;;  %vm10897_vm4 = vmmov 0  }
 0x5ae   : > { %5433 = vmatpush1.bf16.msra.mxu1 %v10578_v0 }
 0x5af   : > { %5434 = vmatprep.subr.bf16.mxu1 %v10583_v34 }
 0x5b1   : > { %5101 = vmatmul.mubr.bf16.gmra.mrb[96].mxu1 %v12513_v4  ;;  %v10587_v4 = vld [vmem:[%s14497_s5 + $0x640] ss:$16 sps:$4 sm:$0xff]  }
 0x5b2   : > { %5435 = vmatpush1.bf16.msra.mxu1 %v10581_v17  ;;  %9293 = vmatprep.mubr.msk.bf16.mxu1 %vm3788_vm12, %v5179_v6 }
 0x5b3   : > { %5436 = vmatprep.subr.bf16.mxu1 %v10586_v19 }
 0x5b6   : > { %5437 = vmatpush1.bf16.msra.mxu1 %v10584_v10 }
 0x5b7   : > { %5438 = vmatprep.subr.bf16.mxu1 %v10589_v18 }
 0x5ba   : > { %5439 = vmatpush1.bf16.msra.mxu1 %v10587_v4 }
 0x5bb   : > { %5440 = vmatprep.subr.bf16.mxu1 %v10592_v9 }
 0x5be   : > { %5441 = vmatpush1.bf16.msra.mxu1 %v10590_v40 }
 0x5bf   : > { %5442 = vmatprep.subr.bf16.mxu1 %v10595_v8 }
 0x5c2   : > { %5443 = vmatpush1.bf16.msra.mxu1 %v10593_v49 }
 0x5c3   : > { %5444 = vmatprep.subr.bf16.mxu1 %v10598_v26 }
 0x5c6   : > { %5445 = vmatpush1.bf16.msra.mxu1 %v10596_v24 }
 0x5c7   : > { %5446 = vmatprep.subr.bf16.mxu1 %v10601_v48 }
 0x5ca   : > { %5447 = vmatpush1.bf16.msra.mxu1 %v10599_v27 }
 0x5cb   : > { %5448 = vmatprep.subr.bf16.mxu1 %v10604_v55 }
 0x5ce   : > { %5449 = vmatpush1.bf16.msra.mxu1 %v10602_v5 }
 0x5cf   : > { %5450 = vmatprep.subr.bf16.mxu1 %v10607_v38 }
 0x5d2   : > { %5451 = vmatpush1.bf16.msra.mxu1 %v10605_v36 }
 0x5d3   : > { %9292 = vmatprep.subr.msk.bf16.mxu1 %vm3244_vm10, %v9289_v37 }
 0x5d6   : > { %5453 = vmatpush1.bf16.msra.mxu1 %v5419_v23 }
 0x5d7   : > { %5483 = vmatprep.subr.bf16.mxu1 %v10612_v45 }
 0x5d9   : > { %5463 = vmatmul.mubr.bf16.vlgmr.msra.gmra.mrb[84].mxu1 %v5176_v16 }
 0x5da   : > { %9294 = vmatprep.mubr.msk.bf16.mxu1 %vm3788_vm12, %v13080_v2  ;;  %5484 = vmatpush1.bf16.msra.mxu1 %v10610_v39 }
 0x5db   : > { %5485 = vmatprep.subr.bf16.mxu1 %v10615_v7 }
 0x5de   : > { %5486 = vmatpush1.bf16.msra.mxu1 %v10613_v56 }
 0x5df   : > { %5487 = vmatprep.subr.bf16.mxu1 %v10618_v50 }
 0x5e1   : > { %5473 = vmatmul.mubr.bf16.gmra.mrb[88].mxu1 %v5175_v59 }
 0x5e2   : > { %5488 = vmatpush1.bf16.msra.mxu1 %v10616_v51  ;;  %9296 = vmatprep.mubr.msk.bf16.mxu1 %vm3788_vm12, %v5179_v6 }
 0x5e3   : > { %5489 = vmatprep.subr.bf16.mxu1 %v10621_v32 }
 0x5e6   : > { %5490 = vmatpush1.bf16.msra.mxu1 %v10619_v54 }
 0x5e7   : > { %5491 = vmatprep.subr.bf16.mxu1 %v10624_v43 }
 0x5ea   : > { %5492 = vmatpush1.bf16.msra.mxu1 %v10622_v15 }
 0x5eb   : > { %5493 = vmatprep.subr.bf16.mxu1 %v10627_v14 }
 0x5ee   : > { %5494 = vmatpush1.bf16.msra.mxu1 %v10625_v12 }
 0x5ef   : > { %5495 = vmatprep.subr.bf16.mxu1 %v10630_v11 }
 0x5f2   : > { %5496 = vmatpush1.bf16.msra.mxu1 %v10628_v20 }
 0x5f3   : > { %5497 = vmatprep.subr.bf16.mxu1 %v10633_v13 }
 0x5f6   : > { %5498 = vmatpush1.bf16.msra.mxu1 %v10631_v46 }
 0x5f7   : > { %5499 = vmatprep.subr.bf16.mxu1 %v10636_v35 }
 0x5fa   : > { %5500 = vmatpush1.bf16.msra.mxu1 %v10634_v29 }
 0x5fb   : > { %5501 = vmatprep.subr.bf16.mxu1 %v10639_v57  ;;  %v5910_v57 = vld [vmem:[%s14500_s8 + $0x28] sm:$0xff] }
 0x5fe   : > { %5502 = vmatpush1.bf16.msra.mxu1 %v10637_v22 }
 0x5ff   : > { %5503 = vmatprep.subr.bf16.mxu1 %v10642_v58  ;;  %v13252_v58 = vld [vmem:[%s14499_s7] sm:$0xff] }
 0x602   : > { %5504 = vmatpush1.bf16.msra.mxu1 %v10640_v25  ;;  %v5568_v25 = vsub.s32 3, %v11884_v60 }
 0x603   : > { %9295 = vmatprep.subr.msk.bf16.mxu1 %vm3244_vm10, %v9291_v62  ;;  %v5565_v62 = vrot.slane %v13226_v52, %v2700_v42 }
 0x604   : > { %v5569_v33 = vrot.slane %v13226_v52, %v5568_v25  ;;  %v5909_v25 = vld [vmem:[%s14500_s8 + $0x20] sm:$0xff] }
 0x606   : > { %5506 = vmatpush1.bf16.msra.mxu1 %v5425_v31 }
 0x607   : > { %7185 = vmatprep.subr.bf16.mxu1 %v10892_v1 }
 0x609   : > { %5516 = vmatmul.mubr.bf16.vlgmr.msra.gmra.mrb[92].mxu1 %v5176_v16 }
 0x60a   : > { %9297 = vmatprep.mubr.msk.bf16.mxu1 %vm3788_vm12, %v13080_v2 }
 0x611   : > { %5526 = vmatmul.mubr.bf16.gmra.mrb[96].mxu1 %v5175_v59 }
 0x6ac   : > { %v5464_v0 = vpop.f32.mrb[84].mxu1 }
 0x6ad   : > { %v5574_v34 = vadd.f32 %v5557_v41, %v5464_v0  ;;  %v5466_v17 = vpop.f32.mrb[85].mxu1 }
 0x6ae   : > { %v5575_v21 = vadd.f32 %v5561_v3, %v5466_v17  ;;  %v5468_v19 = vpop.f32.mrb[86].mxu1 }
 0x6af   : > { %v5590_v2 = vmax.f32 %v5574_v34, 0.0  ;;  %v5578_v6 = vadd.f32 %v5557_v41, %v5468_v19  ;;  %v5470_v10 = vpop.f32.mrb[87].mxu1 }
 0x6b0   : > { %v5591_v18 = vmax.f32 %v5575_v21, 0.0  ;;  %v5579_v4 = vadd.f32 %v5561_v3, %v5470_v10 }
 0x6b1   : > { %v5594_v9 = vmax.f32 %v5578_v6, 0.0  ;;  %v5622_v8 = vrot.slane %v5590_v2, 1 }
 0x6b2   : > { %v5595_v40 = vmax.f32 %v5579_v4, 0.0  ;;  %v5625_v26 = vrot.slane %v5591_v18, 1 }
 0x6b3   : > { %v5623_v49 = vrot.slane %v5594_v9, 1 }
 0x6b4   : > { %v5626_v28 = vrot.slane %v5595_v40, 1  ;;  %v5474_v24 = vpop.f32.mrb[88].mxu1 }
 0x6b5   : > { %v5624_v48 = vsel %vm1419_vm3, %v5622_v8, %v5623_v49  ;;  %v5582_v61 = vadd.f32 %v5557_v41, %v5474_v24  ;;  %v5476_v27 = vpop.f32.mrb[89].mxu1 }
 0x6b6   : > { %v5666_v55 = vmax.f32 %v5590_v2, %v5624_v48  ;;  %v5583_v5 = vadd.f32 %v5561_v3, %v5476_v27  ;;  %v5478_v38 = vpop.f32.mrb[90].mxu1  ;;  %v5627_v47 = vsel %vm1419_vm3, %v5625_v26, %v5626_v28 }
 0x6b7   : > { %v5598_v36 = vmax.f32 %v5582_v61, 0.0  ;;  %v5586_v37 = vadd.f32 %v5557_v41, %v5478_v38  ;;  %v5480_v44 = vpop.f32.mrb[91].mxu1  ;;  %v5667_v23 = vmax.f32 %v5591_v18, %v5627_v47 }
 0x6b8   : > { %v5599_v45 = vmax.f32 %v5583_v5, 0.0  ;;  %v5587_v59 = vadd.f32 %v5561_v3, %v5480_v44 }
 0x6b9   : > { %v5634_v30 = vrot.slane %v5598_v36, 1  ;;  %v5602_v39 = vmax.f32 %v5586_v37, 0.0 }
 0x6ba   : > { %v5636_v7 = vrot.slane %v5599_v45, 1  ;;  %v5603_v16 = vmax.f32 %v5587_v59, 0.0 }
 0x6bb   : > { %v5635_v56 = vsel %vm1419_vm3, %v5623_v49, %v5634_v30  ;;  %v5642_v50 = vrot.slane %v5602_v39, 1 }
 0x6bc   : > { %v5670_v51 = vmax.f32 %v5594_v9, %v5635_v56  ;;  %v5644_v32 = vrot.slane %v5603_v16, 1  ;;  %v5637_v54 = vsel %vm1419_vm3, %v5626_v28, %v5636_v7 }
 0x6bd   : > { %v5643_v43 = vsel %vm1419_vm3, %v5634_v30, %v5642_v50  ;;  %v5678_v15 = vmax.f32 %v5602_v39, %v5642_v50  ;;  %v5671_v14 = vmax.f32 %v5595_v40, %v5637_v54 }
 0x6be   : > { %v5674_v12 = vmax.f32 %v5598_v36, %v5643_v43  ;;  %v5645_v11 = vsel %vm1419_vm3, %v5636_v7, %v5644_v32  ;;  %v5679_v20 = vmax.f32 %v5603_v16, %v5644_v32  ;;  %v9722_v13 = vpack.c.bf16 %v5670_v51, %v5666_v55 }
 0x6bf   : > { %v5675_v46 = vmax.f32 %v5599_v45, %v5645_v11  ;;  %v9720_v35 = vpack.c.bf16 %v5671_v14, %v5667_v23 }
 0x6c0   : > { %v9727_v29 = vpack.c.bf16 %v5678_v15, %v5674_v12 }
 0x6c1   : > { %v9724_v22 = vpack.c.bf16 %v5679_v20, %v5675_v46  ;;  %9721 = vmatprep.subr.bf16.mxu0 %v9720_v35  ;;  %v5906_v20 = vld [vmem:[%s14500_s8 + $0x8] sm:$0xff]  ;;  %v5905_v46 = vld [vmem:[%s14500_s8] sm:$0xff] }
 0x6c2   : > { %9723 = vmatpush1.bf16.msra.mxu0 %v9722_v13  ;;  %v5908_v13 = vld [vmem:[%s14500_s8 + $0x18] sm:$0xff] }
 0x6c3   : > { %9726 = vmatprep.subr.msk.bf16.mxu0 %vm13241_vm14, %v9724_v22  ;;  %v9740_v35 = vpack.c.bf16 %v5908_v13, %v5906_v20  ;;  %v5912_v22 = vld [vmem:[%s14500_s8 + $0x38] sm:$0xff]  ;;  %v5945_v13 = vld [vmem:[%s14500_s8 + $0x140] sm:$0xff] }
 0x6c6   : > { %9729 = vmatpush1.bf16.msk.msra.mxu0 %vm13241_vm14, %v9727_v29  ;;  %v5907_v29 = vld [vmem:[%s14500_s8 + $0x10] sm:$0xff] }
 0x6c9   : > { %9300 = vmatmul.mubr.msk.f32.vlgmr.msra.gmra.mrb[32].mxu0 %vm5684_vm15, %v13252_v58 }
 0x6ca   : > { %5774 = vmatprep.mubr.f32.mxu0 %v10893_v63 }
 0x6cd   : > { %9301 = vmatmul.mubr.msk.f32.gmra.mrb[34].mxu0 %vm5684_vm15, %v5683_v53 }
 0x6ce   : > { %5845 = vmatprep.mubr.f32.mxu0 %v10893_v63 }
 0x6dc   : > { %v5517_v31 = vpop.f32.mrb[92].mxu1 }
 0x6dd   : > { %v5576_v41 = vadd.f32 %v5565_v62, %v5517_v31  ;;  %v5519_v3 = vpop.f32.mrb[93].mxu1  ;;  %v5916_v31 = vld [vmem:[%s14500_s8 + $0x58] sm:$0xff] }
 0x6de   : > { %v5577_v0 = vadd.f32 %v5569_v33, %v5519_v3  ;;  %v5521_v34 = vpop.f32.mrb[94].mxu1 }
 0x6df   : > { %v5592_v17 = vmax.f32 %v5576_v41, 0.0  ;;  %v5580_v21 = vadd.f32 %v5565_v62, %v5521_v34  ;;  %v5523_v19 = vpop.f32.mrb[95].mxu1  ;;  %v5915_v34 = vld [vmem:[%s14500_s8 + $0x50] sm:$0xff] }
 0x6e0   : > { %v5593_v2 = vmax.f32 %v5577_v0, 0.0  ;;  %v5581_v6 = vadd.f32 %v5569_v33, %v5523_v19  ;;  %v5913_v0 = vld [vmem:[%s14500_s8 + $0x40] sm:$0xff] }
 0x6e1   : > { %v5596_v10 = vmax.f32 %v5580_v21, 0.0  ;;  %v5628_v4 = vrot.slane %v5592_v17, 1  ;;  %v5920_v21 = vld [vmem:[%s14500_s8 + $0x78] sm:$0xff]  ;;  %v9750_v19 = vpack.c.bf16 %v5915_v34, %v5913_v0  ;;  %v5958_v0 = vld [vmem:[%s14500_s8 + $0x1a8] sm:$0xff] }
 0x6e2   : > { %v5597_v18 = vmax.f32 %v5581_v6, 0.0  ;;  %v5631_v40 = vrot.slane %v5593_v2, 1  ;;  %v5917_v6 = vld [vmem:[%s14500_s8 + $0x60] sm:$0xff]  ;;  %v5960_v34 = vld [vmem:[%s14500_s8 + $0x1b8] sm:$0xff] }
 0x6e3   : > { %v5629_v9 = vrot.slane %v5596_v10, 1 }
 0x6e4   : > { %v5632_v60 = vrot.slane %v5597_v18, 1  ;;  %v5527_v8 = vpop.f32.mrb[96].mxu1 }
 0x6e5   : > { %v5630_v42 = vsel %vm1419_vm3, %v5628_v4, %v5629_v9  ;;  %v5584_v52 = vadd.f32 %v5565_v62, %v5527_v8  ;;  %v5529_v49 = vpop.f32.mrb[97].mxu1  ;;  %v5924_v4 = vld [vmem:[%s14500_s8 + $0x98] sm:$0xff]  ;;  %v5923_v8 = vld [vmem:[%s14500_s8 + $0x90] sm:$0xff] }
 0x6e6   : > { %v5668_v26 = vmax.f32 %v5592_v17, %v5630_v42  ;;  %v5585_v28 = vadd.f32 %v5569_v33, %v5529_v49  ;;  %v5531_v24 = vpop.f32.mrb[98].mxu1  ;;  %v5633_v48 = vsel %vm1419_vm3, %v5631_v40, %v5632_v60  ;;  %v5918_v17 = vld [vmem:[%s14500_s8 + $0x68] sm:$0xff] }
 0x6e7   : > { %v5600_v61 = vmax.f32 %v5584_v52, 0.0  ;;  %v5588_v27 = vadd.f32 %v5565_v62, %v5531_v24  ;;  %v5533_v55 = vpop.f32.mrb[99].mxu1  ;;  %v5669_v5 = vmax.f32 %v5593_v2, %v5633_v48  ;;  %v5911_v62 = vld [vmem:[%s14500_s8 + $0x30] sm:$0xff]  ;;  %v9752_v2 = vpack.c.bf16 %v5920_v21, %v5918_v17  ;;  %v5926_v42 = vld [vmem:[%s14500_s8 + $0xa8] sm:$0xff]  ;;  %v5928_v52 = vld [vmem:[%s14500_s8 + $0xb8] sm:$0xff] }
 0x6e8   : > { %v5601_v38 = vmax.f32 %v5585_v28, 0.0  ;;  %v5589_v47 = vadd.f32 %v5569_v33, %v5533_v55  ;;  %v5914_v33 = vld [vmem:[%s14500_s8 + $0x48] sm:$0xff]  ;;  %v9746_v41 = vpack.c.bf16 %v5911_v62, %v5909_v25  ;;  %v5925_v28 = vld [vmem:[%s14500_s8 + $0xa0] sm:$0xff]  ;;  %v5927_v24 = vld [vmem:[%s14500_s8 + $0xb0] sm:$0xff]  ;;  %v9792_v21 = vpack.c.bf16 %v5960_v34, %v5958_v0 }
 0x6e9   : > { %v5638_v36 = vrot.slane %v5600_v61, 1  ;;  %v5604_v37 = vmax.f32 %v5588_v27, 0.0  ;;  %v9748_v3 = vpack.c.bf16 %v5916_v31, %v5914_v33  ;;  %v5930_v48 = vld [vmem:[%s14500_s8 + $0xc8] sm:$0xff]  ;;  %v9762_v27 = vpack.c.bf16 %v5927_v24, %v5925_v28  ;;  %v5956_v62 = vld [vmem:[%s14500_s8 + $0x198] sm:$0xff]  ;;  %v5965_v24 = vld [vmem:[%s14500_s8 + $0x1e0] sm:$0xff] }
 0x6ea   : > { %v5640_v44 = vrot.slane %v5601_v38, 1  ;;  %v5605_v23 = vmax.f32 %v5589_v47, 0.0  ;;  %v5934_v47 = vld [vmem:[%s14500_s8 + $0xe8] sm:$0xff]  ;;  %v5968_v28 = vld [vmem:[%s14500_s8 + $0x1f8] sm:$0xff] }
 0x6eb   : > { %v5639_v45 = vsel %vm1419_vm3, %v5629_v9, %v5638_v36  ;;  %v5646_v59 = vrot.slane %v5604_v37, 1  ;;  %v5954_v25 = vld [vmem:[%s14500_s8 + $0x188] sm:$0xff] }
 0x6ec   : > { %v5672_v30 = vmax.f32 %v5596_v10, %v5639_v45  ;;  %v5648_v39 = vrot.slane %v5605_v23, 1  ;;  %v5641_v7 = vsel %vm1419_vm3, %v5632_v60, %v5640_v44  ;;  %v5919_v10 = vld [vmem:[%s14500_s8 + $0x70] sm:$0xff]  ;;  %v5921_v60 = vld [vmem:[%s14500_s8 + $0x80] sm:$0xff]  ;;  %v9788_v31 = vpack.c.bf16 %v5956_v62, %v5954_v25  ;;  %v5978_v34 = vld [vmem:[%s14500_s8 + $0x248] sm:$0xff] }
 0x6ed   : > { %v5647_v16 = vsel %vm1419_vm3, %v5638_v36, %v5646_v59  ;;  %v5680_v56 = vmax.f32 %v5604_v37, %v5646_v59  ;;  %v5673_v50 = vmax.f32 %v5597_v18, %v5641_v7  ;;  %v5922_v18 = vld [vmem:[%s14500_s8 + $0x88] sm:$0xff]  ;;  %v9754_v9 = vpack.c.bf16 %v5919_v10, %v5917_v6  ;;  %v5936_v36 = vld [vmem:[%s14500_s8 + $0xf8] sm:$0xff]  ;;  %v5935_v45 = vld [vmem:[%s14500_s8 + $0xf0] sm:$0xff] }
 0x6ee   : > { %v5676_v51 = vmax.f32 %v5600_v61, %v5647_v16  ;;  %v5649_v32 = vsel %vm1419_vm3, %v5640_v44, %v5648_v39  ;;  %v5681_v54 = vmax.f32 %v5605_v23, %v5648_v39  ;;  %v9732_v43 = vpack.c.bf16 %v5672_v30, %v5668_v26  ;;  %v5932_v61 = vld [vmem:[%s14500_s8 + $0xd8] sm:$0xff]  ;;  %v5933_v23 = vld [vmem:[%s14500_s8 + $0xe0] sm:$0xff]  ;;  %v5938_v59 = vld [vmem:[%s14500_s8 + $0x108] sm:$0xff] }
 0x6ef   : > { %v5677_v15 = vmax.f32 %v5601_v38, %v5649_v32  ;;  %v9730_v14 = vpack.c.bf16 %v5673_v50, %v5669_v5  ;;  %v9756_v40 = vpack.c.bf16 %v5924_v4, %v5922_v18  ;;  %v9758_v49 = vpack.c.bf16 %v5923_v8, %v5921_v60  ;;  %v5929_v5 = vld [vmem:[%s14500_s8 + $0xc0] sm:$0xff]  ;;  %v5931_v38 = vld [vmem:[%s14500_s8 + $0xd0] sm:$0xff]  ;;  %v5940_v30 = vld [vmem:[%s14500_s8 + $0x118] sm:$0xff] }
 0x6f0   : > { %v9737_v12 = vpack.c.bf16 %v5680_v56, %v5676_v51  ;;  %v9760_v26 = vpack.c.bf16 %v5928_v52, %v5926_v42  ;;  %v9764_v55 = vpack.c.bf16 %v5932_v61, %v5930_v48  ;;  %v9766_v37 = vpack.c.bf16 %v5931_v38, %v5929_v5  ;;  %v5937_v16 = vld [vmem:[%s14500_s8 + $0x100] sm:$0xff]  ;;  %v5939_v56 = vld [vmem:[%s14500_s8 + $0x110] sm:$0xff]  ;;  %v5942_v50 = vld [vmem:[%s14500_s8 + $0x128] sm:$0xff] }
 0x6f1   : > { %v9734_v11 = vpack.c.bf16 %v5681_v54, %v5677_v15  ;;  %9731 = vmatprep.subr.bf16.mxu0 %v9730_v14  ;;  %v9768_v44 = vpack.c.bf16 %v5936_v36, %v5934_v47  ;;  %v9770_v39 = vpack.c.bf16 %v5935_v45, %v5933_v23  ;;  %v9772_v7 = vpack.c.bf16 %v5940_v30, %v5938_v59  ;;  %v5944_v51 = vld [vmem:[%s14500_s8 + $0x138] sm:$0xff]  ;;  %v5943_v15 = vld [vmem:[%s14500_s8 + $0x130] sm:$0xff]  ;;  %v5946_v14 = vld [vmem:[%s14500_s8 + $0x148] sm:$0xff] }
 0x6f2   : > { %9733 = vmatpush1.bf16.msra.mxu0 %v9732_v43  ;;  %v9774_v32 = vpack.c.bf16 %v5939_v56, %v5937_v16  ;;  %v9776_v54 = vpack.c.bf16 %v5944_v51, %v5942_v50  ;;  %v5941_v43 = vld [vmem:[%s14500_s8 + $0x120] sm:$0xff]  ;;  %v5962_v6 = vld [vmem:[%s14500_s8 + $0x1c8] sm:$0xff]  ;;  %v5964_v18 = vld [vmem:[%s14500_s8 + $0x1d8] sm:$0xff]  ;;  %vm8201_vm3 = vcmask 1043456  }
 0x6f3   : > { %9736 = vmatprep.subr.msk.bf16.mxu0 %vm13241_vm14, %v9734_v11  ;;  %v9778_v11 = vpack.c.bf16 %v5943_v15, %v5941_v43  ;;  %v9796_v4 = vpack.c.bf16 %v5964_v18, %v5962_v6  ;;  %v5967_v61 = vld [vmem:[%s14500_s8 + $0x1f0] sm:$0xff]  ;;  %v5972_v5 = vld [vmem:[%s14500_s8 + $0x218] sm:$0xff]  ;;  %v10658_v50 = vld [vmem:[%s14501_s9 + $0x2a0] sm:$0xff]  }
 0x6f4   : > { %v10646_v59 = vld [vmem:[%s14501_s9 + $0x270] sm:$0xff]   ;;  %v10648_v30 = vld [vmem:[%s14501_s9 + $0x278] sm:$0xff]   ;;  %v10660_v51 = vld [vmem:[%s14501_s9 + $0x2a8] sm:$0xff]  }
 0x6f5   : > { %7186 = vmatpush1.bf16.msra.mxu1 %v10646_v59  ;;  %v10654_v16 = vld [vmem:[%s14501_s9 + $0x290] sm:$0xff]   ;;  %v10656_v56 = vld [vmem:[%s14501_s9 + $0x298] sm:$0xff]   ;;  %v10666_v43 = vld [vmem:[%s14501_s9 + $0x2c0] sm:$0xff]  }
 0x6f6   : > { %9739 = vmatpush1.bf16.msk.msra.mxu0 %vm13241_vm14, %v9737_v12  ;;  %v5948_v12 = vld [vmem:[%s14500_s8 + $0x158] sm:$0xff]  ;;  %7187 = vmatprep.subr.bf16.mxu1 %v10892_v1  ;;  %v5989_v59 = vld [vmem:[%s14500_s8 + $0x2a0] sm:$0xff] }
 0x6f7   : > { %9741 = vmatprep.subr.bf16.mxu0 %v9740_v35  ;;  %v9780_v20 = vpack.c.bf16 %v5948_v12, %v5946_v14  ;;  %v5950_v35 = vld [vmem:[%s14500_s8 + $0x168] sm:$0xff] }
 0x6f9   : > { %9304 = vmatmul.mubr.msk.f32.vlgmr.msra.gmra.mrb[36].mxu0 %vm5684_vm15, %v13252_v58  ;;  %v9742_v58 = vpack.c.bf16 %v5907_v29, %v5905_v46  ;;  %v5947_v46 = vld [vmem:[%s14500_s8 + $0x150] sm:$0xff]  ;;  %v5952_v29 = vld [vmem:[%s14500_s8 + $0x178] sm:$0xff]  ;;  %7188 = vmatpush1.bf16.msra.mxu1 %v10648_v30 }
 0x6fa   : > { %5851 = vmatprep.mubr.f32.mxu0 %v10893_v63  ;;  %7189 = vmatprep.subr.bf16.mxu1 %v10892_v1  ;;  %v5991_v30 = vld [vmem:[%s14500_s8 + $0x2b0] sm:$0xff] }
 0x6fb   : > { %9743 = vmatpush1.bf16.msra.mxu0 %v9742_v58  ;;  %v5949_v58 = vld [vmem:[%s14500_s8 + $0x160] sm:$0xff] }
 0x6fd   : > { %9305 = vmatmul.mubr.msk.f32.gmra.mrb[38].mxu0 %vm5684_vm15, %v5683_v53  ;;  %v9744_v53 = vpack.c.bf16 %v5912_v22, %v5910_v57  ;;  %v9782_v57 = vpack.c.bf16 %v5947_v46, %v5945_v13  ;;  %v9784_v22 = vpack.c.bf16 %v5952_v29, %v5950_v35  ;;  %v5971_v13 = vld [vmem:[%s14500_s8 + $0x210] sm:$0xff]  ;;  %v5974_v46 = vld [vmem:[%s14500_s8 + $0x228] sm:$0xff]  ;;  %v5976_v35 = vld [vmem:[%s14500_s8 + $0x238] sm:$0xff] }
 0x6ff   : > { %9745 = vmatprep.subr.bf16.mxu0 %v9744_v53  ;;  %v5951_v53 = vld [vmem:[%s14500_s8 + $0x170] sm:$0xff] }
 0x700   : > { %9747 = vmatpush1.bf16.msra.mxu0 %v9746_v41  ;;  %v9786_v33 = vpack.c.bf16 %v5951_v53, %v5949_v58  ;;  %v5953_v41 = vld [vmem:[%s14500_s8 + $0x180] sm:$0xff] }
 0x701   : > { %9749 = vmatprep.subr.bf16.mxu0 %v9748_v3  ;;  %v5955_v3 = vld [vmem:[%s14500_s8 + $0x190] sm:$0xff] }
 0x702   : > { %v9790_v17 = vpack.c.bf16 %v5955_v3, %v5953_v41  ;;  %v5973_v41 = vld [vmem:[%s14500_s8 + $0x220] sm:$0xff]  ;;  %v5975_v3 = vld [vmem:[%s14500_s8 + $0x230] sm:$0xff] }
 0x703   : > { %v9810_v18 = vpack.c.bf16 %v5975_v3, %v5973_v41 }
 0x704   : > { %9751 = vmatpush1.bf16.msra.mxu0 %v9750_v19  ;;  %v5957_v19 = vld [vmem:[%s14500_s8 + $0x1a0] sm:$0xff] }
 0x705   : > { %9753 = vmatprep.subr.bf16.mxu0 %v9752_v2  ;;  %v5959_v2 = vld [vmem:[%s14500_s8 + $0x1b0] sm:$0xff] }
 0x706   : > { %v9794_v10 = vpack.c.bf16 %v5959_v2, %v5957_v19 }
 0x708   : > { %9755 = vmatpush1.bf16.msra.mxu0 %v9754_v9  ;;  %v5961_v9 = vld [vmem:[%s14500_s8 + $0x1c0] sm:$0xff] }
 0x709   : > { %9757 = vmatprep.subr.bf16.mxu0 %v9756_v40  ;;  %v5963_v40 = vld [vmem:[%s14500_s8 + $0x1d0] sm:$0xff] }
 0x70a   : > { %v9798_v60 = vpack.c.bf16 %v5963_v40, %v5961_v9  ;;  %v5977_v40 = vld [vmem:[%s14500_s8 + $0x240] sm:$0xff] }
 0x70c   : > { %9759 = vmatpush1.bf16.msra.mxu0 %v9758_v49 }
 0x70d   : > { %9761 = vmatprep.subr.bf16.mxu0 %v9760_v26  ;;  %v5966_v26 = vld [vmem:[%s14500_s8 + $0x1e8] sm:$0xff] }
 0x70e   : > { %v9800_v48 = vpack.c.bf16 %v5968_v28, %v5966_v26  ;;  %v5981_v26 = vld [vmem:[%s14500_s8 + $0x260] sm:$0xff]  ;;  %v5983_v28 = vld [vmem:[%s14500_s8 + $0x270] sm:$0xff] }
 0x710   : > { %9763 = vmatpush1.bf16.msra.mxu0 %v9762_v27  ;;  %v9802_v27 = vpack.c.bf16 %v5967_v61, %v5965_v24  ;;  %v5986_v24 = vld [vmem:[%s14500_s8 + $0x288] sm:$0xff]  ;;  %v9818_v61 = vpack.c.bf16 %v5983_v28, %v5981_v26  ;;  %v10671_v26 = vld [vmem:[%s14501_s9] sm:$0xff]  }
 0x711   : > { %9765 = vmatprep.subr.bf16.mxu0 %v9764_v55  ;;  %v5970_v55 = vld [vmem:[%s14500_s8 + $0x208] sm:$0xff]  ;;  %v10672_v28 = vld [vmem:[%s14501_s9 + $0x340] sm:$0xff]  }
 0x712   : > { %v9804_v38 = vpack.c.bf16 %v5972_v5, %v5970_v55  ;;  %v5985_v55 = vld [vmem:[%s14500_s8 + $0x280] sm:$0xff]  ;;  %v5987_v5 = vld [vmem:[%s14500_s8 + $0x290] sm:$0xff] }
 0x714   : > { %9767 = vmatpush1.bf16.msra.mxu0 %v9766_v37 }
 0x715   : > { %9769 = vmatprep.subr.bf16.mxu0 %v9768_v44 }
 0x718   : > { %9771 = vmatpush1.bf16.msra.mxu0 %v9770_v39  ;;  %v10650_v39 = vld [vmem:[%s14501_s9 + $0x280] sm:$0xff]  }
 0x719   : > { %9773 = vmatprep.subr.bf16.mxu0 %v9772_v7  ;;  %7190 = vmatpush1.bf16.msra.mxu1 %v10650_v39  ;;  %v10652_v7 = vld [vmem:[%s14501_s9 + $0x288] sm:$0xff]  }
 0x71a   : > { %7191 = vmatprep.subr.bf16.mxu1 %v10892_v1  ;;  %v5994_v39 = vld [vmem:[%s14500_s8 + $0x2c8] sm:$0xff] }
 0x71c   : > { %9775 = vmatpush1.bf16.msra.mxu0 %v9774_v32  ;;  %v10662_v32 = vld [vmem:[%s14501_s9 + $0x2b0] sm:$0xff]  }
 0x71d   : > { %9777 = vmatprep.subr.bf16.mxu0 %v9776_v54  ;;  %7192 = vmatpush1.bf16.msra.mxu1 %v10652_v7  ;;  %v10664_v54 = vld [vmem:[%s14501_s9 + $0x2b8] sm:$0xff]  }
 0x71e   : > { %7193 = vmatprep.subr.bf16.mxu1 %v10892_v1  ;;  %v5996_v7 = vld [vmem:[%s14500_s8 + $0x2d8] sm:$0xff] }
 0x720   : > { %9779 = vmatpush1.bf16.msra.mxu0 %v9778_v11 }
 0x721   : > { %9781 = vmatprep.subr.bf16.mxu0 %v9780_v20  ;;  %7194 = vmatpush1.bf16.msra.mxu1 %v10654_v16  ;;  %v5969_v20 = vld [vmem:[%s14500_s8 + $0x200] sm:$0xff]  ;;  %v9826_v16 = vpack.c.bf16 %v5991_v30, %v5989_v59  ;;  %v10681_v30 = vld [vmem:[%s14501_s9 + $0x28] sm:$0xff]  }
 0x722   : > { %7195 = vmatprep.subr.bf16.mxu1 %v10892_v1  ;;  %v9806_v25 = vpack.c.bf16 %v5971_v13, %v5969_v20  ;;  %v5999_v20 = vld [vmem:[%s14500_s8 + $0x2f0] sm:$0xff]  ;;  %v6002_v13 = vld [vmem:[%s14500_s8 + $0x308] sm:$0xff]  ;;  %v10680_v59 = vld [vmem:[%s14501_s9 + $0x360] sm:$0xff]  }
 0x724   : > { %9783 = vmatpush1.bf16.msra.mxu0 %v9782_v57 }
 0x725   : > { %9785 = vmatprep.subr.bf16.mxu0 %v9784_v22  ;;  %7196 = vmatpush1.bf16.msra.mxu1 %v10656_v56  ;;  %v9828_v56 = vpack.c.bf16 %v5996_v7, %v5994_v39  ;;  %v10682_v39 = vld [vmem:[%s14501_s9 + $0x368] sm:$0xff]   ;;  %v10683_v7 = vld [vmem:[%s14501_s9 + $0x30] sm:$0xff]  }
 0x726   : > { %7197 = vmatprep.subr.bf16.mxu1 %v10892_v1 }
 0x728   : > { %9787 = vmatpush1.bf16.msra.mxu0 %v9786_v33 }
 0x729   : > { %9789 = vmatprep.subr.bf16.mxu0 %v9788_v31  ;;  %7198 = vmatpush1.bf16.msra.mxu1 %v10658_v50  ;;  %v9808_v31 = vpack.c.bf16 %v5976_v35, %v5974_v46  ;;  %v5993_v50 = vld [vmem:[%s14500_s8 + $0x2c0] sm:$0xff]  ;;  %v6004_v46 = vld [vmem:[%s14500_s8 + $0x318] sm:$0xff] }
 0x72a   : > { %7199 = vmatprep.subr.bf16.mxu1 %v10892_v1 }
 0x72c   : > { %9791 = vmatpush1.bf16.msra.mxu0 %v9790_v17  ;;  %v5980_v17 = vld [vmem:[%s14500_s8 + $0x258] sm:$0xff] }
 0x72d   : > { %9793 = vmatprep.subr.bf16.mxu0 %v9792_v21  ;;  %7200 = vmatpush1.bf16.msra.mxu1 %v10660_v51  ;;  %v9812_v9 = vpack.c.bf16 %v5980_v17, %v5978_v34  ;;  %v5995_v51 = vld [vmem:[%s14500_s8 + $0x2d0] sm:$0xff]  ;;  %v10659_v34 = vld [vmem:[%s14501_s9 + $0xa0] sm:$0xff]   ;;  %v10661_v17 = vld [vmem:[%s14501_s9 + $0xa8] sm:$0xff]  }
 0x72e   : > { %7201 = vmatprep.subr.bf16.mxu1 %v10892_v1 }
 0x730   : > { %9795 = vmatpush1.bf16.msra.mxu0 %v9794_v10 }
 0x731   : > { %9797 = vmatprep.subr.bf16.mxu0 %v9796_v4  ;;  %7202 = vmatpush1.bf16.msra.mxu1 %v10662_v32  ;;  %v5998_v32 = vld [vmem:[%s14500_s8 + $0x2e8] sm:$0xff] }
 0x732   : > { %7203 = vmatprep.subr.bf16.mxu1 %v10892_v1 }
 0x734   : > { %9799 = vmatpush1.bf16.msra.mxu0 %v9798_v60  ;;  %v5979_v60 = vld [vmem:[%s14500_s8 + $0x250] sm:$0xff] }
 0x735   : > { %9801 = vmatprep.subr.bf16.mxu0 %v9800_v48  ;;  %7204 = vmatpush1.bf16.msra.mxu1 %v10664_v54  ;;  %v5988_v48 = vld [vmem:[%s14500_s8 + $0x298] sm:$0xff] }
 0x736   : > { %7205 = vmatprep.subr.bf16.mxu1 %v10892_v1  ;;  %v6000_v54 = vld [vmem:[%s14500_s8 + $0x2f8] sm:$0xff] }
 0x738   : > { %9803 = vmatpush1.bf16.msra.mxu0 %v9802_v27  ;;  %v9820_v27 = vpack.c.bf16 %v5988_v48, %v5986_v24 }
 0x739   : > { %9805 = vmatprep.subr.bf16.mxu0 %v9804_v38  ;;  %7206 = vmatpush1.bf16.msra.mxu1 %v10666_v43  ;;  %v5990_v38 = vld [vmem:[%s14500_s8 + $0x2a8] sm:$0xff]  ;;  %v9830_v43 = vpack.c.bf16 %v5995_v51, %v5993_v50  ;;  %v10686_v50 = vld [vmem:[%s14501_s9 + $0x378] sm:$0xff]   ;;  %v10687_v51 = vld [vmem:[%s14501_s9 + $0x40] sm:$0xff]  }
 0x73a   : > { %7207 = vmatprep.subr.bf16.mxu1 %v10892_v1 }
 0x79c   : > { %v13461_v8 = vpop.f32.mrb[32].mxu0 }
 0x79d   : > { %v13463_v42 = vpop.f32.mrb[33].mxu0  ;;  %5866 = vrot.lane.b32.xlu1 %v13461_v8, %s10896_s23 }
 0x7a0   : > { %v13466_v52 = vpop.f32.mrb[34].mxu0 }
 0x7a1   : > { %v13468_v49 = vpop.f32.mrb[35].mxu0  ;;  %5874 = vrot.lane.b32.xlu1 %v13466_v52, %s10896_s23 }
 0x7cc   : > { %v13489_v47 = vpop.f32.mrb[36].mxu0 }
 0x7cd   : > { %v10045_v36 = vpack.i.bf16 %v13489_v47, %v13463_v42  ;;  %v13493_v37 = vpop.f32.mrb[37].mxu0 }
 0x7cf   : > { %10046 = vrot.lane.b32.xlu0 %v10045_v36, %s10896_s23  ;;  %v5992_v36 = vld [vmem:[%s14500_s8 + $0x2b8] sm:$0xff] }
 0x7d0   : > { %v13495_v44 = vpop.f32.mrb[38].mxu0 }
 0x7d1   : > { %v10050_v23 = vpack.i.bf16 %v13495_v44, %v13468_v49  ;;  %v13499_v45 = vpop.f32.mrb[39].mxu0 }
 0x7d2   : > { %5880 = vrot.lane.b32.xlu1 %v13499_v45, %s10896_s23 }
 0x7d3   : > { %10051 = vrot.lane.b32.xlu0 %v10050_v23, %s10896_s23  ;;  %v9824_v23 = vpack.c.bf16 %v5992_v36, %v5990_v38  ;;  %v10676_v38 = vld [vmem:[%s14501_s9 + $0x350] sm:$0xff]   ;;  %v10677_v36 = vld [vmem:[%s14501_s9 + $0x18] sm:$0xff]  }
 0x7d7   : > { %5872 = vrot.lane.b32.xlu0 %v13493_v37, %s10896_s23  ;;  %s14450_s23 = scalar_lea.hbm %s14507_s15, %s9506_s29 }
 0x80f   : > { %v5867_v15 = vpop.permute.xlu1 %5866 }
 0x813   : > { %v5875_v0 = vpop.permute.xlu1 %5874 }
 0x841   : > { %v13547_v14 = vpop.permute.xlu0 %10046 }
 0x842   : > { %v10049_v12 = vunpack.i.h.bf16 %v13547_v14  ;;  %v10048_v11 = vunpack.i.l.bf16 %v13547_v14  ;;  %v10647_v14 = vld [vmem:[%s14501_s9 + $0x70] sm:$0xff]  }
 0x844   : > { %v5883_v29 = vsel %vm5882_vm0, %v5867_v15, %v10048_v11  ;;  %v5884_v57 = vsel %vm5882_vm0, %v10048_v11, %v10049_v12  ;;  %v9832_v15 = vpack.c.bf16 %v6000_v54, %v5998_v32  ;;  %v5997_v11 = vld [vmem:[%s14500_s8 + $0x2e0] sm:$0xff]  ;;  %v10689_v54 = vld [vmem:[%s14501_s9 + $0x48] sm:$0xff]  }
 0x845   : > { %v5897_v22 = vmax.f32 %v13461_v8, %v5883_v29  ;;  %v13568_v58 = vpop.permute.xlu0 %10051  ;;  %v5898_v53 = vmax.f32 %v13463_v42, %v5884_v57  ;;  %v5982_v8 = vld [vmem:[%s14500_s8 + $0x268] sm:$0xff]  ;;  %v5984_v42 = vld [vmem:[%s14500_s8 + $0x278] sm:$0xff]  ;;  %v9834_v35 = vpack.c.bf16 %v5999_v20, %v5997_v11  ;;  %v9836_v29 = vpack.c.bf16 %v6004_v46, %v6002_v13  ;;  %v6001_v57 = vld [vmem:[%s14500_s8 + $0x300] sm:$0xff] }
 0x846   : > { %v10054_v62 = vunpack.i.h.bf16 %v13568_v58  ;;  %v10053_v33 = vunpack.i.l.bf16 %v13568_v58  ;;  %v10655_v58 = vld [vmem:[%s14501_s9 + $0x90] sm:$0xff]   ;;  %v10688_v32 = vld [vmem:[%s14501_s9 + $0x380] sm:$0xff]   ;;  %v10693_v20 = vld [vmem:[%s14501_s9 + $0x58] sm:$0xff]  }
 0x847   : > { %6076 = vmatprep.mubr.f32.mxu0 %v5898_v53  ;;  %v10692_v11 = vld [vmem:[%s14501_s9 + $0x390] sm:$0xff]   ;;  %v10694_v13 = vld [vmem:[%s14501_s9 + $0x398] sm:$0xff]   ;;  %v10695_v46 = vld [vmem:[%s14501_s9 + $0x60] sm:$0xff]  }
 0x848   : > { %6077 = vmatmul.mubr.f32.vlgmr.msra.gmra.mrb[40].mxu0 %v5897_v22  ;;  %v5887_v21 = vsel %vm5882_vm0, %v10053_v33, %v10054_v62  ;;  %v5886_v19 = vsel %vm5882_vm0, %v5875_v0, %v10053_v33  ;;  %v6003_v22 = vld [vmem:[%s14500_s8 + $0x310] sm:$0xff]  ;;  %v5881_v33 = vpop.permute.xlu1 %5880 }
 0x849   : > { %9807 = vmatpush1.bf16.msra.mxu0 %v9806_v25  ;;  %v13589_v2 = vpop.permute.xlu0 %5872  ;;  %v5902_v6 = vmax.f32 %v13468_v49, %v5887_v21  ;;  %v5901_v10 = vmax.f32 %v13466_v52, %v5886_v19  ;;  %v9814_v52 = vpack.c.bf16 %v5979_v60, %v5977_v40  ;;  %v9816_v49 = vpack.c.bf16 %v5984_v42, %v5982_v8  ;;  %v10663_v21 = vld [vmem:[%s14501_s9 + $0xb0] sm:$0xff]   ;;  %v10665_v19 = vld [vmem:[%s14501_s9 + $0xb8] sm:$0xff]  }
 0x84a   : > { %v5900_v4 = vmax.f32 %v13493_v37, %v13589_v2  ;;  %9809 = vmatprep.subr.bf16.mxu0 %v9808_v31  ;;  %v9822_v37 = vpack.c.bf16 %v5987_v5, %v5985_v55  ;;  %v9838_v53 = vpack.c.bf16 %v6003_v22, %v6001_v57  ;;  %v5885_v25 = vsel %vm5882_vm0, %v10049_v12, %v13589_v2  ;;  %v10645_v31 = vld [vmem:[%s14501_s9 + $0x68] sm:$0xff]   ;;  %v10667_v2 = vld [vmem:[%s14501_s9 + $0xc0] sm:$0xff]   ;;  %v10675_v5 = vld [vmem:[%s14501_s9 + $0x10] sm:$0xff]  }
 0x84b   : > { %6082 = vmatprep.mubr.f32.mxu0 %v5902_v6  ;;  %v5899_v41 = vmax.f32 %v13489_v47, %v5885_v25  ;;  %v5904_v3 = vmax.f32 %v13499_v45, %v5881_v33  ;;  %v5888_v0 = vsel %vm5882_vm0, %v10054_v62, %v5881_v33  ;;  %v10649_v47 = vld [vmem:[%s14501_s9 + $0x78] sm:$0xff]   ;;  %v10651_v45 = vld [vmem:[%s14501_s9 + $0x80] sm:$0xff]   ;;  %v10668_v6 = vld [vmem:[%s14501_s9 + $0x2c8] sm:$0xff]  }
 0x84c   : > { %6083 = vmatmul.mubr.f32.gmra.mrb[42].mxu0 %v5901_v10  ;;  %v5903_v12 = vmax.f32 %v13495_v44, %v5888_v0  ;;  %v10653_v44 = vld [vmem:[%s14501_s9 + $0x88] sm:$0xff]   ;;  %v10657_v62 = vld [vmem:[%s14501_s9 + $0x98] sm:$0xff]   ;;  %7208 = vmatpush1.bf16.msra.mxu1 %v10668_v6  ;;  %v10698_v22 = vld [vmem:[%s14501_s9 + $0x410] sm:$0xff]  }
 0x84d   : > { %9811 = vmatpush1.bf16.msra.mxu0 %v9810_v18  ;;  %9306 = vmatprep.mubr.msk.f32.mxu0 %vm6005_vm1, %v5900_v4  ;;  %v10669_v10 = vld [vmem:[%s14501_s9 + $0xc8] sm:$0xff]   ;;  %v10670_v18 = vld [vmem:[%s14501_s9 + $0x2d0] sm:$0xff]   ;;  %v10699_v33 = vld [vmem:[%s14501_s9 + $0xd8] sm:$0xff]  }
 0x84e   : > { %9813 = vmatprep.subr.bf16.mxu0 %v9812_v9  ;;  %7209 = vmatprep.subr.bf16.mxu1 %v10892_v1  ;;  %v10674_v55 = vld [vmem:[%s14501_s9 + $0x348] sm:$0xff]   ;;  %v10716_v6 = vld [vmem:[%s14501_s9 + $0x458] sm:$0xff]  }
 0x84f   : > { %v10703_v0 = vld [vmem:[%s14501_s9 + $0xe8] sm:$0xff]  }
 0x850   : > { %7210 = vmatpush1.bf16.msra.mxu1 %v10670_v18  ;;  %v10718_v18 = vld [vmem:[%s14501_s9 + $0x460] sm:$0xff]  }
 0x851   : > { %9815 = vmatpush1.bf16.msra.mxu0 %v9814_v52  ;;  %7487 = vmatprep.subr.bf16.mxu1 %v10892_v1 }
 0x852   : > { %9817 = vmatprep.subr.bf16.mxu0 %v9816_v49 }
 0x855   : > { %9819 = vmatpush1.bf16.msra.mxu0 %v9818_v61 }
 0x856   : > { %9821 = vmatprep.subr.bf16.mxu0 %v9820_v27  ;;  %v10673_v27 = vld [vmem:[%s14501_s9 + $0x8] sm:$0xff]  }
 0x859   : > { %9823 = vmatpush1.bf16.msra.mxu0 %v9822_v37  ;;  %v10678_v37 = vld [vmem:[%s14501_s9 + $0x358] sm:$0xff]  }
 0x85a   : > { %9825 = vmatprep.subr.bf16.mxu0 %v9824_v23  ;;  %v10679_v23 = vld [vmem:[%s14501_s9 + $0x20] sm:$0xff]  }
 0x85d   : > { %9827 = vmatpush1.bf16.msra.mxu0 %v9826_v16  ;;  %v10684_v16 = vld [vmem:[%s14501_s9 + $0x370] sm:$0xff]  }
 0x85e   : > { %9829 = vmatprep.subr.bf16.mxu0 %v9828_v56  ;;  %v10685_v56 = vld [vmem:[%s14501_s9 + $0x38] sm:$0xff]  }
 0x861   : > { %9831 = vmatpush1.bf16.msra.mxu0 %v9830_v43  ;;  %v10690_v43 = vld [vmem:[%s14501_s9 + $0x388] sm:$0xff]  }
 0x862   : > { %9833 = vmatprep.subr.bf16.mxu0 %v9832_v15  ;;  %v10691_v15 = vld [vmem:[%s14501_s9 + $0x50] sm:$0xff]  }
 0x865   : > { %9835 = vmatpush1.bf16.msra.mxu0 %v9834_v35  ;;  %v10696_v35 = vld [vmem:[%s14501_s9 + $0x3a0] sm:$0xff]  }
 0x866   : > { %9837 = vmatprep.subr.bf16.mxu0 %v9836_v29  ;;  %v10697_v29 = vld [vmem:[%s14501_s9 + $0xd0] sm:$0xff]  }
 0x869   : > { %9839 = vmatpush1.bf16.msra.mxu0 %v9838_v53 }
 0x86a   : > { %6309 = vmatprep.subr.bf16.mxu0 %v10892_v1 }
 0x86c   : > { %6154 = vmatmul.mubr.f32.vlgmr.msra.gmra.mrb[40].mxu0 %v5899_v41  ;;  %v10701_v41 = vld [vmem:[%s14501_s9 + $0xe0] sm:$0xff]  }
 0x86d   : > { %9307 = vmatprep.mubr.msk.f32.mxu0 %vm6005_vm1, %v5904_v3  ;;  %6310 = vmatpush1.bf16.msra.mxu0 %v10645_v31  ;;  %v10700_v31 = vld [vmem:[%s14501_s9 + $0x418] sm:$0xff]   ;;  %v10702_v3 = vld [vmem:[%s14501_s9 + $0x420] sm:$0xff]  }
 0x86e   : > { %6311 = vmatprep.subr.bf16.mxu0 %v10892_v1 }
 0x870   : > { %6160 = vmatmul.mubr.f32.gmra.mrb[42].mxu0 %v5903_v12  ;;  %v10705_v12 = vld [vmem:[%s14501_s9 + $0xf0] sm:$0xff]  }
 0x871   : > { %6312 = vmatpush1.bf16.msra.mxu0 %v10647_v14  ;;  %v10704_v14 = vld [vmem:[%s14501_s9 + $0x428] sm:$0xff]  }
 0x872   : > { %6313 = vmatprep.subr.bf16.mxu0 %v10892_v1 }
 0x875   : > { %6314 = vmatpush1.bf16.msra.mxu0 %v10649_v47  ;;  %v10706_v47 = vld [vmem:[%s14501_s9 + $0x430] sm:$0xff]  }
 0x876   : > { %6315 = vmatprep.subr.bf16.mxu0 %v10892_v1 }
 0x879   : > { %6316 = vmatpush1.bf16.msra.mxu0 %v10651_v45  ;;  %v10707_v45 = vld [vmem:[%s14501_s9 + $0xf8] sm:$0xff]  }
 0x87a   : > { %6317 = vmatprep.subr.bf16.mxu0 %v10892_v1 }
 0x87d   : > { %6318 = vmatpush1.bf16.msra.mxu0 %v10653_v44  ;;  %v10708_v44 = vld [vmem:[%s14501_s9 + $0x438] sm:$0xff]  }
 0x87e   : > { %6319 = vmatprep.subr.bf16.mxu0 %v10892_v1 }
 0x881   : > { %6320 = vmatpush1.bf16.msra.mxu0 %v10655_v58  ;;  %v10709_v58 = vld [vmem:[%s14501_s9 + $0x100] sm:$0xff]  }
 0x882   : > { %6321 = vmatprep.subr.bf16.mxu0 %v10892_v1 }
 0x885   : > { %6322 = vmatpush1.bf16.msra.mxu0 %v10657_v62  ;;  %v10710_v62 = vld [vmem:[%s14501_s9 + $0x440] sm:$0xff]  }
 0x886   : > { %6323 = vmatprep.subr.bf16.mxu0 %v10892_v1 }
 0x889   : > { %6324 = vmatpush1.bf16.msra.mxu0 %v10659_v34  ;;  %v10711_v34 = vld [vmem:[%s14501_s9 + $0x108] sm:$0xff]  }
 0x88a   : > { %6325 = vmatprep.subr.bf16.mxu0 %v10892_v1 }
 0x88d   : > { %6326 = vmatpush1.bf16.msra.mxu0 %v10661_v17  ;;  %v10712_v17 = vld [vmem:[%s14501_s9 + $0x448] sm:$0xff]  }
 0x88e   : > { %6327 = vmatprep.subr.bf16.mxu0 %v10892_v1 }
 0x891   : > { %6328 = vmatpush1.bf16.msra.mxu0 %v10663_v21  ;;  %v10713_v21 = vld [vmem:[%s14501_s9 + $0x110] sm:$0xff]  }
 0x892   : > { %6329 = vmatprep.subr.bf16.mxu0 %v10892_v1 }
 0x895   : > { %6330 = vmatpush1.bf16.msra.mxu0 %v10665_v19  ;;  %v10714_v19 = vld [vmem:[%s14501_s9 + $0x450] sm:$0xff]  }
 0x896   : > { %6331 = vmatprep.subr.bf16.mxu0 %v10892_v1 }
 0x899   : > { %6332 = vmatpush1.bf16.msra.mxu0 %v10667_v2  ;;  %v10715_v2 = vld [vmem:[%s14501_s9 + $0x118] sm:$0xff]  }
 0x89a   : > { %6333 = vmatprep.subr.bf16.mxu0 %v10892_v1 }
 0x89d   : > { %6334 = vmatpush1.bf16.msra.mxu0 %v10669_v10  ;;  %v10717_v10 = vld [vmem:[%s14501_s9 + $0x120] sm:$0xff]  }
 0x89e   : > { %6429 = vmatprep.subr.bf16.mxu0 %v10892_v1 }
 0x93f   : > { %v6155_v4 = vpop.f32.mrb[40].mxu0 }
 0x940   : > { %v6157_v9 = vpop.f32.mrb[41].mxu0 }
 0x943   : > { %v6161_v40 = vpop.f32.mrb[42].mxu0 }
 0x944   : > { %v13746_v60 = vpack.c.bf16 %v6161_v40, %v6155_v4  ;;  %v6163_v8 = vpop.f32.mrb[43].mxu0  ;;  %v10719_v4 = vld [vmem:[%s14501_s9 + $0x128] sm:$0xff]   ;;  %v10721_v40 = vld [vmem:[%s14501_s9 + $0x130] sm:$0xff]  }
 0x945   : > { %v13748_v42 = vpack.c.bf16 %v6163_v8, %v6157_v9  ;;  %v10720_v9 = vld [vmem:[%s14501_s9 + $0x468] sm:$0xff]   ;;  %v10722_v8 = vld [vmem:[%s14501_s9 + $0x470] sm:$0xff]  }
 0x946   : > { %v13761_v24 = vshrl.u32 %v13746_v60, 16  ;;  %v7101_v48 = vrot.slane %v13746_v60, 3  ;;  %v7403_v57 = vrot.slane %v13746_v60, 4 }
 0x947   : > { %v13751_v52 = vshrl.u32 %v13748_v42, 16  ;;  %v7102_v49 = vrot.slane %v13748_v42, 3  ;;  %v7404_v61 = vrot.slane %v13748_v42, 4  ;;  %v6498_v53 = vrot.slane %v13748_v42, 1 }
 0x948   : > { %v7706_v25 = vrot.slane %v13748_v42, 5 }
 0x949   : > { %9321 = vmatprep.mubr.msk.bf16.mxu0 %vm6305_vm2, %v13751_v52  ;;  %9405 = vmatprep.mubr.msk.bf16.mxu1 %vm6305_vm2, %v7102_v49  ;;  %v10723_v49 = vld [vmem:[%s14501_s9 + $0x138] sm:$0xff]  }
 0x94a   : > { %6342 = vmatmul.mubr.bf16.vlgmr.msra.gmra.mrb[44].mxu0 %v13761_v24  ;;  %7218 = vmatmul.mubr.bf16.vlgmr.msra.gmra.mrb[100].mxu1 %v7101_v48  ;;  %v7705_v48 = vrot.slane %v13746_v60, 5 }
 0x94b   : > { %6430 = vmatpush1.bf16.msra.mxu0 %v10671_v26  ;;  %7488 = vmatpush1.bf16.msra.mxu1 %v10672_v28  ;;  %v6497_v26 = vrot.slane %v13746_v60, 1  ;;  %v10724_v28 = vld [vmem:[%s14501_s9 + $0x4e0] sm:$0xff]  }
 0x94c   : > { %9335 = vmatprep.mubr.msk.bf16.mxu0 %vm6305_vm2, %v13748_v42  ;;  %9433 = vmatprep.mubr.msk.bf16.mxu1 %vm6305_vm2, %v7404_v61  ;;  %v6649_v61 = vrot.slane %v13751_v52, 1 }
 0x94d   : > { %6431 = vmatprep.subr.bf16.mxu0 %v10892_v1  ;;  %7489 = vmatprep.subr.bf16.mxu1 %v10892_v1 }
 0x94f   : > { %6432 = vmatpush1.bf16.msra.mxu0 %v10673_v27  ;;  %7490 = vmatpush1.bf16.msra.mxu1 %v10674_v55  ;;  %v8008_v27 = vrot.slane %v13748_v42, 6  ;;  %v10725_v55 = vld [vmem:[%s14501_s9 + $0x140] sm:$0xff]  }
 0x950   : > { %6433 = vmatprep.subr.bf16.mxu0 %v10892_v1  ;;  %7491 = vmatprep.subr.bf16.mxu1 %v10892_v1 }
 0x953   : > { %6434 = vmatpush1.bf16.msra.mxu0 %v10675_v5  ;;  %7492 = vmatpush1.bf16.msra.mxu1 %v10676_v38  ;;  %v10726_v5 = vld [vmem:[%s14501_s9 + $0x4e8] sm:$0xff]  }
 0x954   : > { %6435 = vmatprep.subr.bf16.mxu0 %v10892_v1  ;;  %7493 = vmatprep.subr.bf16.mxu1 %v10892_v1  ;;  %v10727_v38 = vld [vmem:[%s14501_s9 + $0x148] sm:$0xff]  }
 0x957   : > { %6436 = vmatpush1.bf16.msra.mxu0 %v10677_v36  ;;  %7494 = vmatpush1.bf16.msra.mxu1 %v10678_v37  ;;  %v10728_v36 = vld [vmem:[%s14501_s9 + $0x4f0] sm:$0xff]  }
 0x958   : > { %6437 = vmatprep.subr.bf16.mxu0 %v10892_v1  ;;  %7495 = vmatprep.subr.bf16.mxu1 %v10892_v1  ;;  %v10729_v37 = vld [vmem:[%s14501_s9 + $0x150] sm:$0xff]  }
 0x95b   : > { %6438 = vmatpush1.bf16.msra.mxu0 %v10679_v23  ;;  %7496 = vmatpush1.bf16.msra.mxu1 %v10680_v59  ;;  %v10730_v23 = vld [vmem:[%s14501_s9 + $0x4f8] sm:$0xff]  }
 0x95c   : > { %6439 = vmatprep.subr.bf16.mxu0 %v10892_v1  ;;  %7497 = vmatprep.subr.bf16.mxu1 %v10892_v1  ;;  %v10731_v59 = vld [vmem:[%s14501_s9 + $0x158] sm:$0xff]  }
 0x95f   : > { %6440 = vmatpush1.bf16.msra.mxu0 %v10681_v30  ;;  %7498 = vmatpush1.bf16.msra.mxu1 %v10682_v39  ;;  %v10732_v30 = vld [vmem:[%s14501_s9 + $0x500] sm:$0xff]  }
 0x960   : > { %6441 = vmatprep.subr.bf16.mxu0 %v10892_v1  ;;  %7499 = vmatprep.subr.bf16.mxu1 %v10892_v1  ;;  %v10733_v39 = vld [vmem:[%s14501_s9 + $0x160] sm:$0xff]  }
 0x963   : > { %6442 = vmatpush1.bf16.msra.mxu0 %v10683_v7  ;;  %7500 = vmatpush1.bf16.msra.mxu1 %v10684_v16  ;;  %v10734_v7 = vld [vmem:[%s14501_s9 + $0x508] sm:$0xff]  }
 0x964   : > { %6443 = vmatprep.subr.bf16.mxu0 %v10892_v1  ;;  %7501 = vmatprep.subr.bf16.mxu1 %v10892_v1  ;;  %v10735_v16 = vld [vmem:[%s14501_s9 + $0x168] sm:$0xff]  }
 0x967   : > { %6444 = vmatpush1.bf16.msra.mxu0 %v10685_v56  ;;  %7502 = vmatpush1.bf16.msra.mxu1 %v10686_v50  ;;  %v10736_v56 = vld [vmem:[%s14501_s9 + $0x510] sm:$0xff]  }
 0x968   : > { %6445 = vmatprep.subr.bf16.mxu0 %v10892_v1  ;;  %7503 = vmatprep.subr.bf16.mxu1 %v10892_v1  ;;  %v10737_v50 = vld [vmem:[%s14501_s9 + $0x170] sm:$0xff]  }
 0x96b   : > { %6446 = vmatpush1.bf16.msra.mxu0 %v10687_v51  ;;  %7504 = vmatpush1.bf16.msra.mxu1 %v10688_v32  ;;  %v10738_v51 = vld [vmem:[%s14501_s9 + $0x518] sm:$0xff]  }
 0x96c   : > { %6447 = vmatprep.subr.bf16.mxu0 %v10892_v1  ;;  %7505 = vmatprep.subr.bf16.mxu1 %v10892_v1  ;;  %v10739_v32 = vld [vmem:[%s14501_s9 + $0x178] sm:$0xff]  }
 0x96f   : > { %6448 = vmatpush1.bf16.msra.mxu0 %v10689_v54  ;;  %7506 = vmatpush1.bf16.msra.mxu1 %v10690_v43  ;;  %v10740_v54 = vld [vmem:[%s14501_s9 + $0x520] sm:$0xff]  }
 0x970   : > { %6449 = vmatprep.subr.bf16.mxu0 %v10892_v1  ;;  %7507 = vmatprep.subr.bf16.mxu1 %v10892_v1  ;;  %v10741_v43 = vld [vmem:[%s14501_s9 + $0x180] sm:$0xff]  }
 0x973   : > { %6450 = vmatpush1.bf16.msra.mxu0 %v10691_v15  ;;  %7508 = vmatpush1.bf16.msra.mxu1 %v10692_v11  ;;  %v10742_v15 = vld [vmem:[%s14501_s9 + $0x528] sm:$0xff]  }
 0x974   : > { %6451 = vmatprep.subr.bf16.mxu0 %v10892_v1  ;;  %7509 = vmatprep.subr.bf16.mxu1 %v10892_v1  ;;  %v10743_v11 = vld [vmem:[%s14501_s9 + $0x188] sm:$0xff]  }
 0x977   : > { %6452 = vmatpush1.bf16.msra.mxu0 %v10693_v20  ;;  %7510 = vmatpush1.bf16.msra.mxu1 %v10694_v13  ;;  %v10744_v20 = vld [vmem:[%s14501_s9 + $0x530] sm:$0xff]  }
 0x978   : > { %6453 = vmatprep.subr.bf16.mxu0 %v10892_v1  ;;  %7511 = vmatprep.subr.bf16.mxu1 %v10892_v1  ;;  %v10745_v13 = vld [vmem:[%s14501_s9 + $0x190] sm:$0xff]  }
 0x97b   : > { %6454 = vmatpush1.bf16.msra.mxu0 %v10695_v46  ;;  %7512 = vmatpush1.bf16.msra.mxu1 %v10696_v35  ;;  %v10746_v46 = vld [vmem:[%s14501_s9 + $0x538] sm:$0xff]  }
 0x97c   : > { %6581 = vmatprep.subr.bf16.mxu0 %v10892_v1  ;;  %7789 = vmatprep.subr.bf16.mxu1 %v10892_v1  ;;  %v10747_v35 = vld [vmem:[%s14501_s9 + $0x198] sm:$0xff]  }
 0x97e   : > { %6462 = vmatmul.mubr.bf16.vlgmr.msra.gmra.mrb[48].mxu0 %v13746_v60  ;;  %7520 = vmatmul.mubr.bf16.vlgmr.msra.gmra.mrb[104].mxu1 %v7403_v57  ;;  %v10749_v57 = vld [vmem:[%s14501_s9 + $0x1a0] sm:$0xff]  }
 0x97f   : > { %6582 = vmatpush1.bf16.msra.mxu0 %v10697_v29  ;;  %9349 = vmatprep.mubr.msk.bf16.mxu0 %vm6305_vm2, %v6498_v53  ;;  %v10748_v29 = vld [vmem:[%s14501_s9 + $0x540] sm:$0xff]   ;;  %v8007_v53 = vrot.slane %v13746_v60, 6 }
 0x980   : > { %7790 = vmatpush1.bf16.msra.mxu1 %v10698_v22  ;;  %9461 = vmatprep.mubr.msk.bf16.mxu1 %vm6305_vm2, %v7706_v25  ;;  %v6648_v22 = vrot.slane %v13761_v24, 1  ;;  %v6800_v25 = vrot.slane %v13748_v42, 2  ;;  %v10752_v42 = vld [vmem:[%s14501_s9 + $0x1b8] sm:$0xff]  }
 0x981   : > { %6583 = vmatprep.subr.bf16.mxu0 %v10892_v1  ;;  %7791 = vmatprep.subr.bf16.mxu1 %v10892_v1 }
 0x983   : > { %6584 = vmatpush1.bf16.msra.mxu0 %v10699_v33  ;;  %v10750_v33 = vld [vmem:[%s14501_s9 + $0x1a8] sm:$0xff]  }
 0x984   : > { %7792 = vmatpush1.bf16.msra.mxu1 %v10700_v31  ;;  %6585 = vmatprep.subr.bf16.mxu0 %v10892_v1  ;;  %v10751_v31 = vld [vmem:[%s14501_s9 + $0x1b0] sm:$0xff]  }
 0x985   : > { %7793 = vmatprep.subr.bf16.mxu1 %v10892_v1 }
 0x987   : > { %6586 = vmatpush1.bf16.msra.mxu0 %v10701_v41  ;;  %v10753_v41 = vld [vmem:[%s14501_s9 + $0x1c0] sm:$0xff]  }
 0x988   : > { %7794 = vmatpush1.bf16.msra.mxu1 %v10702_v3  ;;  %6587 = vmatprep.subr.bf16.mxu0 %v10892_v1  ;;  %v10754_v3 = vld [vmem:[%s14501_s9 + $0x1c8] sm:$0xff]  }
 0x989   : > { %7795 = vmatprep.subr.bf16.mxu1 %v10892_v1 }
 0x98b   : > { %6588 = vmatpush1.bf16.msra.mxu0 %v10703_v0  ;;  %v10755_v0 = vld [vmem:[%s14501_s9 + $0x1d0] sm:$0xff]  }
 0x98c   : > { %7796 = vmatpush1.bf16.msra.mxu1 %v10704_v14  ;;  %6589 = vmatprep.subr.bf16.mxu0 %v10892_v1  ;;  %v10756_v14 = vld [vmem:[%s14501_s9 + $0x1d8] sm:$0xff]  }
 0x98d   : > { %7797 = vmatprep.subr.bf16.mxu1 %v10892_v1 }
 0x98f   : > { %6590 = vmatpush1.bf16.msra.mxu0 %v10705_v12  ;;  %v10757_v12 = vld [vmem:[%s14501_s9 + $0x1e0] sm:$0xff]  }
 0x990   : > { %7798 = vmatpush1.bf16.msra.mxu1 %v10706_v47  ;;  %6591 = vmatprep.subr.bf16.mxu0 %v10892_v1  ;;  %v10758_v47 = vld [vmem:[%s14501_s9 + $0x1e8] sm:$0xff]  }
 0x991   : > { %7799 = vmatprep.subr.bf16.mxu1 %v10892_v1 }
 0x993   : > { %6592 = vmatpush1.bf16.msra.mxu0 %v10707_v45  ;;  %v10759_v45 = vld [vmem:[%s14501_s9 + $0x1f0] sm:$0xff]  }
 0x994   : > { %7800 = vmatpush1.bf16.msra.mxu1 %v10708_v44  ;;  %6593 = vmatprep.subr.bf16.mxu0 %v10892_v1  ;;  %v10760_v44 = vld [vmem:[%s14501_s9 + $0x1f8] sm:$0xff]  }
 0x995   : > { %7801 = vmatprep.subr.bf16.mxu1 %v10892_v1 }
 0x997   : > { %6594 = vmatpush1.bf16.msra.mxu0 %v10709_v58  ;;  %v10761_v58 = vld [vmem:[%s14501_s9 + $0x200] sm:$0xff]  }
 0x998   : > { %7802 = vmatpush1.bf16.msra.mxu1 %v10710_v62  ;;  %6595 = vmatprep.subr.bf16.mxu0 %v10892_v1  ;;  %v10762_v62 = vld [vmem:[%s14501_s9 + $0x208] sm:$0xff]  }
 0x999   : > { %7803 = vmatprep.subr.bf16.mxu1 %v10892_v1 }
 0x99b   : > { %6596 = vmatpush1.bf16.msra.mxu0 %v10711_v34  ;;  %v6799_v34 = vrot.slane %v13746_v60, 2 }
 0x99c   : > { %7804 = vmatpush1.bf16.msra.mxu1 %v10712_v17  ;;  %6597 = vmatprep.subr.bf16.mxu0 %v10892_v1  ;;  %v6951_v17 = vrot.slane %v13751_v52, 2 }
 0x99d   : > { %7805 = vmatprep.subr.bf16.mxu1 %v10892_v1 }
 0x99f   : > { %6598 = vmatpush1.bf16.msra.mxu0 %v10713_v21  ;;  %v10763_v21 = vld [vmem:[%s14501_s9 + $0x210] sm:$0xff]  }
 0x9a0   : > { %7806 = vmatpush1.bf16.msra.mxu1 %v10714_v19  ;;  %6599 = vmatprep.subr.bf16.mxu0 %v10892_v1 }
 0x9a1   : > { %7807 = vmatprep.subr.bf16.mxu1 %v10892_v1 }
 0x9a3   : > { %6600 = vmatpush1.bf16.msra.mxu0 %v10715_v2 }
 0x9a4   : > { %7808 = vmatpush1.bf16.msra.mxu1 %v10716_v6  ;;  %6601 = vmatprep.subr.bf16.mxu0 %v10892_v1 }
 0x9a5   : > { %7809 = vmatprep.subr.bf16.mxu1 %v10892_v1 }
 0x9a7   : > { %6602 = vmatpush1.bf16.msra.mxu0 %v10717_v10 }
 0x9a8   : > { %7810 = vmatpush1.bf16.msra.mxu1 %v10718_v18  ;;  %6603 = vmatprep.subr.bf16.mxu0 %v10892_v1 }
 0x9a9   : > { %7811 = vmatprep.subr.bf16.mxu1 %v10892_v1 }
 0x9ab   : > { %6604 = vmatpush1.bf16.msra.mxu0 %v10719_v4  ;;  %v10764_v4 = vld [vmem:[%s14501_s9 + $0x218] sm:$0xff]  }
 0x9ac   : > { %7812 = vmatpush1.bf16.msra.mxu1 %v10720_v9  ;;  %6605 = vmatprep.subr.bf16.mxu0 %v10892_v1 }
 0x9ad   : > { %7813 = vmatprep.subr.bf16.mxu1 %v10892_v1 }
 0x9af   : > { %6606 = vmatpush1.bf16.msra.mxu0 %v10721_v40 }
 0x9b0   : > { %7814 = vmatpush1.bf16.msra.mxu1 %v10722_v8  ;;  %6732 = vmatprep.subr.bf16.mxu0 %v10892_v1  ;;  %v10765_v8 = vld [vmem:[%s14501_s9 + $0x220] sm:$0xff]  }
 0x9b1   : > { %8091 = vmatprep.subr.bf16.mxu1 %v10892_v1 }
 0x9b2   : > { %6614 = vmatmul.mubr.bf16.vlgmr.msra.gmra.mrb[52].mxu0 %v6497_v26  ;;  %v10767_v26 = vld [vmem:[%s14501_s9 + $0x230] sm:$0xff]  }
 0x9b3   : > { %7822 = vmatmul.mubr.bf16.vlgmr.msra.gmra.mrb[108].mxu1 %v7705_v48  ;;  %6733 = vmatpush1.bf16.msra.mxu0 %v10723_v49  ;;  %v10766_v49 = vld [vmem:[%s14501_s9 + $0x228] sm:$0xff]   ;;  %v10769_v48 = vld [vmem:[%s14501_s9 + $0x240] sm:$0xff]  }
 0x9b4   : > { %9363 = vmatprep.mubr.msk.bf16.mxu0 %vm6305_vm2, %v6649_v61  ;;  %8092 = vmatpush1.bf16.msra.mxu1 %v10724_v28  ;;  %v10768_v28 = vld [vmem:[%s14501_s9 + $0x238] sm:$0xff]   ;;  %v10770_v61 = vld [vmem:[%s14501_s9 + $0x248] sm:$0xff]  }
 0x9b5   : > { %9489 = vmatprep.mubr.msk.bf16.mxu1 %vm6305_vm2, %v8008_v27  ;;  %6734 = vmatprep.subr.bf16.mxu0 %v10892_v1  ;;  %v10771_v27 = vld [vmem:[%s14501_s9 + $0x250] sm:$0xff]  }
 0x9b6   : > { %8093 = vmatprep.subr.bf16.mxu1 %v10892_v1 }
 0x9b7   : > { %6735 = vmatpush1.bf16.msra.mxu0 %v10725_v55  ;;  %v10772_v55 = vld [vmem:[%s14501_s9 + $0x258] sm:$0xff]  }
 0x9b8   : > { %8094 = vmatpush1.bf16.msra.mxu1 %v10726_v5  ;;  %6736 = vmatprep.subr.bf16.mxu0 %v10892_v1  ;;  %v10773_v5 = vld [vmem:[%s14501_s9 + $0x260] sm:$0xff]  }
 0x9b9   : > { %8095 = vmatprep.subr.bf16.mxu1 %v10892_v1 }
 0x9bb   : > { %6737 = vmatpush1.bf16.msra.mxu0 %v10727_v38  ;;  %v10774_v38 = vld [vmem:[%s14501_s9 + $0x268] sm:$0xff]  }
 0x9bc   : > { %8096 = vmatpush1.bf16.msra.mxu1 %v10728_v36  ;;  %6738 = vmatprep.subr.bf16.mxu0 %v10892_v1  ;;  %v10775_v36 = vld [vmem:[%s14501_s9 + $0x2d8] sm:$0xff]  }
 0x9bd   : > { %8097 = vmatprep.subr.bf16.mxu1 %v10892_v1 }
 0x9bf   : > { %6739 = vmatpush1.bf16.msra.mxu0 %v10729_v37  ;;  %v6950_v37 = vrot.slane %v13761_v24, 2 }
 0x9c0   : > { %8098 = vmatpush1.bf16.msra.mxu1 %v10730_v23  ;;  %6740 = vmatprep.subr.bf16.mxu0 %v10892_v1  ;;  %v7253_v23 = vrot.slane %v13751_v52, 3 }
 0x9c1   : > { %8099 = vmatprep.subr.bf16.mxu1 %v10892_v1 }
 0x9c3   : > { %6741 = vmatpush1.bf16.msra.mxu0 %v10731_v59  ;;  %v10776_v59 = vld [vmem:[%s14501_s9 + $0x2e0] sm:$0xff]  }
 0x9c4   : > { %8100 = vmatpush1.bf16.msra.mxu1 %v10732_v30  ;;  %6742 = vmatprep.subr.bf16.mxu0 %v10892_v1 }
 0x9c5   : > { %8101 = vmatprep.subr.bf16.mxu1 %v10892_v1 }
 0x9c7   : > { %6743 = vmatpush1.bf16.msra.mxu0 %v10733_v39 }
 0x9c8   : > { %8102 = vmatpush1.bf16.msra.mxu1 %v10734_v7  ;;  %6744 = vmatprep.subr.bf16.mxu0 %v10892_v1 }
 0x9c9   : > { %8103 = vmatprep.subr.bf16.mxu1 %v10892_v1 }
 0x9cb   : > { %6745 = vmatpush1.bf16.msra.mxu0 %v10735_v16 }
 0x9cc   : > { %8104 = vmatpush1.bf16.msra.mxu1 %v10736_v56  ;;  %6746 = vmatprep.subr.bf16.mxu0 %v10892_v1 }
 0x9cd   : > { %8105 = vmatprep.subr.bf16.mxu1 %v10892_v1 }
 0x9cf   : > { %6747 = vmatpush1.bf16.msra.mxu0 %v10737_v50 }
 0x9d0   : > { %8106 = vmatpush1.bf16.msra.mxu1 %v10738_v51  ;;  %6748 = vmatprep.subr.bf16.mxu0 %v10892_v1 }
 0x9d1   : > { %8107 = vmatprep.subr.bf16.mxu1 %v10892_v1 }
 0x9d3   : > { %6749 = vmatpush1.bf16.msra.mxu0 %v10739_v32  ;;  %v10777_v32 = vld [vmem:[%s14501_s9 + $0x2e8] sm:$0xff]  }
 0x9d4   : > { %8108 = vmatpush1.bf16.msra.mxu1 %v10740_v54  ;;  %6750 = vmatprep.subr.bf16.mxu0 %v10892_v1 }
 0x9d5   : > { %8109 = vmatprep.subr.bf16.mxu1 %v10892_v1 }
 0x9d7   : > { %6751 = vmatpush1.bf16.msra.mxu0 %v10741_v43 }
 0x9d8   : > { %8110 = vmatpush1.bf16.msra.mxu1 %v10742_v15  ;;  %6752 = vmatprep.subr.bf16.mxu0 %v10892_v1  ;;  %v10778_v15 = vld [vmem:[%s14501_s9 + $0x2f0] sm:$0xff]  }
 0x9d9   : > { %8111 = vmatprep.subr.bf16.mxu1 %v10892_v1 }
 0x9db   : > { %6753 = vmatpush1.bf16.msra.mxu0 %v10743_v11  ;;  %v10779_v11 = vld [vmem:[%s14501_s9 + $0x2f8] sm:$0xff]  }
 0x9dc   : > { %8112 = vmatpush1.bf16.msra.mxu1 %v10744_v20  ;;  %6754 = vmatprep.subr.bf16.mxu0 %v10892_v1  ;;  %v10780_v20 = vld [vmem:[%s14501_s9 + $0x300] sm:$0xff]  }
 0x9dd   : > { %8113 = vmatprep.subr.bf16.mxu1 %v10892_v1 }
 0x9df   : > { %6755 = vmatpush1.bf16.msra.mxu0 %v10745_v13  ;;  %v10781_v13 = vld [vmem:[%s14501_s9 + $0x308] sm:$0xff]  }
 0x9e0   : > { %8114 = vmatpush1.bf16.msra.mxu1 %v10746_v46  ;;  %6756 = vmatprep.subr.bf16.mxu0 %v10892_v1  ;;  %v10782_v46 = vld [vmem:[%s14501_s9 + $0x310] sm:$0xff]  }
 0x9e1   : > { %8115 = vmatprep.subr.bf16.mxu1 %v10892_v1 }
 0x9e3   : > { %6757 = vmatpush1.bf16.msra.mxu0 %v10747_v35  ;;  %v10783_v35 = vld [vmem:[%s14501_s9 + $0x318] sm:$0xff]  }
 0x9e4   : > { %8116 = vmatpush1.bf16.msra.mxu1 %v10748_v29  ;;  %6883 = vmatprep.subr.bf16.mxu0 %v10892_v1  ;;  %v10784_v29 = vld [vmem:[%s14501_s9 + $0x320] sm:$0xff]  }
 0x9e5   : > { %9580 = vmatprep.subr.bf16.mxu1 %v10893_v63 }
 0x9e6   : > { %6765 = vmatmul.mubr.bf16.vlgmr.msra.gmra.mrb[56].mxu0 %v6648_v22  ;;  %v10786_v22 = vld [vmem:[%s14501_s9 + $0x330] sm:$0xff]  }
 0x9e7   : > { %8124 = vmatmul.mubr.bf16.vlgmr.msra.gmra.mrb[112].mxu1 %v8007_v53  ;;  %6884 = vmatpush1.bf16.msra.mxu0 %v10749_v57  ;;  %v10785_v57 = vld [vmem:[%s14501_s9 + $0x328] sm:$0xff]   ;;  %v10787_v53 = vld [vmem:[%s14501_s9 + $0x338] sm:$0xff]  }
 0x9e8   : > { %9377 = vmatprep.mubr.msk.bf16.mxu0 %vm6305_vm2, %v6800_v25  ;;  %6885 = vmatprep.subr.bf16.mxu0 %v10892_v1  ;;  %v10788_v25 = vld [vmem:[%s14501_s9 + $0x3a8] sm:$0xff]  }
 0x9e9   : > { %9592 = vmatprep.mubr.msk.bf16.mxu1 %vm10897_vm4, %v10893_v63 }
 0x9eb   : > { %6886 = vmatpush1.bf16.msra.mxu0 %v10750_v33  ;;  %v7252_v33 = vrot.slane %v13761_v24, 3 }
 0x9ec   : > { %6887 = vmatprep.subr.bf16.mxu0 %v10892_v1 }
 0x9ef   : > { %6888 = vmatpush1.bf16.msra.mxu0 %v10751_v31  ;;  %v7555_v31 = vrot.slane %v13751_v52, 4 }
 0x9f0   : > { %6889 = vmatprep.subr.bf16.mxu0 %v10892_v1 }
 0x9f3   : > { %6890 = vmatpush1.bf16.msra.mxu0 %v10752_v42  ;;  %v10789_v42 = vld [vmem:[%s14501_s9 + $0x3b0] sm:$0xff]  }
 0x9f4   : > { %6891 = vmatprep.subr.bf16.mxu0 %v10892_v1 }
 0x9f7   : > { %6892 = vmatpush1.bf16.msra.mxu0 %v10753_v41 }
 0x9f8   : > { %6893 = vmatprep.subr.bf16.mxu0 %v10892_v1 }
 0x9fb   : > { %6894 = vmatpush1.bf16.msra.mxu0 %v10754_v3 }
 0x9fc   : > { %6895 = vmatprep.subr.bf16.mxu0 %v10892_v1 }
 0x9ff   : > { %6896 = vmatpush1.bf16.msra.mxu0 %v10755_v0 }
 0xa00   : > { %6897 = vmatprep.subr.bf16.mxu0 %v10892_v1 }
 0xa03   : > { %6898 = vmatpush1.bf16.msra.mxu0 %v10756_v14 }
 0xa04   : > { %6899 = vmatprep.subr.bf16.mxu0 %v10892_v1 }
 0xa07   : > { %6900 = vmatpush1.bf16.msra.mxu0 %v10757_v12 }
 0xa08   : > { %6901 = vmatprep.subr.bf16.mxu0 %v10892_v1 }
 0xa0b   : > { %6902 = vmatpush1.bf16.msra.mxu0 %v10758_v47 }
 0xa0c   : > { %6903 = vmatprep.subr.bf16.mxu0 %v10892_v1 }
 0xa0f   : > { %6904 = vmatpush1.bf16.msra.mxu0 %v10759_v45  ;;  %v10790_v45 = vld [vmem:[%s14501_s9 + $0x3b8] sm:$0xff]  }
 0xa10   : > { %6905 = vmatprep.subr.bf16.mxu0 %v10892_v1 }
 0xa13   : > { %6906 = vmatpush1.bf16.msra.mxu0 %v10760_v44 }
 0xa14   : > { %6907 = vmatprep.subr.bf16.mxu0 %v10892_v1 }
 0xa17   : > { %6908 = vmatpush1.bf16.msra.mxu0 %v10761_v58 }
 0xa18   : > { %7034 = vmatprep.subr.bf16.mxu0 %v10892_v1 }
 0xa1a   : > { %6916 = vmatmul.mubr.bf16.vlgmr.msra.gmra.mrb[60].mxu0 %v6799_v34  ;;  %v10791_v34 = vld [vmem:[%s14501_s9 + $0x3c0] sm:$0xff]  }
 0xa1b   : > { %7035 = vmatpush1.bf16.msra.mxu0 %v10762_v62  ;;  %9391 = vmatprep.mubr.msk.bf16.mxu0 %vm6305_vm2, %v6951_v17  ;;  %v10792_v17 = vld [vmem:[%s14501_s9 + $0x3c8] sm:$0xff]  }
 0xa1c   : > { %7036 = vmatprep.subr.bf16.mxu0 %v10892_v1 }
 0xa1d   : > { %v6343_v19 = vpop.f32.mrb[44].mxu0  ;;  %v14156_v2 = vpop.f32.mrb[100].mxu1 }
 0xa1e   : > { %v6345_v6 = vpop.f32.mrb[45].mxu0  ;;  %v7221_v10 = vpop.f32.mrb[101].mxu1 }
 0xa1f   : > { %7037 = vmatpush1.bf16.msra.mxu0 %v10763_v21  ;;  %v6346_v60 = vpop.f32.mrb[46].mxu0  ;;  %v7222_v18 = vpop.f32.mrb[102].mxu1  ;;  %v10793_v21 = vld [vmem:[%s14501_s9 + $0x3d0] sm:$0xff]   ;;  %v10795_v6 = vld [vmem:[%s14501_s9 + $0x3e0] sm:$0xff]   ;;  %v10796_v10 = vld [vmem:[%s14501_s9 + $0x3e8] sm:$0xff]  }
 0xa20   : > { %v6347_v9 = vpop.f32.mrb[47].mxu0  ;;  %v7223_v40 = vpop.f32.mrb[103].mxu1  ;;  %7038 = vmatprep.subr.bf16.mxu0 %v10892_v1  ;;  %v10797_v60 = vld [vmem:[%s14501_s9 + $0x3f0] sm:$0xff]   ;;  %v10798_v18 = vld [vmem:[%s14501_s9 + $0x3f8] sm:$0xff]  }
 0xa21   : > { %v10800_v9 = vld [vmem:[%s14501_s9 + $0x408] sm:$0xff]   ;;  %v10801_v40 = vld [vmem:[%s14501_s9 + $0x478] sm:$0xff]  }
 0xa23   : > { %7039 = vmatpush1.bf16.msra.mxu0 %v10764_v4  ;;  %v10799_v4 = vld [vmem:[%s14501_s9 + $0x400] sm:$0xff]  }
 0xa24   : > { %7040 = vmatprep.subr.bf16.mxu0 %v10892_v1 }
 0xa27   : > { %7041 = vmatpush1.bf16.msra.mxu0 %v10765_v8  ;;  %v7554_v8 = vrot.slane %v13761_v24, 4 }
 0xa28   : > { %7042 = vmatprep.subr.bf16.mxu0 %v10892_v1 }
 0xa2b   : > { %7043 = vmatpush1.bf16.msra.mxu0 %v10766_v49  ;;  %v7857_v49 = vrot.slane %v13751_v52, 5  ;;  %v10803_v52 = vld [vmem:[%s14501_s9 + $0x488] sm:$0xff]  }
 0xa2c   : > { %7044 = vmatprep.subr.bf16.mxu0 %v10892_v1 }
 0xa2f   : > { %7045 = vmatpush1.bf16.msra.mxu0 %v10767_v26  ;;  %v10802_v26 = vld [vmem:[%s14501_s9 + $0x480] sm:$0xff]  }
 0xa30   : > { %7046 = vmatprep.subr.bf16.mxu0 %v10892_v1 }
 0xa33   : > { %7047 = vmatpush1.bf16.msra.mxu0 %v10768_v28 }
 0xa34   : > { %7048 = vmatprep.subr.bf16.mxu0 %v10892_v1 }
 0xa37   : > { %7049 = vmatpush1.bf16.msra.mxu0 %v10769_v48 }
 0xa38   : > { %7050 = vmatprep.subr.bf16.mxu0 %v10892_v1 }
 0xa3b   : > { %7051 = vmatpush1.bf16.msra.mxu0 %v10770_v61 }
 0xa3c   : > { %7052 = vmatprep.subr.bf16.mxu0 %v10892_v1 }
 0xa3f   : > { %7053 = vmatpush1.bf16.msra.mxu0 %v10771_v27 }
 0xa40   : > { %7054 = vmatprep.subr.bf16.mxu0 %v10892_v1 }
 0xa43   : > { %7055 = vmatpush1.bf16.msra.mxu0 %v10772_v55 }
 0xa44   : > { %7056 = vmatprep.subr.bf16.mxu0 %v10892_v1 }
 0xa47   : > { %7057 = vmatpush1.bf16.msra.mxu0 %v10773_v5 }
 0xa48   : > { %7058 = vmatprep.subr.bf16.mxu0 %v10892_v1 }
 0xa4b   : > { %7059 = vmatpush1.bf16.msra.mxu0 %v10774_v38 }
 0xa4c   : > { %7336 = vmatprep.subr.bf16.mxu0 %v10892_v1 }
 0xa4e   : > { %7067 = vmatmul.mubr.bf16.vlgmr.msra.gmra.mrb[64].mxu0 %v6950_v37 }
 0xa4f   : > { %7337 = vmatpush1.bf16.msra.mxu0 %v10775_v36  ;;  %9419 = vmatprep.mubr.msk.bf16.mxu0 %vm6305_vm2, %v7253_v23  ;;  %v10804_v23 = vld [vmem:[%s14501_s9 + $0x490] sm:$0xff]  }
 0xa50   : > { %7338 = vmatprep.subr.bf16.mxu0 %v10892_v1 }
 0xa51   : > { %v6463_v30 = vpop.f32.mrb[48].mxu0  ;;  %v14213_v39 = vpop.f32.mrb[104].mxu1 }
 0xa52   : > { %v6464_v7 = vadd.f32 %v6463_v30, %v6343_v19  ;;  %v6465_v16 = vpop.f32.mrb[49].mxu0  ;;  %v7523_v56 = vpop.f32.mrb[105].mxu1  ;;  %v10794_v19 = vld [vmem:[%s14501_s9 + $0x3d8] sm:$0xff]   ;;  %v10806_v30 = vld [vmem:[%s14501_s9 + $0x4a0] sm:$0xff]  }
 0xa53   : > { %v6466_v50 = vpop.f32.mrb[50].mxu0  ;;  %7339 = vmatpush1.bf16.msra.mxu0 %v10776_v59  ;;  %v7524_v51 = vpop.f32.mrb[106].mxu1  ;;  %v10805_v59 = vld [vmem:[%s14501_s9 + $0x498] sm:$0xff]   ;;  %v10808_v16 = vld [vmem:[%s14501_s9 + $0x4b0] sm:$0xff]  }
 0xa54   : > { %v6467_v54 = vpop.f32.mrb[51].mxu0  ;;  %v7525_v43 = vpop.f32.mrb[107].mxu1  ;;  %7340 = vmatprep.subr.bf16.mxu0 %v10892_v1  ;;  %v10809_v56 = vld [vmem:[%s14501_s9 + $0x4b8] sm:$0xff]   ;;  %v10810_v50 = vld [vmem:[%s14501_s9 + $0x4c0] sm:$0xff]   ;;  %v10811_v51 = vld [vmem:[%s14501_s9 + $0x4c8] sm:$0xff]  }
 0xa55   : > { %v10813_v54 = vld [vmem:[%s14501_s9 + $0x4d8] sm:$0xff]   ;;  %v7856_v43 = vrot.slane %v13761_v24, 5  ;;  %v10816_v24 = vld [vmem:[%s14503_s11 + $0x10] sm:$0xff]  }
 0xa57   : > { %7341 = vmatpush1.bf16.msra.mxu0 %v10777_v32  ;;  %v10812_v32 = vld [vmem:[%s14501_s9 + $0x4d0] sm:$0xff]  }
 0xa58   : > { %7342 = vmatprep.subr.bf16.mxu0 %v10892_v1 }
 0xa5b   : > { %7343 = vmatpush1.bf16.msra.mxu0 %v10778_v15 }
 0xa5c   : > { %7344 = vmatprep.subr.bf16.mxu0 %v10892_v1 }
 0xa5f   : > { %7345 = vmatpush1.bf16.msra.mxu0 %v10779_v11 }
 0xa60   : > { %7346 = vmatprep.subr.bf16.mxu0 %v10892_v1 }
 0xa63   : > { %7347 = vmatpush1.bf16.msra.mxu0 %v10780_v20 }
 0xa64   : > { %7348 = vmatprep.subr.bf16.mxu0 %v10892_v1 }
 0xa67   : > { %7349 = vmatpush1.bf16.msra.mxu0 %v10781_v13 }
 0xa68   : > { %7350 = vmatprep.subr.bf16.mxu0 %v10892_v1 }
 0xa6b   : > { %7351 = vmatpush1.bf16.msra.mxu0 %v10782_v46 }
 0xa6c   : > { %7352 = vmatprep.subr.bf16.mxu0 %v10892_v1 }
 0xa6f   : > { %7353 = vmatpush1.bf16.msra.mxu0 %v10783_v35  ;;  %v10814_v35 = vld [vmem:[%s14503_s11] sm:$0xff]  }
 0xa70   : > { %7354 = vmatprep.subr.bf16.mxu0 %v10892_v1 }
 0xa73   : > { %7355 = vmatpush1.bf16.msra.mxu0 %v10784_v29  ;;  %v10817_v29 = vld [vmem:[%s14503_s11 + $0x18] sm:$0xff]  }
 0xa74   : > { %7356 = vmatprep.subr.bf16.mxu0 %v10892_v1 }
 0xa77   : > { %7357 = vmatpush1.bf16.msra.mxu0 %v10785_v57  ;;  %v10818_v57 = vld [vmem:[%s14503_s11 + $0x20] sm:$0xff]  }
 0xa78   : > { %7358 = vmatprep.subr.bf16.mxu0 %v10892_v1 }
 0xa7b   : > { %7359 = vmatpush1.bf16.msra.mxu0 %v10786_v22 }
 0xa7c   : > { %7360 = vmatprep.subr.bf16.mxu0 %v10892_v1 }
 0xa7f   : > { %7361 = vmatpush1.bf16.msra.mxu0 %v10787_v53 }
 0xa80   : > { %7638 = vmatprep.subr.bf16.mxu0 %v10892_v1 }
 0xa82   : > { %7369 = vmatmul.mubr.bf16.vlgmr.msra.gmra.mrb[68].mxu0 %v7252_v33 }
 0xa83   : > { %7639 = vmatpush1.bf16.msra.mxu0 %v10788_v25  ;;  %9447 = vmatprep.mubr.msk.bf16.mxu0 %vm6305_vm2, %v7555_v31 }
 0xa84   : > { %7640 = vmatprep.subr.bf16.mxu0 %v10892_v1 }
 0xa85   : > { %v6615_v41 = vpop.f32.mrb[52].mxu0 }
 0xa86   : > { %v6621_v3 = vadd.f32 %v6615_v41, %v6464_v7  ;;  %v14270_v0 = vpop.f32.mrb[108].mxu1  ;;  %v6617_v14 = vpop.f32.mrb[53].mxu0  ;;  %v10807_v7 = vld [vmem:[%s14501_s9 + $0x4a8] sm:$0xff]  }
 0xa87   : > { %v7825_v12 = vpop.f32.mrb[109].mxu1  ;;  %v6618_v47 = vpop.f32.mrb[54].mxu0  ;;  %7641 = vmatpush1.bf16.msra.mxu0 %v10789_v42  ;;  %v10819_v41 = vld [vmem:[%s14503_s11 + $0x28] sm:$0xff]   ;;  %v10821_v14 = vld [vmem:[%s14503_s11 + $0x38] ss:$0 sps:$4 sm:$0xff]  }
 0xa88   : > { %v7826_v44 = vpop.f32.mrb[110].mxu1  ;;  %v6619_v58 = vpop.f32.mrb[55].mxu0  ;;  %7642 = vmatprep.subr.bf16.mxu0 %v10892_v1  ;;  %v10822_v12 = vld [vmem:[%s14505_s13] sm:$0xff]   ;;  %v10823_v47 = vld [vmem:[%s14505_s13 + $0x8] sm:$0xff]  }
 0xa89   : > { %v7827_v62 = vpop.f32.mrb[111].mxu1  ;;  %9581 = vmatpush3.bf16.msra.mxu1 %v10822_v12  ;;  %v10825_v44 = vld [vmem:[%s14505_s13 + $0x18] sm:$0xff]  }
 0xa8a   : > { %9582 = vmatprep.subr.bf16.mxu1 %v10893_v63 }
 0xa8b   : > { %7643 = vmatpush1.bf16.msra.mxu0 %v10790_v45  ;;  %v10824_v45 = vld [vmem:[%s14505_s13 + $0x10] sm:$0xff]  }
 0xa8c   : > { %7644 = vmatprep.subr.bf16.mxu0 %v10892_v1 }
 0xa8d   : > { %9583 = vmatpush3.bf16.msra.mxu1 %v10823_v47 }
 0xa8e   : > { %9584 = vmatprep.subr.bf16.mxu1 %v10893_v63 }
 0xa8f   : > { %7645 = vmatpush1.bf16.msra.mxu0 %v10791_v34 }
 0xa90   : > { %7646 = vmatprep.subr.bf16.mxu0 %v10892_v1 }
 0xa91   : > { %9585 = vmatpush3.bf16.msra.mxu1 %v10824_v45 }
 0xa92   : > { %9586 = vmatprep.subr.bf16.mxu1 %v10893_v63 }
 0xa93   : > { %7647 = vmatpush1.bf16.msra.mxu0 %v10792_v17 }
 0xa94   : > { %7648 = vmatprep.subr.bf16.mxu0 %v10892_v1 }
 0xa95   : > { %9587 = vmatpush3.bf16.msra.mxu1 %v10825_v44 }
 0xa96   : > { %9588 = vmatprep.subr.bf16.mxu1 %v10893_v63 }
 0xa97   : > { %7649 = vmatpush1.bf16.msra.mxu0 %v10793_v21 }
 0xa98   : > { %7650 = vmatprep.subr.bf16.mxu0 %v10892_v1 }
 0xa9b   : > { %7651 = vmatpush1.bf16.msra.mxu0 %v10794_v19 }
 0xa9c   : > { %7652 = vmatprep.subr.bf16.mxu0 %v10892_v1 }
 0xa9f   : > { %7653 = vmatpush1.bf16.msra.mxu0 %v10795_v6 }
 0xaa0   : > { %7654 = vmatprep.subr.bf16.mxu0 %v10892_v1 }
 0xaa3   : > { %7655 = vmatpush1.bf16.msra.mxu0 %v10796_v10 }
 0xaa4   : > { %7656 = vmatprep.subr.bf16.mxu0 %v10892_v1 }
 0xaa7   : > { %7657 = vmatpush1.bf16.msra.mxu0 %v10797_v60 }
 0xaa8   : > { %7658 = vmatprep.subr.bf16.mxu0 %v10892_v1 }
 0xaab   : > { %7659 = vmatpush1.bf16.msra.mxu0 %v10798_v18 }
 0xaac   : > { %7660 = vmatprep.subr.bf16.mxu0 %v10892_v1 }
 0xaaf   : > { %7661 = vmatpush1.bf16.msra.mxu0 %v10799_v4 }
 0xab0   : > { %7662 = vmatprep.subr.bf16.mxu0 %v10892_v1 }
 0xab3   : > { %7663 = vmatpush1.bf16.msra.mxu0 %v10800_v9 }
 0xab4   : > { %7940 = vmatprep.subr.bf16.mxu0 %v10892_v1 }
 0xab6   : > { %7671 = vmatmul.mubr.bf16.vlgmr.msra.gmra.mrb[72].mxu0 %v7554_v8 }
 0xab7   : > { %7941 = vmatpush1.bf16.msra.mxu0 %v10801_v40  ;;  %9475 = vmatprep.mubr.msk.bf16.mxu0 %vm6305_vm2, %v7857_v49 }
 0xab8   : > { %7942 = vmatprep.subr.bf16.mxu0 %v10892_v1 }
 0xab9   : > { %v6766_v28 = vpop.f32.mrb[56].mxu0 }
 0xaba   : > { %v6772_v48 = vadd.f32 %v6766_v28, %v6621_v3  ;;  %v14327_v61 = vpop.f32.mrb[112].mxu1  ;;  %v6768_v27 = vpop.f32.mrb[57].mxu0  ;;  %v10820_v3 = vld [vmem:[%s14503_s11 + $0x30] sm:$0xff]  }
 0xabb   : > { %v8127_v55 = vpop.f32.mrb[113].mxu1  ;;  %v6769_v5 = vpop.f32.mrb[58].mxu0  ;;  %7943 = vmatpush1.bf16.msra.mxu0 %v10802_v26  ;;  %v8132_v26 = vld [vmem:[%s14502_s10] sm:$0x1] }
 0xabc   : > { %v8128_v38 = vpop.f32.mrb[114].mxu1  ;;  %v6770_v36 = vpop.f32.mrb[59].mxu0  ;;  %7944 = vmatprep.subr.bf16.mxu0 %v10892_v1 }
 0xabd   : > { %v8129_v37 = vpop.f32.mrb[115].mxu1  ;;  %v8151_v38 = vld [vmem:[%s14504_s12] sm:$0x1] }
 0xabf   : > { %7945 = vmatpush1.bf16.msra.mxu0 %v10803_v52  ;;  %v10827_v52 = vld [vmem:[%s14505_s13 + $0x28] ss:$0 sps:$4 sm:$0x33]  }
 0xac0   : > { %7946 = vmatprep.subr.bf16.mxu0 %v10892_v1 }
 0xac3   : > { %7947 = vmatpush1.bf16.msra.mxu0 %v10804_v23 }
 0xac4   : > { %7948 = vmatprep.subr.bf16.mxu0 %v10892_v1 }
 0xac7   : > { %7949 = vmatpush1.bf16.msra.mxu0 %v10805_v59 }
 0xac8   : > { %7950 = vmatprep.subr.bf16.mxu0 %v10892_v1 }
 0xacb   : > { %7951 = vmatpush1.bf16.msra.mxu0 %v10806_v30 }
 0xacc   : > { %7952 = vmatprep.subr.bf16.mxu0 %v10892_v1 }
 0xacf   : > { %7953 = vmatpush1.bf16.msra.mxu0 %v10807_v7 }
 0xad0   : > { %7954 = vmatprep.subr.bf16.mxu0 %v10892_v1 }
 0xad3   : > { %7955 = vmatpush1.bf16.msra.mxu0 %v10808_v16 }
 0xad4   : > { %7956 = vmatprep.subr.bf16.mxu0 %v10892_v1 }
 0xad7   : > { %7957 = vmatpush1.bf16.msra.mxu0 %v10809_v56 }
 0xad8   : > { %7958 = vmatprep.subr.bf16.mxu0 %v10892_v1 }
 0xadb   : > { %7959 = vmatpush1.bf16.msra.mxu0 %v10810_v50 }
 0xadc   : > { %7960 = vmatprep.subr.bf16.mxu0 %v10892_v1 }
 0xadf   : > { %7961 = vmatpush1.bf16.msra.mxu0 %v10811_v51 }
 0xae0   : > { %7962 = vmatprep.subr.bf16.mxu0 %v10892_v1 }
 0xae3   : > { %7963 = vmatpush1.bf16.msra.mxu0 %v10812_v32 }
 0xae4   : > { %7964 = vmatprep.subr.bf16.mxu0 %v10892_v1  ;;  %v10815_v1 = vld [vmem:[%s14503_s11 + $0x8] sm:$0xff]  }
 0xae7   : > { %7965 = vmatpush1.bf16.msra.mxu0 %v10813_v54 }
 0xae8   : > { %9560 = vmatprep.subr.bf16.mxu0 %v10893_v63 }
 0xaea   : > { %7973 = vmatmul.mubr.bf16.vlgmr.msra.gmra.mrb[76].mxu0 %v7856_v43 }
 0xaeb   : > { %9561 = vmatpush3.bf16.msra.mxu0 %v10814_v35  ;;  %9576 = vmatprep.mubr.msk.bf16.mxu0 %vm10897_vm4, %v10893_v63 }
 0xaec   : > { %9562 = vmatprep.subr.bf16.mxu0 %v10893_v63 }
 0xaed   : > { %v6917_v15 = vpop.f32.mrb[60].mxu0 }
 0xaee   : > { %v6923_v11 = vadd.f32 %v6917_v15, %v6772_v48  ;;  %v6919_v20 = vpop.f32.mrb[61].mxu0 }
 0xaef   : > { %v6920_v13 = vpop.f32.mrb[62].mxu0  ;;  %9563 = vmatpush3.bf16.msra.mxu0 %v10815_v1 }
 0xaf0   : > { %v6921_v46 = vpop.f32.mrb[63].mxu0  ;;  %9564 = vmatprep.subr.bf16.mxu0 %v10893_v63 }
 0xaf3   : > { %9565 = vmatpush3.bf16.msra.mxu0 %v10816_v24 }
 0xaf4   : > { %9566 = vmatprep.subr.bf16.mxu0 %v10893_v63 }
 0xaf7   : > { %9567 = vmatpush3.bf16.msra.mxu0 %v10817_v29 }
 0xaf8   : > { %9568 = vmatprep.subr.bf16.mxu0 %v10893_v63 }
 0xafb   : > { %9569 = vmatpush3.bf16.msra.mxu0 %v10818_v57 }
 0xafc   : > { %9570 = vmatprep.subr.bf16.mxu0 %v10893_v63 }
 0xaff   : > { %9571 = vmatpush3.bf16.msra.mxu0 %v10819_v41 }
 0xb00   : > { %9572 = vmatprep.subr.bf16.mxu0 %v10893_v63 }
 0xb03   : > { %9573 = vmatpush3.bf16.msra.mxu0 %v10820_v3 }
 0xb04   : > { %9574 = vmatprep.subr.bf16.mxu0 %v10893_v63 }
 0xb21   : > { %v7068_v22 = vpop.f32.mrb[64].mxu0 }
 0xb22   : > { %v7074_v53 = vadd.f32 %v7068_v22, %v6923_v11  ;;  %v7070_v25 = vpop.f32.mrb[65].mxu0 }
 0xb23   : > { %v7071_v33 = vpop.f32.mrb[66].mxu0 }
 0xb24   : > { %v7072_v31 = vpop.f32.mrb[67].mxu0  ;;  %v7225_v42 = vadd.f32 %v14156_v2, %v7074_v53  ;;  %v8203_v2 = vsel %vm8201_vm3, %v10821_v14, 0 }
 0xb25   : > { %9575 = vmatpush3.bf16.msra.mxu0 %v8203_v2 }
 0xb55   : > { %v7370_v58 = vpop.f32.mrb[68].mxu0 }
 0xb56   : > { %v7376_v62 = vadd.f32 %v7370_v58, %v7225_v42  ;;  %v7372_v34 = vpop.f32.mrb[69].mxu0 }
 0xb57   : > { %v7373_v17 = vpop.f32.mrb[70].mxu0 }
 0xb58   : > { %v7374_v21 = vpop.f32.mrb[71].mxu0  ;;  %v7527_v19 = vadd.f32 %v14213_v39, %v7376_v62 }
 0xb89   : > { %v7672_v6 = vpop.f32.mrb[72].mxu0 }
 0xb8a   : > { %v7678_v10 = vadd.f32 %v7672_v6, %v7527_v19  ;;  %v7674_v60 = vpop.f32.mrb[73].mxu0 }
 0xb8b   : > { %v7675_v18 = vpop.f32.mrb[74].mxu0 }
 0xb8c   : > { %v7676_v4 = vpop.f32.mrb[75].mxu0  ;;  %v7829_v9 = vadd.f32 %v14270_v0, %v7678_v10  ;;  %v10826_v0 = vld [vmem:[%s14505_s13 + $0x20] sm:$0xff]  }
 0xb8d   : > { %9589 = vmatpush3.bf16.msra.mxu1 %v10826_v0 }
 0xb8e   : > { %9590 = vmatprep.subr.bf16.mxu1 %v10893_v63  ;;  %v8258_v63 = vld [vmem:[%s14506_s14] sm:$0x1] }
 0xbbd   : > { %v7974_v40 = vpop.f32.mrb[76].mxu0 }
 0xbbe   : > { %v7980_v8 = vadd.f32 %v7974_v40, %v7829_v9  ;;  %v7976_v49 = vpop.f32.mrb[77].mxu0 }
 0xbbf   : > { %v7977_v28 = vpop.f32.mrb[78].mxu0 }
 0xbc0   : > { %v8131_v48 = vadd.f32 %v14327_v61, %v7980_v8  ;;  %v7978_v27 = vpop.f32.mrb[79].mxu0  ;;  %v8297_v61 = vsel %vm3244_vm10, %v10827_v52, 0 }
 0xbc1   : > { %9591 = vmatpush3.bf16.msra.mxu1 %v8297_v61 }
 0xbc2   : > { %v8133_v55 = vadd.f32 %v8132_v26, %v8131_v48 }
 0xbc4   : > { %v8134_v39 = vmax.f32 %v8133_v55, 0.0 }
 0xbc6   : > { %v8135_v5 = vpack.c.bf16 %v8134_v39, %v8134_v39 }
 0xbc8   : > { %9577 = vmatmul.mubr.msk.bf16.vlgmr.msra.gmra.mrb[80].mxu0 %vm8197_vm5, %v8135_v5 }
 0xc9b   : > { %v8239_v36 = vpop.f32.mrb[80].mxu0 }
 0xc9c   : > { %v8240_v37 = vadd.f32 %v8239_v36, %v8151_v38  ;;  %v9578_v23 = vpop.f32.mrb[81].mxu0 }
 0xc9d   : > { %v8242_v59 = vpop.f32.mrb[82].mxu0 }
 0xc9e   : > { %v8245_v30 = vmax.f32 %v8240_v37, 0.0  ;;  %v9579_v7 = vpop.f32.mrb[83].mxu0 }
 0xca0   : > { %v8246_v16 = vpack.c.bf16 %v8245_v30, %v8245_v30 }
 0xca2   : > { %9593 = vmatmul.mubr.msk.bf16.vlgmr.msra.gmra.mrb[116].mxu1 %vm8292_vm6, %v8246_v16 }
 0xd75   : > { %v8333_v56 = vpop.f32.mrb[116].mxu1 }
 0xd76   : > { %v8334_v50 = vadd.f32 %v8333_v56, %v8258_v63  ;;  %v9594_v51 = vpop.f32.mrb[117].mxu1 }
 0xd77   : > { %v8336_v32 = vpop.f32.mrb[118].mxu1 }
 0xd78   : > { %v9595_v54 = vpop.f32.mrb[119].mxu1  ;;  %8340 = vst.msk [vmem:[%s486_s25] sm:$0x1] %vm8339_vm7, %v8334_v50 }
 0xd79   : > { %10841 = shalt.err (!%p10838_p3)
}
 0xd7a   : > { %s10842_s24 = scalar_lea.hbm %s14450_s23, 16  ;;  %s10846_s26 = scalar_lea.hbm %s14507_s15, 32 }
 0xd7b   : > { %p10843_p4 = scmp.ne.s32.totalorder %s14450_s23, %s10842_s24  ;;  %p10847_p9 = scmp.lt.u32.totalorder %s14450_s23, %s14507_s15 }
 0xd7c   : > { %p10848_p10 = scmp.lt.u32.totalorder %s10846_s26, %s10842_s24  ;;  %p10850_p12 = scmp.lt.u32.totalorder %s10842_s24, %s14450_s23 }
 0xd7d   : > { %p10844_p7 = pnand %p10843_p4, %p11017_p5 }
 0xd7e   : > { %p10849_p11 = por %p10848_p10, %p10847_p9 }
 0xd7f   : > { %p10845_p8 = pneg %p10844_p7 }
 0xd80   : > { %p10851_p13 = por %p10850_p12, %p10849_p11 }
 0xd82   : > { %p10852_p0 = pnand %p10851_p13, %p10845_p8 }
 0xd84   : > { %10855 = shalt.err (!%p10852_p0)
}
 0xd85   : > { %9980 = dma.vmem_to_hbm [thread:$0]  (%p11017_p5), %s14452_s27, 16, %s14450_s23, %s8342_s22  }
 0xd86 PF: > { %s14522_s20 = sld [smem:[#allocation5_spill]]  ;;  %p9986_p1 = scmp.ge.s32.totalorder %s10890_s21, 2 }
 0xd88   : > { %p9983_p2 = pnand %p9986_p1, %p11021_p6 }
 0xd8c   : > { %s8366_s17 = sand.u32 1, %s14522_s20  }
 0xd8d   : > { %s8367_s29 = scalar_lea.sflag [#allocation3], %s8366_s17 }
 0xd8e   : > { %10873 = dma.done.wait (!%p9983_p2), %s8367_s29, 16  }
 0xd8f   : > { %10875 = vsyncadd (!%p9983_p2), %s8367_s29, 4294967280  ;;  %s14524_s21 = sld [smem:[#allocation7_spill]]  ;;  %s14525_s24 = sld [smem:[#allocation6_spill]] }
 0xd90   : > { %s14526_s20 = sld [smem:[#allocation8_spill]]  ;;  %s14527_s18 = smov %s10882_s19 }
 0xd95   : > { %p25_p3 = scmp.ge.s32.totalorder %s14524_s21, 4   ;;  %s14528_s19 = smov %s14525_s24 }
 0xd97   :  { %27 = sbr.rel (!%p25_p3) target bundleno = 3 (0x3), region = 123 }
 0xd9e   :  { %8371 = vsyncpa [#allocation3], 1 }
 0xd9f   :  { %8373 = vsyncpa [#allocation3 + $0x1], 1 }

</bundles_post_ra>
